<compile_context>
chip_gen: v7x
topology: tpu7x:2x2x1
jax: 0.10.0
libtpu: 0.0.40
codegen_flags: <defaults>
</compile_context>

<pallas_src>
import functools

import jax
import jax.numpy as jnp
from jax.experimental import pallas as pl
from jax.experimental.pallas import tpu as pltpu

_BN_EPS = 1e-5
_ROW_TARGET = 512                      # target rows per fused-conv block
_HEAD_TM = 512                         # max M tile for the head GEMM
_HEAD_VMEM_BUDGET = 40 * 1024 * 1024   # single-K head budget (v7x-safe)


def _round_up(x, m):
    return (x + m - 1) // m * m


def _cdiv(a, b):
    return (a + b - 1) // b


# ---------------------------------------------------------------------------
# Static geometry of the DmlabConv2dModelBn stack.
# ---------------------------------------------------------------------------
_CONV_CFG = (
    # (cout, kernel, stride, pad, residual_skip)
    (32, 8, 4, 0, False),
    (64, 4, 2, 0, False),
    (64, 3, 1, 1, True),
    (64, 3, 1, 1, True),
)


def _conv_out_hw(h, w):
    ch, cw = h, w
    for (_, k, s, p, _) in _CONV_CFG:
        ch = (ch + 2 * p - k) // s + 1
        cw = (cw + 2 * p - k) // s + 1
    return ch, cw


def _geometry(c, h, w):
    """Per-layer static layout geometry for the fused conv kernels."""
    layers = []
    cin, ch, cw = c, h, w
    for (cout, k, s, p, skip) in _CONV_CFG:
        oh = (ch + 2 * p - k) // s + 1
        ow = (cw + 2 * p - k) // s + 1
        if p == 0:
            # space-to-depth(s) turns (k, s) into a (k//s)x(k//s) stride-1 conv
            ktap = k // s
            hs = _cdiv(ch, s)
            ws = _cdiv(cw, s)
            wsp = _round_up(ws, 8)
            roff = coff = 0
            shifts = tuple(kh * wsp + kw
                           for kh in range(ktap) for kw in range(ktap))
            cin_eff = cin * s * s
        else:
            # 3x3 stride-1 "same" conv on a map stored with an explicit zero halo
            assert k == 3 and s == 1 and p == 1
            hs = oh + 2
            wsp = _round_up(ow + 2, 8)
            roff = coff = 1
            shifts = tuple((kh - 1) * wsp + (kw - 1)
                           for kh in range(3) for kw in range(3))
            cin_eff = cin
        layers.append(dict(cout=cout, k=k, s=s, p=p, skip=skip, cin=cin,
                           cin_eff=cin_eff, oh=oh, ow=ow, hs=hs, wsp=wsp,
                           roff=roff, coff=coff, shifts=shifts))
        cin, ch, cw = cout, oh, ow
    return layers


# ---------------------------------------------------------------------------
# Fused conv kernel: per-tap shifted matmuls over a VMEM-resident row block.
# ---------------------------------------------------------------------------
def _make_conv_kernel(shifts, cin, skip):
    def kernel(x_ref, w_ref, b_ref, m_ref, o_ref):
        x = x_ref[...]                               # (rows, cin) bf16, resident
        rows = x.shape[0]
        acc = None
        for t, s in enumerate(shifts):
            sp = s % rows                            # static wrap; wrapped rows only
            if sp == 0:                              # ever reach masked outputs
                xs = x
            else:
                xs = jnp.concatenate([x[sp:, :], x[:sp, :]], axis=0)
            w_tap = w_ref[t * cin:(t + 1) * cin, :]
            part = jnp.dot(xs, w_tap, preferred_element_type=jnp.float32)
            acc = part if acc is None else acc + part
        acc = acc + b_ref[...]
        if skip:                                     # residual = resident center tap
            acc = acc + x.astype(jnp.float32)
        acc = jnp.maximum(acc, 0.0)
        acc = jnp.where(m_ref[...] > 0.5, acc, 0.0)  # zero halo / invalid rows
        o_ref[...] = acc.astype(o_ref.dtype)
    return kernel


def _fused_conv(x_rows, w_mat, b_row, geom, n_imgs):
    """x_rows: (n_imgs * hs * wsp, cin_eff) bf16 rows of the layer input layout."""
    mtot, cin = x_rows.shape
    ktot, cout = w_mat.shape
    assert cin == geom["cin_eff"] and ktot == len(geom["shifts"]) * cin
    mimg = geom["hs"] * geom["wsp"]
    assert mtot == n_imgs * mimg

    nb = min(n_imgs, max(1, _ROW_TARGET // mimg))
    if n_imgs > 1:                                   # >=2 grid steps (v7x megacore)
        nb = min(nb, max(1, (n_imgs + 1) // 2))
    mblk = nb * mimg

    # Per-block validity mask (identical for every block): 1 at real output
    # positions, 0 at halo / alignment-padding rows.
    mimg_mask = jnp.pad(
        jnp.ones((geom["oh"], geom["ow"]), jnp.float32),
        ((geom["roff"], geom["hs"] - geom["roff"] - geom["oh"]),
         (geom["coff"], geom["wsp"] - geom["coff"] - geom["ow"])))
    mask = jnp.broadcast_to(mimg_mask.reshape(1, mimg), (nb, mimg)).reshape(mblk, 1)

    kernel = _make_conv_kernel(geom["shifts"], cin, geom["skip"])
    grid = (pl.cdiv(n_imgs, nb),)
    return pl.pallas_call(
        kernel,
        out_shape=jax.ShapeDtypeStruct((mtot, cout), jnp.bfloat16),
        grid_spec=pltpu.PrefetchScalarGridSpec(
            num_scalar_prefetch=0,
            grid=grid,
            in_specs=[
                pl.BlockSpec((mblk, cin), lambda g: (g, 0)),
                pl.BlockSpec((ktot, cout), lambda g: (0, 0)),
                pl.BlockSpec((1, cout), lambda g: (0, 0)),
                pl.BlockSpec((mblk, 1), lambda g: (0, 0)),
            ],
            out_specs=pl.BlockSpec((mblk, cout), lambda g: (g, 0)),
        ),
        compiler_params=pltpu.CompilerParams(
            dimension_semantics=("parallel",),
            vmem_limit_bytes=32 * 1024 * 1024,
        ),
    )(x_rows, w_mat, b_row, mask)


# ---------------------------------------------------------------------------
# Head Linear: single-K bf16 GEMM (budget-driven), K-grid fallback.
# ---------------------------------------------------------------------------
def _head_single_kernel(x_ref, w_ref, b_ref, o_ref):
    o_ref[...] = (jnp.dot(x_ref[...], w_ref[...],
                          preferred_element_type=jnp.float32) + b_ref[...])


def _head_kgrid_kernel(x_ref, w_ref, b_ref, o_ref):
    k = pl.program_id(1)

    @pl.when(k == 0)
    def _():
        o_ref[...] = jnp.zeros_like(o_ref)

    o_ref[...] += jnp.dot(x_ref[...], w_ref[...],
                          preferred_element_type=jnp.float32)

    @pl.when(k == pl.num_programs(1) - 1)
    def _():
        o_ref[...] = o_ref[...] + b_ref[...]


def linear_head(x, w_p, b_p, *, k_quant):
    """y = x @ W + b.  x: (M, K) any float; w_p: (K, N) bf16; b_p: (1, N) f32."""
    m, k = x.shape
    kw, n = w_p.shape
    assert kw == k and k % k_quant == 0
    x = x.astype(jnp.bfloat16)

    if m < 8:                                        # tiny-batch corner case
        x_in = jnp.pad(x, ((0, 8 - m), (0, 0)))
        mp = 8
    else:
        x_in, mp = x, m

    def est_single(tm_):
        return 2 * (tm_ * k * 2) + 2 * (k * n * 2) + 2 * (tm_ * n * 4) + (2 << 20)

    cap = (mp // 8) * 8
    if mp > 8:                                       # >=2 M blocks (v7x megacore)
        cap = min(cap, _round_up(_cdiv(mp, 2), 8))
    tm = max(8, (min(_HEAD_TM, cap) // 8) * 8)
    while est_single(tm) > _HEAD_VMEM_BUDGET and tm > 64:
        tm = max(64, ((tm // 2) // 8) * 8)
    single = est_single(tm) <= _HEAD_VMEM_BUDGET

    if single:
        grid = (pl.cdiv(mp, tm),)
        in_specs = [
            pl.BlockSpec((tm, k), lambda i: (i, 0)),
            pl.BlockSpec((k, n), lambda i: (0, 0)),
            pl.BlockSpec((1, n), lambda i: (0, 0)),
        ]
        out_spec = pl.BlockSpec((tm, n), lambda i: (i, 0))
        kernel, dims = _head_single_kernel, ("parallel",)
        vmem = int(min(48 * 1024 * 1024,
                       max(32 * 1024 * 1024, est_single(tm) + 4 * 1024 * 1024)))
    else:
        tk = k_quant                                 # divides K by construction
        grid = (pl.cdiv(mp, tm), k // tk)
        in_specs = [
            pl.BlockSpec((tm, tk), lambda i, kk: (i, kk)),
            pl.BlockSpec((tk, n), lambda i, kk: (kk, 0)),
            pl.BlockSpec((1, n), lambda i, kk: (0, 0)),
        ]
        out_spec = pl.BlockSpec((tm, n), lambda i, kk: (i, 0))
        kernel, dims = _head_kgrid_kernel, ("parallel", "arbitrary")
        vmem = 32 * 1024 * 1024

    out = pl.pallas_call(
        kernel,
        out_shape=jax.ShapeDtypeStruct((mp, n), jnp.float32),
        grid_spec=pltpu.PrefetchScalarGridSpec(
            num_scalar_prefetch=0, grid=grid,
            in_specs=in_specs, out_specs=out_spec),
        compiler_params=pltpu.CompilerParams(
            dimension_semantics=dims, vmem_limit_bytes=vmem),
    )(x_in, w_p, b_p)
    return out[:m] if mp != m else out


# ---------------------------------------------------------------------------
# XLA glue: space-to-depth, row flattening (all on input-sized tensors only).
# ---------------------------------------------------------------------------
def _space_to_depth(x, s):
    n, h, w, c = x.shape
    hp, wp = _round_up(h, s), _round_up(w, s)
    if (hp, wp) != (h, w):
        x = jnp.pad(x, ((0, 0), (0, hp - h), (0, wp - w), (0, 0)))
    x = x.reshape(n, hp // s, s, wp // s, s, c)
    x = jnp.transpose(x, (0, 1, 3, 2, 4, 5))
    return x.reshape(n, hp // s, wp // s, s * s * c)


def _to_rows(x, wsp):
    n, hs, ws, c = x.shape
    if ws != wsp:
        x = jnp.pad(x, ((0, 0), (0, 0), (0, wsp - ws), (0, 0)))
    return x.reshape(n * hs * wsp, c)


# ---------------------------------------------------------------------------
# Parameters.
# ---------------------------------------------------------------------------
def init_params(key, c, h, w, latent_size):
    """Synthetic PyTorch-layout params: kaiming_normal(fan_in, relu), zero bias,
    identity BatchNorm stats (gamma=1, beta=0, mean=0, var=1)."""
    params = {}
    cin = c
    keys = jax.random.split(key, len(_CONV_CFG) + 1)
    for li, (cout, k, _, _, _) in enumerate(_CONV_CFG):
        fan_in = cin * k * k
        std = (2.0 / fan_in) ** 0.5
        params[f"conv{li + 1}_w"] = std * jax.random.normal(
            keys[li], (cout, cin, k, k), jnp.float32)            # PyTorch OIHW
        params[f"conv{li + 1}_b"] = jnp.zeros((cout,), jnp.float32)
        params[f"conv{li + 1}_bn_gamma"] = jnp.ones((cout,), jnp.float32)
        params[f"conv{li + 1}_bn_beta"] = jnp.zeros((cout,), jnp.float32)
        params[f"conv{li + 1}_bn_mean"] = jnp.zeros((cout,), jnp.float32)
        params[f"conv{li + 1}_bn_var"] = jnp.ones((cout,), jnp.float32)
        cin = cout
    oh, ow = _conv_out_hw(h, w)
    out_size = cin * oh * ow
    std = (2.0 / out_size) ** 0.5
    params["head_w"] = std * jax.random.normal(
        keys[-1], (latent_size, out_size), jnp.float32)          # PyTorch (out, in)
    params["head_b"] = jnp.zeros((latent_size,), jnp.float32)
    return params


def _s2d_weight(w_oihw, s):
    """OIHW conv weight -> GEMM matrix matching the space-to-depth tap layout."""
    cout, cin, kh, kw = w_oihw.shape
    khb, kwb = kh // s, kw // s
    wt = jnp.transpose(w_oihw, (2, 3, 1, 0))                 # (kh, kw, cin, cout)
    wt = wt.reshape(khb, s, kwb, s, cin, cout)
    wt = jnp.transpose(wt, (0, 2, 1, 3, 4, 5))                # (khb, kwb, s, s, cin, cout)
    return wt.reshape(khb * kwb * s * s * cin, cout)


def prepare_params(params, image_shape):
    """One-time prep: fold eval-mode BN (and 1/255 for uint8) into weights,
    re-lay-out conv weights for the fused tap kernels, scatter the head weight
    columns into conv4's padded-NHWC flatten order, cast matmul operands to bf16."""
    c, h, w = image_shape
    geoms = _geometry(c, h, w)
    prepped = {}
    for li, g in enumerate(geoms):
        w_oihw = params[f"conv{li + 1}_w"]
        b = params[f"conv{li + 1}_b"]
        scale = params[f"conv{li + 1}_bn_gamma"] / jnp.sqrt(
            params[f"conv{li + 1}_bn_var"] + _BN_EPS)
        w_folded = w_oihw * scale[:, None, None, None]
        b_folded = (b - params[f"conv{li + 1}_bn_mean"]) * scale \
            + params[f"conv{li + 1}_bn_beta"]
        w_mat = _s2d_weight(w_folded, g["s"])                 # (ntaps*cin_eff, cout) f32
        prepped[f"conv{li + 1}_w"] = w_mat.astype(jnp.bfloat16)
        if li == 0:
            # uint8 input path: fold 1/255 normalization into conv1's weight.
            prepped["conv1_w_u8"] = (w_mat * (1.0 / 255.0)).astype(jnp.bfloat16)
        prepped[f"conv{li + 1}_b"] = b_folded.astype(jnp.float32).reshape(1, -1)

    g4 = geoms[3]
    head_w = params["head_w"]                                 # (latent, 64*OH*OW), (C,H,W) order
    latent = head_w.shape[0]
    oh, ow, hs, wsp, cc = g4["oh"], g4["ow"], g4["hs"], g4["wsp"], g4["cout"]
    w4d = jnp.transpose(head_w.reshape(latent, cc, oh, ow), (2, 3, 1, 0))
    w4d = jnp.pad(w4d, ((g4["roff"], hs - g4["roff"] - oh),
                        (g4["coff"], wsp - g4["coff"] - ow), (0, 0), (0, 0)))
    prepped["head_w"] = w4d.reshape(hs * wsp * cc, latent).astype(jnp.bfloat16)
    prepped["head_b"] = params["head_b"].astype(jnp.float32).reshape(1, -1)
    return prepped


# ---------------------------------------------------------------------------
# Forward.
# ---------------------------------------------------------------------------
def dmlab_encoder_forward(observation, prepped, latent_size):
    """Returns (c, conv) with restored leading dims, like the PyTorch module."""
    nd = observation.ndim
    if nd == 5:
        lead, (T, B) = 2, observation.shape[:2]
    elif nd == 4:
        lead, T, B = 1, 1, observation.shape[0]
    elif nd == 3:
        lead, T, B = 0, 1, 1
    else:
        raise ValueError("observation must have 3, 4, or 5 dims")
    c_in, h_in, w_in = observation.shape[nd - 3:]
    tb = T * B
    g1, g2, g3, g4 = _geometry(c_in, h_in, w_in)

    x = observation.reshape(tb, c_in, h_in, w_in)
    is_u8 = observation.dtype == jnp.uint8
    nhwc = jnp.transpose(x.astype(jnp.bfloat16), (0, 2, 3, 1))   # uint8 exact in bf16
    w1 = prepped["conv1_w_u8"] if is_u8 else prepped["conv1_w"]

    # conv1 (8x8 s4): space-to-depth(4) -> fused 2x2 stride-1 tap GEMM
    t = _to_rows(_space_to_depth(nhwc, 4), g1["wsp"])
    y = _fused_conv(t, w1, prepped["conv1_b"], g1, tb)

    # conv2 (4x4 s2): slice valid map, space-to-depth(2), fused taps
    y = y.reshape(tb, g1["hs"], g1["wsp"], g1["cout"])[:, :g1["oh"], :g1["ow"], :]
    t = _to_rows(_space_to_depth(y, 2), g2["wsp"])
    y = _fused_conv(t, prepped["conv2_w"], prepped["conv2_b"], g2, tb)

    # conv3 (3x3 same + residual): store with explicit zero halo ring
    y = y.reshape(tb, g2["hs"], g2["wsp"], g2["cout"])[:, :g2["oh"], :g2["ow"], :]
    t = jnp.pad(y, ((0, 0), (1, 1), (1, g3["wsp"] - g2["ow"] - 1), (0, 0)))
    t = t.reshape(tb * g3["hs"] * g3["wsp"], g3["cin_eff"])
    y = _fused_conv(t, prepped["conv3_w"], prepped["conv3_b"], g3, tb)

    # conv4: conv3's output is already in the required padded layout -> no glue
    y = _fused_conv(y, prepped["conv4_w"], prepped["conv4_b"], g4, tb)

    # head: consumes conv4's padded-NHWC flatten directly (weights permuted at prep)
    flat = y.reshape(tb, g4["hs"] * g4["wsp"] * g4["cout"])
    c = linear_head(flat, prepped["head_w"], prepped["head_b"],
                    k_quant=g4["wsp"] * g4["cout"])

    # returned conv feature map, NCHW f32 like PyTorch
    conv_nhwc = y.reshape(tb, g4["hs"], g4["wsp"], g4["cout"])[
        :, g4["roff"]:g4["roff"] + g4["oh"], g4["coff"]:g4["coff"] + g4["ow"], :]
    conv = jnp.transpose(conv_nhwc, (0, 3, 1, 2)).astype(jnp.float32)

    # restore_leading_dims
    if lead == 2:
        c = c.reshape(T, B, *c.shape[1:])
        conv = conv.reshape(T, B, *conv.shape[1:])
    elif lead == 0:
        c = c.reshape(c.shape[1:])
        conv = conv.reshape(conv.shape[1:])
    return c, conv


if __name__ == "__main__":
    # Small but valid shapes for this conv stack (needs H, W >= ~20).
    T, B, C, H, W = 2, 2, 3, 36, 36
    latent_size = 32

    key = jax.random.PRNGKey(0)
    k_obs, k_par = jax.random.split(key)
    obs = jax.random.randint(k_obs, (T, B, C, H, W), 0, 256,
                             dtype=jnp.int32).astype(jnp.uint8)
    raw_params = init_params(k_par, C, H, W, latent_size)
    prepped = prepare_params(raw_params, (C, H, W))

    fwd = jax.jit(functools.partial(dmlab_encoder_forward, latent_size=latent_size))
    c, conv = fwd(obs, prepped)
    c, conv = jax.block_until_ready((c, conv))

    oh, ow = _conv_out_hw(H, W)
    assert c.shape == (T, B, latent_size), c.shape
    assert conv.shape == (T, B, 64, oh, ow), conv.shape
    assert jnp.isfinite(c).all() and jnp.isfinite(conv).all()
    print("KERNEL_OK")
</pallas_src>

<mosaic_0001>
module attributes {stable_mosaic.version = 11 : i64} {
  func.func @kernel(%arg0: i32, %arg1: memref<288x48xbf16, #tpu.memory_space<vmem>>, %arg2: memref<192x32xbf16, #tpu.memory_space<vmem>>, %arg3: memref<1x32xf32, #tpu.memory_space<vmem>>, %arg4: memref<288x1xf32, #tpu.memory_space<vmem>>, %arg5: memref<288x32xbf16, #tpu.memory_space<vmem>>) attributes {dimension_semantics = [#tpu.dimension_semantics<parallel>], iteration_bounds = array<i64: 2>, scalar_prefetch = 0 : i64, scratch_operands = 0 : i64, tpu.core_type = #tpu.core_type<tc>, window_params = [{transform_indices = @transform_0, window_bounds = array<i64: 288, 48>}, {pipeline_mode = #tpu.pipeline_mode<synchronous>, transform_indices = @transform_1, window_bounds = array<i64: 192, 32>}, {pipeline_mode = #tpu.pipeline_mode<synchronous>, transform_indices = @transform_2, window_bounds = array<i64: 1, 32>}, {pipeline_mode = #tpu.pipeline_mode<synchronous>, transform_indices = @transform_3, window_bounds = array<i64: 288, 1>}, {transform_indices = @transform_4, window_bounds = array<i64: 288, 32>}]} {
    %c0 = arith.constant 0 : index
    %c0_0 = arith.constant 0 : index
    %0 = vector.load %arg1[%c0, %c0_0] : memref<288x48xbf16, #tpu.memory_space<vmem>>, vector<288x48xbf16>
    %c0_1 = arith.constant 0 : index
    %c0_2 = arith.constant 0 : index
    %1 = vector.load %arg2[%c0_1, %c0_2] : memref<192x32xbf16, #tpu.memory_space<vmem>>, vector<48x32xbf16>
    %cst = arith.constant dense<0.000000e+00> : vector<288x32xf32>
    %2 = tpu.matmul %0, %1, %cst {dimension_numbers = #tpu.dot_dimension_numbers<[1], [0], [0], [1], [0, 0, 1, 1], [], []>} : vector<288x48xbf16>, vector<48x32xbf16>, vector<288x32xf32> -> vector<288x32xf32>
    %3 = vector.extract_strided_slice %0 {offsets = [1, 0], sizes = [287, 48], strides = [1, 1]} : vector<288x48xbf16> to vector<287x48xbf16>
    %4 = vector.extract_strided_slice %0 {offsets = [0, 0], sizes = [1, 48], strides = [1, 1]} : vector<288x48xbf16> to vector<1x48xbf16>
    %5 = tpu.concatenate %3, %4 in 0 : vector<287x48xbf16>, vector<1x48xbf16> -> vector<288x48xbf16>
    %c48 = arith.constant 48 : index
    %c0_3 = arith.constant 0 : index
    %6 = vector.load %arg2[%c48, %c0_3] : memref<192x32xbf16, #tpu.memory_space<vmem>>, vector<48x32xbf16>
    %cst_4 = arith.constant dense<0.000000e+00> : vector<288x32xf32>
    %7 = tpu.matmul %5, %6, %cst_4 {dimension_numbers = #tpu.dot_dimension_numbers<[1], [0], [0], [1], [0, 0, 1, 1], [], []>} : vector<288x48xbf16>, vector<48x32xbf16>, vector<288x32xf32> -> vector<288x32xf32>
    %8 = arith.addf %2, %7 : vector<288x32xf32>
    %9 = vector.extract_strided_slice %0 {offsets = [16, 0], sizes = [272, 48], strides = [1, 1]} : vector<288x48xbf16> to vector<272x48xbf16>
    %10 = vector.extract_strided_slice %0 {offsets = [0, 0], sizes = [16, 48], strides = [1, 1]} : vector<288x48xbf16> to vector<16x48xbf16>
    %11 = tpu.concatenate %9, %10 in 0 : vector<272x48xbf16>, vector<16x48xbf16> -> vector<288x48xbf16>
    %c96 = arith.constant 96 : index
    %c0_5 = arith.constant 0 : index
    %12 = vector.load %arg2[%c96, %c0_5] : memref<192x32xbf16, #tpu.memory_space<vmem>>, vector<48x32xbf16>
    %cst_6 = arith.constant dense<0.000000e+00> : vector<288x32xf32>
    %13 = tpu.matmul %11, %12, %cst_6 {dimension_numbers = #tpu.dot_dimension_numbers<[1], [0], [0], [1], [0, 0, 1, 1], [], []>} : vector<288x48xbf16>, vector<48x32xbf16>, vector<288x32xf32> -> vector<288x32xf32>
    %14 = arith.addf %8, %13 : vector<288x32xf32>
    %15 = vector.extract_strided_slice %0 {offsets = [17, 0], sizes = [271, 48], strides = [1, 1]} : vector<288x48xbf16> to vector<271x48xbf16>
    %16 = vector.extract_strided_slice %0 {offsets = [0, 0], sizes = [17, 48], strides = [1, 1]} : vector<288x48xbf16> to vector<17x48xbf16>
    %17 = tpu.concatenate %15, %16 in 0 : vector<271x48xbf16>, vector<17x48xbf16> -> vector<288x48xbf16>
    %c144 = arith.constant 144 : index
    %c0_7 = arith.constant 0 : index
    %18 = vector.load %arg2[%c144, %c0_7] : memref<192x32xbf16, #tpu.memory_space<vmem>>, vector<48x32xbf16>
    %cst_8 = arith.constant dense<0.000000e+00> : vector<288x32xf32>
    %19 = tpu.matmul %17, %18, %cst_8 {dimension_numbers = #tpu.dot_dimension_numbers<[1], [0], [0], [1], [0, 0, 1, 1], [], []>} : vector<288x48xbf16>, vector<48x32xbf16>, vector<288x32xf32> -> vector<288x32xf32>
    %20 = arith.addf %14, %19 : vector<288x32xf32>
    %c0_9 = arith.constant 0 : index
    %c0_10 = arith.constant 0 : index
    %21 = vector.load %arg3[%c0_9, %c0_10] : memref<1x32xf32, #tpu.memory_space<vmem>>, vector<1x32xf32>
    %22 = vector.broadcast %21 : vector<1x32xf32> to vector<288x32xf32>
    %23 = arith.addf %20, %22 : vector<288x32xf32>
    %cst_11 = arith.constant 0.000000e+00 : f32
    %24 = vector.broadcast %cst_11 : f32 to vector<288x32xf32>
    %25 = arith.maximumf %23, %24 : vector<288x32xf32>
    %c0_12 = arith.constant 0 : index
    %c0_13 = arith.constant 0 : index
    %26 = vector.load %arg4[%c0_12, %c0_13] : memref<288x1xf32, #tpu.memory_space<vmem>>, vector<288x1xf32>
    %cst_14 = arith.constant 5.000000e-01 : f32
    %27 = vector.broadcast %cst_14 : f32 to vector<288x1xf32>
    %28 = arith.cmpf ogt, %26, %27 : vector<288x1xf32>
    %cst_15 = arith.constant 0.000000e+00 : f32
    %29 = vector.shape_cast %28 : vector<288x1xi1> to vector<288x1xi1>
    %30 = vector.broadcast %29 : vector<288x1xi1> to vector<288x32xi1>
    %31 = vector.broadcast %cst_15 : f32 to vector<288x32xf32>
    %32 = arith.select %30, %25, %31 : vector<288x32xi1>, vector<288x32xf32>
    %33 = arith.truncf %32 : vector<288x32xf32> to vector<288x32xbf16>
    %c0_16 = arith.constant 0 : index
    %c0_17 = arith.constant 0 : index
    %34 = vector.load %arg5[%c0_16, %c0_17] : memref<288x32xbf16, #tpu.memory_space<vmem>>, vector<288x32xbf16>
    tpu.vector_store %arg5[%c0_16, %c0_17], %33 {strides = array<i32>} : memref<288x32xbf16, #tpu.memory_space<vmem>>, vector<288x32xbf16>,
    return
  }
  func.func @transform_0(%arg0: i32) -> (i32, i32) {
    %c0_i32 = arith.constant 0 : i32
    %c0_i32_0 = arith.constant 0 : i32
    return %arg0, %c0_i32 : i32, i32
  }
  func.func @transform_1(%arg0: i32) -> (i32, i32) {
    %c0_i32 = arith.constant 0 : i32
    %c0_i32_0 = arith.constant 0 : i32
    %c0_i32_1 = arith.constant 0 : i32
    return %c0_i32, %c0_i32_0 : i32, i32
  }
  func.func @transform_2(%arg0: i32) -> (i32, i32) {
    %c0_i32 = arith.constant 0 : i32
    %c0_i32_0 = arith.constant 0 : i32
    %c0_i32_1 = arith.constant 0 : i32
    return %c0_i32, %c0_i32_0 : i32, i32
  }
  func.func @transform_3(%arg0: i32) -> (i32, i32) {
    %c0_i32 = arith.constant 0 : i32
    %c0_i32_0 = arith.constant 0 : i32
    %c0_i32_1 = arith.constant 0 : i32
    return %c0_i32, %c0_i32_0 : i32, i32
  }
  func.func @transform_4(%arg0: i32) -> (i32, i32) {
    %c0_i32 = arith.constant 0 : i32
    %c0_i32_0 = arith.constant 0 : i32
    return %arg0, %c0_i32 : i32, i32
  }
}

module attributes {stable_mosaic.version = 11 : i64} {
  func.func @kernel(%arg0: i32, %arg1: memref<64x128xbf16, #tpu.memory_space<vmem>>, %arg2: memref<512x64xbf16, #tpu.memory_space<vmem>>, %arg3: memref<1x64xf32, #tpu.memory_space<vmem>>, %arg4: memref<64x1xf32, #tpu.memory_space<vmem>>, %arg5: memref<64x64xbf16, #tpu.memory_space<vmem>>) attributes {dimension_semantics = [#tpu.dimension_semantics<parallel>], iteration_bounds = array<i64: 2>, scalar_prefetch = 0 : i64, scratch_operands = 0 : i64, tpu.core_type = #tpu.core_type<tc>, window_params = [{transform_indices = @transform_0, window_bounds = array<i64: 64, 128>}, {pipeline_mode = #tpu.pipeline_mode<synchronous>, transform_indices = @transform_1, window_bounds = array<i64: 512, 64>}, {pipeline_mode = #tpu.pipeline_mode<synchronous>, transform_indices = @transform_2, window_bounds = array<i64: 1, 64>}, {pipeline_mode = #tpu.pipeline_mode<synchronous>, transform_indices = @transform_3, window_bounds = array<i64: 64, 1>}, {transform_indices = @transform_4, window_bounds = array<i64: 64, 64>}]} {
    %c0 = arith.constant 0 : index
    %c0_0 = arith.constant 0 : index
    %0 = vector.load %arg1[%c0, %c0_0] : memref<64x128xbf16, #tpu.memory_space<vmem>>, vector<64x128xbf16>
    %c0_1 = arith.constant 0 : index
    %c0_2 = arith.constant 0 : index
    %1 = vector.load %arg2[%c0_1, %c0_2] : memref<512x64xbf16, #tpu.memory_space<vmem>>, vector<128x64xbf16>
    %cst = arith.constant dense<0.000000e+00> : vector<64x64xf32>
    %2 = tpu.matmul %0, %1, %cst {dimension_numbers = #tpu.dot_dimension_numbers<[1], [0], [0], [1], [0, 0, 1, 1], [], []>} : vector<64x128xbf16>, vector<128x64xbf16>, vector<64x64xf32> -> vector<64x64xf32>
    %3 = vector.extract_strided_slice %0 {offsets = [1, 0], sizes = [63, 128], strides = [1, 1]} : vector<64x128xbf16> to vector<63x128xbf16>
    %4 = vector.extract_strided_slice %0 {offsets = [0, 0], sizes = [1, 128], strides = [1, 1]} : vector<64x128xbf16> to vector<1x128xbf16>
    %5 = tpu.concatenate %3, %4 in 0 : vector<63x128xbf16>, vector<1x128xbf16> -> vector<64x128xbf16>
    %c128 = arith.constant 128 : index
    %c0_3 = arith.constant 0 : index
    %6 = vector.load %arg2[%c128, %c0_3] : memref<512x64xbf16, #tpu.memory_space<vmem>>, vector<128x64xbf16>
    %cst_4 = arith.constant dense<0.000000e+00> : vector<64x64xf32>
    %7 = tpu.matmul %5, %6, %cst_4 {dimension_numbers = #tpu.dot_dimension_numbers<[1], [0], [0], [1], [0, 0, 1, 1], [], []>} : vector<64x128xbf16>, vector<128x64xbf16>, vector<64x64xf32> -> vector<64x64xf32>
    %8 = arith.addf %2, %7 : vector<64x64xf32>
    %9 = vector.extract_strided_slice %0 {offsets = [8, 0], sizes = [56, 128], strides = [1, 1]} : vector<64x128xbf16> to vector<56x128xbf16>
    %10 = vector.extract_strided_slice %0 {offsets = [0, 0], sizes = [8, 128], strides = [1, 1]} : vector<64x128xbf16> to vector<8x128xbf16>
    %11 = tpu.concatenate %9, %10 in 0 : vector<56x128xbf16>, vector<8x128xbf16> -> vector<64x128xbf16>
    %c256 = arith.constant 256 : index
    %c0_5 = arith.constant 0 : index
    %12 = vector.load %arg2[%c256, %c0_5] : memref<512x64xbf16, #tpu.memory_space<vmem>>, vector<128x64xbf16>
    %cst_6 = arith.constant dense<0.000000e+00> : vector<64x64xf32>
    %13 = tpu.matmul %11, %12, %cst_6 {dimension_numbers = #tpu.dot_dimension_numbers<[1], [0], [0], [1], [0, 0, 1, 1], [], []>} : vector<64x128xbf16>, vector<128x64xbf16>, vector<64x64xf32> -> vector<64x64xf32>
    %14 = arith.addf %8, %13 : vector<64x64xf32>
    %15 = vector.extract_strided_slice %0 {offsets = [9, 0], sizes = [55, 128], strides = [1, 1]} : vector<64x128xbf16> to vector<55x128xbf16>
    %16 = vector.extract_strided_slice %0 {offsets = [0, 0], sizes = [9, 128], strides = [1, 1]} : vector<64x128xbf16> to vector<9x128xbf16>
    %17 = tpu.concatenate %15, %16 in 0 : vector<55x128xbf16>, vector<9x128xbf16> -> vector<64x128xbf16>
    %c384 = arith.constant 384 : index
    %c0_7 = arith.constant 0 : index
    %18 = vector.load %arg2[%c384, %c0_7] : memref<512x64xbf16, #tpu.memory_space<vmem>>, vector<128x64xbf16>
    %cst_8 = arith.constant dense<0.000000e+00> : vector<64x64xf32>
    %19 = tpu.matmul %17, %18, %cst_8 {dimension_numbers = #tpu.dot_dimension_numbers<[1], [0], [0], [1], [0, 0, 1, 1], [], []>} : vector<64x128xbf16>, vector<128x64xbf16>, vector<64x64xf32> -> vector<64x64xf32>
    %20 = arith.addf %14, %19 : vector<64x64xf32>
    %c0_9 = arith.constant 0 : index
    %c0_10 = arith.constant 0 : index
    %21 = vector.load %arg3[%c0_9, %c0_10] : memref<1x64xf32, #tpu.memory_space<vmem>>, vector<1x64xf32>
    %22 = vector.broadcast %21 : vector<1x64xf32> to vector<64x64xf32>
    %23 = arith.addf %20, %22 : vector<64x64xf32>
    %cst_11 = arith.constant 0.000000e+00 : f32
    %24 = vector.broadcast %cst_11 : f32 to vector<64x64xf32>
    %25 = arith.maximumf %23, %24 : vector<64x64xf32>
    %c0_12 = arith.constant 0 : index
    %c0_13 = arith.constant 0 : index
    %26 = vector.load %arg4[%c0_12, %c0_13] : memref<64x1xf32, #tpu.memory_space<vmem>>, vector<64x1xf32>
    %cst_14 = arith.constant 5.000000e-01 : f32
    %27 = vector.broadcast %cst_14 : f32 to vector<64x1xf32>
    %28 = arith.cmpf ogt, %26, %27 : vector<64x1xf32>
    %cst_15 = arith.constant 0.000000e+00 : f32
    %29 = vector.shape_cast %28 : vector<64x1xi1> to vector<64x1xi1>
    %30 = vector.broadcast %29 : vector<64x1xi1> to vector<64x64xi1>
    %31 = vector.broadcast %cst_15 : f32 to vector<64x64xf32>
    %32 = arith.select %30, %25, %31 : vector<64x64xi1>, vector<64x64xf32>
    %33 = arith.truncf %32 : vector<64x64xf32> to vector<64x64xbf16>
    %c0_16 = arith.constant 0 : index
    %c0_17 = arith.constant 0 : index
    %34 = vector.load %arg5[%c0_16, %c0_17] : memref<64x64xbf16, #tpu.memory_space<vmem>>, vector<64x64xbf16>
    tpu.vector_store %arg5[%c0_16, %c0_17], %33 {strides = array<i32>} : memref<64x64xbf16, #tpu.memory_space<vmem>>, vector<64x64xbf16>,
    return
  }
  func.func @transform_0(%arg0: i32) -> (i32, i32) {
    %c0_i32 = arith.constant 0 : i32
    %c0_i32_0 = arith.constant 0 : i32
    return %arg0, %c0_i32 : i32, i32
  }
  func.func @transform_1(%arg0: i32) -> (i32, i32) {
    %c0_i32 = arith.constant 0 : i32
    %c0_i32_0 = arith.constant 0 : i32
    %c0_i32_1 = arith.constant 0 : i32
    return %c0_i32, %c0_i32_0 : i32, i32
  }
  func.func @transform_2(%arg0: i32) -> (i32, i32) {
    %c0_i32 = arith.constant 0 : i32
    %c0_i32_0 = arith.constant 0 : i32
    %c0_i32_1 = arith.constant 0 : i32
    return %c0_i32, %c0_i32_0 : i32, i32
  }
  func.func @transform_3(%arg0: i32) -> (i32, i32) {
    %c0_i32 = arith.constant 0 : i32
    %c0_i32_0 = arith.constant 0 : i32
    %c0_i32_1 = arith.constant 0 : i32
    return %c0_i32, %c0_i32_0 : i32, i32
  }
  func.func @transform_4(%arg0: i32) -> (i32, i32) {
    %c0_i32 = arith.constant 0 : i32
    %c0_i32_0 = arith.constant 0 : i32
    return %arg0, %c0_i32 : i32, i32
  }
}

module attributes {stable_mosaic.version = 11 : i64} {
  func.func @_head_single_kernel(%arg0: i32, %arg1: memref<8x2560xbf16, #tpu.memory_space<vmem>>, %arg2: memref<2560x32xbf16, #tpu.memory_space<vmem>>, %arg3: memref<1x32xf32, #tpu.memory_space<vmem>>, %arg4: memref<8x32xf32, #tpu.memory_space<vmem>>) attributes {dimension_semantics = [#tpu.dimension_semantics<parallel>], iteration_bounds = array<i64: 1>, scalar_prefetch = 0 : i64, scratch_operands = 0 : i64, tpu.core_type = #tpu.core_type<tc>, window_params = [{transform_indices = @transform_0, window_bounds = array<i64: 8, 2560>}, {pipeline_mode = #tpu.pipeline_mode<synchronous>, transform_indices = @transform_1, window_bounds = array<i64: 2560, 32>}, {pipeline_mode = #tpu.pipeline_mode<synchronous>, transform_indices = @transform_2, window_bounds = array<i64: 1, 32>}, {transform_indices = @transform_3, window_bounds = array<i64: 8, 32>}]} {
    %c0 = arith.constant 0 : index
    %c0_0 = arith.constant 0 : index
    %0 = vector.load %arg1[%c0, %c0_0] : memref<8x2560xbf16, #tpu.memory_space<vmem>>, vector<8x2560xbf16>
    %c0_1 = arith.constant 0 : index
    %c0_2 = arith.constant 0 : index
    %1 = vector.load %arg2[%c0_1, %c0_2] : memref<2560x32xbf16, #tpu.memory_space<vmem>>, vector<2560x32xbf16>
    %cst = arith.constant dense<0.000000e+00> : vector<8x32xf32>
    %2 = tpu.matmul %0, %1, %cst {dimension_numbers = #tpu.dot_dimension_numbers<[1], [0], [0], [1], [0, 0, 1, 1], [], []>} : vector<8x2560xbf16>, vector<2560x32xbf16>, vector<8x32xf32> -> vector<8x32xf32>
    %c0_3 = arith.constant 0 : index
    %c0_4 = arith.constant 0 : index
    %3 = vector.load %arg3[%c0_3, %c0_4] : memref<1x32xf32, #tpu.memory_space<vmem>>, vector<1x32xf32>
    %4 = vector.broadcast %3 : vector<1x32xf32> to vector<8x32xf32>
    %5 = arith.addf %2, %4 : vector<8x32xf32>
    %c0_5 = arith.constant 0 : index
    %c0_6 = arith.constant 0 : index
    %6 = vector.load %arg4[%c0_5, %c0_6] : memref<8x32xf32, #tpu.memory_space<vmem>>, vector<8x32xf32>
    tpu.vector_store %arg4[%c0_5, %c0_6], %5 {strides = array<i32>} : memref<8x32xf32, #tpu.memory_space<vmem>>, vector<8x32xf32>,
    return
  }
  func.func @transform_0(%arg0: i32) -> (i32, i32) {
    %c0_i32 = arith.constant 0 : i32
    %c0_i32_0 = arith.constant 0 : i32
    return %arg0, %c0_i32 : i32, i32
  }
  func.func @transform_1(%arg0: i32) -> (i32, i32) {
    %c0_i32 = arith.constant 0 : i32
    %c0_i32_0 = arith.constant 0 : i32
    %c0_i32_1 = arith.constant 0 : i32
    return %c0_i32, %c0_i32_0 : i32, i32
  }
  func.func @transform_2(%arg0: i32) -> (i32, i32) {
    %c0_i32 = arith.constant 0 : i32
    %c0_i32_0 = arith.constant 0 : i32
    %c0_i32_1 = arith.constant 0 : i32
    return %c0_i32, %c0_i32_0 : i32, i32
  }
  func.func @transform_3(%arg0: i32) -> (i32, i32) {
    %c0_i32 = arith.constant 0 : i32
    %c0_i32_0 = arith.constant 0 : i32
    return %arg0, %c0_i32 : i32, i32
  }
}

module attributes {stable_mosaic.version = 11 : i64} {
  func.func @kernel(%arg0: i32, %arg1: memref<80x64xbf16, #tpu.memory_space<vmem>>, %arg2: memref<576x64xbf16, #tpu.memory_space<vmem>>, %arg3: memref<1x64xf32, #tpu.memory_space<vmem>>, %arg4: memref<80x1xf32, #tpu.memory_space<vmem>>, %arg5: memref<80x64xbf16, #tpu.memory_space<vmem>>) attributes {dimension_semantics = [#tpu.dimension_semantics<parallel>], iteration_bounds = array<i64: 2>, scalar_prefetch = 0 : i64, scratch_operands = 0 : i64, tpu.core_type = #tpu.core_type<tc>, window_params = [{transform_indices = @transform_0, window_bounds = array<i64: 80, 64>}, {pipeline_mode = #tpu.pipeline_mode<synchronous>, transform_indices = @transform_1, window_bounds = array<i64: 576, 64>}, {pipeline_mode = #tpu.pipeline_mode<synchronous>, transform_indices = @transform_2, window_bounds = array<i64: 1, 64>}, {pipeline_mode = #tpu.pipeline_mode<synchronous>, transform_indices = @transform_3, window_bounds = array<i64: 80, 1>}, {transform_indices = @transform_4, window_bounds = array<i64: 80, 64>}]} {
    %c0 = arith.constant 0 : index
    %c0_0 = arith.constant 0 : index
    %0 = vector.load %arg1[%c0, %c0_0] : memref<80x64xbf16, #tpu.memory_space<vmem>>, vector<80x64xbf16>
    %1 = vector.extract_strided_slice %0 {offsets = [71, 0], sizes = [9, 64], strides = [1, 1]} : vector<80x64xbf16> to vector<9x64xbf16>
    %2 = vector.extract_strided_slice %0 {offsets = [0, 0], sizes = [71, 64], strides = [1, 1]} : vector<80x64xbf16> to vector<71x64xbf16>
    %3 = tpu.concatenate %1, %2 in 0 : vector<9x64xbf16>, vector<71x64xbf16> -> vector<80x64xbf16>
    %c0_1 = arith.constant 0 : index
    %c0_2 = arith.constant 0 : index
    %4 = vector.load %arg2[%c0_1, %c0_2] : memref<576x64xbf16, #tpu.memory_space<vmem>>, vector<64x64xbf16>
    %cst = arith.constant dense<0.000000e+00> : vector<80x64xf32>
    %5 = tpu.matmul %3, %4, %cst {dimension_numbers = #tpu.dot_dimension_numbers<[1], [0], [0], [1], [0, 0, 1, 1], [], []>} : vector<80x64xbf16>, vector<64x64xbf16>, vector<80x64xf32> -> vector<80x64xf32>
    %6 = vector.extract_strided_slice %0 {offsets = [72, 0], sizes = [8, 64], strides = [1, 1]} : vector<80x64xbf16> to vector<8x64xbf16>
    %7 = vector.extract_strided_slice %0 {offsets = [0, 0], sizes = [72, 64], strides = [1, 1]} : vector<80x64xbf16> to vector<72x64xbf16>
    %8 = tpu.concatenate %6, %7 in 0 : vector<8x64xbf16>, vector<72x64xbf16> -> vector<80x64xbf16>
    %c64 = arith.constant 64 : index
    %c0_3 = arith.constant 0 : index
    %9 = vector.load %arg2[%c64, %c0_3] : memref<576x64xbf16, #tpu.memory_space<vmem>>, vector<64x64xbf16>
    %cst_4 = arith.constant dense<0.000000e+00> : vector<80x64xf32>
    %10 = tpu.matmul %8, %9, %cst_4 {dimension_numbers = #tpu.dot_dimension_numbers<[1], [0], [0], [1], [0, 0, 1, 1], [], []>} : vector<80x64xbf16>, vector<64x64xbf16>, vector<80x64xf32> -> vector<80x64xf32>
    %11 = arith.addf %5, %10 : vector<80x64xf32>
    %12 = vector.extract_strided_slice %0 {offsets = [73, 0], sizes = [7, 64], strides = [1, 1]} : vector<80x64xbf16> to vector<7x64xbf16>
    %13 = vector.extract_strided_slice %0 {offsets = [0, 0], sizes = [73, 64], strides = [1, 1]} : vector<80x64xbf16> to vector<73x64xbf16>
    %14 = tpu.concatenate %12, %13 in 0 : vector<7x64xbf16>, vector<73x64xbf16> -> vector<80x64xbf16>
    %c128 = arith.constant 128 : index
    %c0_5 = arith.constant 0 : index
    %15 = vector.load %arg2[%c128, %c0_5] : memref<576x64xbf16, #tpu.memory_space<vmem>>, vector<64x64xbf16>
    %cst_6 = arith.constant dense<0.000000e+00> : vector<80x64xf32>
    %16 = tpu.matmul %14, %15, %cst_6 {dimension_numbers = #tpu.dot_dimension_numbers<[1], [0], [0], [1], [0, 0, 1, 1], [], []>} : vector<80x64xbf16>, vector<64x64xbf16>, vector<80x64xf32> -> vector<80x64xf32>
    %17 = arith.addf %11, %16 : vector<80x64xf32>
    %18 = vector.extract_strided_slice %0 {offsets = [79, 0], sizes = [1, 64], strides = [1, 1]} : vector<80x64xbf16> to vector<1x64xbf16>
    %19 = vector.extract_strided_slice %0 {offsets = [0, 0], sizes = [79, 64], strides = [1, 1]} : vector<80x64xbf16> to vector<79x64xbf16>
    %20 = tpu.concatenate %18, %19 in 0 : vector<1x64xbf16>, vector<79x64xbf16> -> vector<80x64xbf16>
    %c192 = arith.constant 192 : index
    %c0_7 = arith.constant 0 : index
    %21 = vector.load %arg2[%c192, %c0_7] : memref<576x64xbf16, #tpu.memory_space<vmem>>, vector<64x64xbf16>
    %cst_8 = arith.constant dense<0.000000e+00> : vector<80x64xf32>
    %22 = tpu.matmul %20, %21, %cst_8 {dimension_numbers = #tpu.dot_dimension_numbers<[1], [0], [0], [1], [0, 0, 1, 1], [], []>} : vector<80x64xbf16>, vector<64x64xbf16>, vector<80x64xf32> -> vector<80x64xf32>
    %23 = arith.addf %17, %22 : vector<80x64xf32>
    %c256 = arith.constant 256 : index
    %c0_9 = arith.constant 0 : index
    %24 = vector.load %arg2[%c256, %c0_9] : memref<576x64xbf16, #tpu.memory_space<vmem>>, vector<64x64xbf16>
    %cst_10 = arith.constant dense<0.000000e+00> : vector<80x64xf32>
    %25 = tpu.matmul %0, %24, %cst_10 {dimension_numbers = #tpu.dot_dimension_numbers<[1], [0], [0], [1], [0, 0, 1, 1], [], []>} : vector<80x64xbf16>, vector<64x64xbf16>, vector<80x64xf32> -> vector<80x64xf32>
    %26 = arith.addf %23, %25 : vector<80x64xf32>
    %27 = vector.extract_strided_slice %0 {offsets = [1, 0], sizes = [79, 64], strides = [1, 1]} : vector<80x64xbf16> to vector<79x64xbf16>
    %28 = vector.extract_strided_slice %0 {offsets = [0, 0], sizes = [1, 64], strides = [1, 1]} : vector<80x64xbf16> to vector<1x64xbf16>
    %29 = tpu.concatenate %27, %28 in 0 : vector<79x64xbf16>, vector<1x64xbf16> -> vector<80x64xbf16>
    %c320 = arith.constant 320 : index
    %c0_11 = arith.constant 0 : index
    %30 = vector.load %arg2[%c320, %c0_11] : memref<576x64xbf16, #tpu.memory_space<vmem>>, vector<64x64xbf16>
    %cst_12 = arith.constant dense<0.000000e+00> : vector<80x64xf32>
    %31 = tpu.matmul %29, %30, %cst_12 {dimension_numbers = #tpu.dot_dimension_numbers<[1], [0], [0], [1], [0, 0, 1, 1], [], []>} : vector<80x64xbf16>, vector<64x64xbf16>, vector<80x64xf32> -> vector<80x64xf32>
    %32 = arith.addf %26, %31 : vector<80x64xf32>
    %33 = vector.extract_strided_slice %0 {offsets = [7, 0], sizes = [73, 64], strides = [1, 1]} : vector<80x64xbf16> to vector<73x64xbf16>
    %34 = vector.extract_strided_slice %0 {offsets = [0, 0], sizes = [7, 64], strides = [1, 1]} : vector<80x64xbf16> to vector<7x64xbf16>
    %35 = tpu.concatenate %33, %34 in 0 : vector<73x64xbf16>, vector<7x64xbf16> -> vector<80x64xbf16>
    %c384 = arith.constant 384 : index
    %c0_13 = arith.constant 0 : index
    %36 = vector.load %arg2[%c384, %c0_13] : memref<576x64xbf16, #tpu.memory_space<vmem>>, vector<64x64xbf16>
    %cst_14 = arith.constant dense<0.000000e+00> : vector<80x64xf32>
    %37 = tpu.matmul %35, %36, %cst_14 {dimension_numbers = #tpu.dot_dimension_numbers<[1], [0], [0], [1], [0, 0, 1, 1], [], []>} : vector<80x64xbf16>, vector<64x64xbf16>, vector<80x64xf32> -> vector<80x64xf32>
    %38 = arith.addf %32, %37 : vector<80x64xf32>
    %39 = vector.extract_strided_slice %0 {offsets = [8, 0], sizes = [72, 64], strides = [1, 1]} : vector<80x64xbf16> to vector<72x64xbf16>
    %40 = vector.extract_strided_slice %0 {offsets = [0, 0], sizes = [8, 64], strides = [1, 1]} : vector<80x64xbf16> to vector<8x64xbf16>
    %41 = tpu.concatenate %39, %40 in 0 : vector<72x64xbf16>, vector<8x64xbf16> -> vector<80x64xbf16>
    %c448 = arith.constant 448 : index
    %c0_15 = arith.constant 0 : index
    %42 = vector.load %arg2[%c448, %c0_15] : memref<576x64xbf16, #tpu.memory_space<vmem>>, vector<64x64xbf16>
    %cst_16 = arith.constant dense<0.000000e+00> : vector<80x64xf32>
    %43 = tpu.matmul %41, %42, %cst_16 {dimension_numbers = #tpu.dot_dimension_numbers<[1], [0], [0], [1], [0, 0, 1, 1], [], []>} : vector<80x64xbf16>, vector<64x64xbf16>, vector<80x64xf32> -> vector<80x64xf32>
    %44 = arith.addf %38, %43 : vector<80x64xf32>
    %45 = vector.extract_strided_slice %0 {offsets = [9, 0], sizes = [71, 64], strides = [1, 1]} : vector<80x64xbf16> to vector<71x64xbf16>
    %46 = vector.extract_strided_slice %0 {offsets = [0, 0], sizes = [9, 64], strides = [1, 1]} : vector<80x64xbf16> to vector<9x64xbf16>
    %47 = tpu.concatenate %45, %46 in 0 : vector<71x64xbf16>, vector<9x64xbf16> -> vector<80x64xbf16>
    %c512 = arith.constant 512 : index
    %c0_17 = arith.constant 0 : index
    %48 = vector.load %arg2[%c512, %c0_17] : memref<576x64xbf16, #tpu.memory_space<vmem>>, vector<64x64xbf16>
    %cst_18 = arith.constant dense<0.000000e+00> : vector<80x64xf32>
    %49 = tpu.matmul %47, %48, %cst_18 {dimension_numbers = #tpu.dot_dimension_numbers<[1], [0], [0], [1], [0, 0, 1, 1], [], []>} : vector<80x64xbf16>, vector<64x64xbf16>, vector<80x64xf32> -> vector<80x64xf32>
    %50 = arith.addf %44, %49 : vector<80x64xf32>
    %c0_19 = arith.constant 0 : index
    %c0_20 = arith.constant 0 : index
    %51 = vector.load %arg3[%c0_19, %c0_20] : memref<1x64xf32, #tpu.memory_space<vmem>>, vector<1x64xf32>
    %52 = vector.broadcast %51 : vector<1x64xf32> to vector<80x64xf32>
    %53 = arith.addf %50, %52 : vector<80x64xf32>
    %54 = arith.extf %0 : vector<80x64xbf16> to vector<80x64xf32>
    %55 = arith.addf %53, %54 : vector<80x64xf32>
    %cst_21 = arith.constant 0.000000e+00 : f32
    %56 = vector.broadcast %cst_21 : f32 to vector<80x64xf32>
    %57 = arith.maximumf %55, %56 : vector<80x64xf32>
    %c0_22 = arith.constant 0 : index
    %c0_23 = arith.constant 0 : index
    %58 = vector.load %arg4[%c0_22, %c0_23] : memref<80x1xf32, #tpu.memory_space<vmem>>, vector<80x1xf32>
    %cst_24 = arith.constant 5.000000e-01 : f32
    %59 = vector.broadcast %cst_24 : f32 to vector<80x1xf32>
    %60 = arith.cmpf ogt, %58, %59 : vector<80x1xf32>
    %cst_25 = arith.constant 0.000000e+00 : f32
    %61 = vector.shape_cast %60 : vector<80x1xi1> to vector<80x1xi1>
    %62 = vector.broadcast %61 : vector<80x1xi1> to vector<80x64xi1>
    %63 = vector.broadcast %cst_25 : f32 to vector<80x64xf32>
    %64 = arith.select %62, %57, %63 : vector<80x64xi1>, vector<80x64xf32>
    %65 = arith.truncf %64 : vector<80x64xf32> to vector<80x64xbf16>
    %c0_26 = arith.constant 0 : index
    %c0_27 = arith.constant 0 : index
    %66 = vector.load %arg5[%c0_26, %c0_27] : memref<80x64xbf16, #tpu.memory_space<vmem>>, vector<80x64xbf16>
    tpu.vector_store %arg5[%c0_26, %c0_27], %65 {strides = array<i32>} : memref<80x64xbf16, #tpu.memory_space<vmem>>, vector<80x64xbf16>,
    return
  }
  func.func @transform_0(%arg0: i32) -> (i32, i32) {
    %c0_i32 = arith.constant 0 : i32
    %c0_i32_0 = arith.constant 0 : i32
    return %arg0, %c0_i32 : i32, i32
  }
  func.func @transform_1(%arg0: i32) -> (i32, i32) {
    %c0_i32 = arith.constant 0 : i32
    %c0_i32_0 = arith.constant 0 : i32
    %c0_i32_1 = arith.constant 0 : i32
    return %c0_i32, %c0_i32_0 : i32, i32
  }
  func.func @transform_2(%arg0: i32) -> (i32, i32) {
    %c0_i32 = arith.constant 0 : i32
    %c0_i32_0 = arith.constant 0 : i32
    %c0_i32_1 = arith.constant 0 : i32
    return %c0_i32, %c0_i32_0 : i32, i32
  }
  func.func @transform_3(%arg0: i32) -> (i32, i32) {
    %c0_i32 = arith.constant 0 : i32
    %c0_i32_0 = arith.constant 0 : i32
    %c0_i32_1 = arith.constant 0 : i32
    return %c0_i32, %c0_i32_0 : i32, i32
  }
  func.func @transform_4(%arg0: i32) -> (i32, i32) {
    %c0_i32 = arith.constant 0 : i32
    %c0_i32_0 = arith.constant 0 : i32
    return %arg0, %c0_i32 : i32, i32
  }
}

</mosaic_0001>

<bundles_post_ra>
// kernel: dmlab_encoder_forward.5
= control target key start
LH: loop header
LB: loop body
LE: loop exit
PB: predicated region body
PF: predicated region fallthrough
CT: control target
= control target key end

     0   :  { %s2690_s15 = smov 0   ;;  %s3420_s0 = inlined_call_operand.vmem [shape: bf16[576,48], index: 0, kind: input, shape index: {}]   ;;  %s3421_s1 = inlined_call_operand.vmem [shape: bf16[192,32], index: 1, kind: input, shape index: {}]   ;;  %s3422_s2 = inlined_call_operand.vmem [shape: f32[1,32], index: 2, kind: input, shape index: {}]   ;;  %s3423_s3 = inlined_call_operand.vmem [shape: f32[288,1], index: 3, kind: input, shape index: {}]   ;;  %s3424_s4 = inlined_call_operand.vmem [shape: bf16[576,32], index: 4, kind: output, shape index: {}]  }
   0x1 LB: > { %s2067_s16 = sadd.s32 4294967295, %s2662_s15   ;;  %p2071_p0 = scmp.ge.s32.totalorder %s2662_s15, 1  ;;  %s2662_s15 = sphi %s2690_s15, %s14_s15  }
   0x2   : > { %p163_p1 = scmp.lt.s32.totalorder %s2662_s15, 3 }
   0x4   : > { %p164_p2 = pnand %p2071_p0, %p163_p1 }
   0x5   : > { %v2624_v0 = vld [vmem:[%s3421_s1 + $0x30] sm:$0xff] (!%p164_p2)   ;;  %s189_s19 = smul.u32 (!%p164_p2), 36, %s2067_s16  ;;  %v2625_v1 = vld [vmem:[%s3421_s1 + $0x18] sm:$0xff] (!%p164_p2)   ;;  %v2627_v3 = vld [vmem:[%s3421_s1 + $0x20] sm:$0xff] (!%p164_p2)   ;;  %vm512_vm0 = vcmask (!%p164_p2), 392192   ;;  %v2664_v6 = vmov (!%p164_p2), 0  }
   0x6   : > { %167 = sbr.rel (%p164_p2) target bundleno = 389 (0x185), region = 36  ;;  %2421 = vmatprep.subr.bf16.mxu0 (!%p164_p2), %v2624_v0  ;;  %v2626_v2 = vld [vmem:[%s3421_s1 + $0x38] sm:$0xff] (!%p164_p2)   ;;  %2337 = vmatprep.subr.bf16.mxu1 (!%p164_p2), %v2625_v1  ;;  %v2628_v4 = vld [vmem:[%s3421_s1 + $0x40] sm:$0xff] (!%p164_p2)   ;;  %v2629_v5 = vld [vmem:[%s3421_s1 + $0x28] sm:$0xff] (!%p164_p2)   ;;  %vm334_vm1 = vsmask.f32 (!%p164_p2), 7424 }
   0x7   : > { %p190_p3 = scmp.lt.s32.totalorder (!%p164_p2), %s189_s19, 71  ;;  %2422 = vmatpush3.bf16.msra.mxu0 (!%p164_p2), %v2624_v0  ;;  %2338 = vmatpush3.bf16.msra.mxu1 (!%p164_p2), %v2625_v1  ;;  %v2633_v7 = vld [vmem:[%s3421_s1] sm:$0xff] (!%p164_p2)   ;;  %v2634_v14 = vld [vmem:[%s3421_s1 + $0x48] sm:$0xff] (!%p164_p2)   ;;  %v2642_v40 = vld [vmem:[%s3421_s1 + $0x50] sm:$0xff] (!%p164_p2)   ;;  %vm485_vm3 = vcmask (!%p164_p2), 1047552  }
   0x8   : > { %2423 = vmatprep.subr.bf16.mxu0 (!%p164_p2), %v2626_v2  ;;  %2339 = vmatprep.subr.bf16.mxu1 (!%p164_p2), %v2627_v3  ;;  %v2641_v39 = vld [vmem:[%s3421_s1 + $0x8] sm:$0xff] (!%p164_p2)   ;;  %v2649_v56 = vld [vmem:[%s3421_s1 + $0x10] sm:$0xff] (!%p164_p2)   ;;  %v2650_v57 = vld [vmem:[%s3421_s1 + $0x58] sm:$0xff] (!%p164_p2)  }
   0x9   : > { %2623 = vset.pattern.permute.xlu1 (!%p164_p2), %v2664_v6  ;;  %2622 = vset.pattern.permute.xlu0 (!%p164_p2), %v2664_v6  ;;  %vm2893_vm6 = vmand (!%p164_p2), %vm485_vm3, %vm334_vm1 }
   0xb   : > { %2424 = vmatpush3.bf16.msra.mxu0 (!%p164_p2), %v2626_v2  ;;  %2340 = vmatpush3.bf16.msra.mxu1 (!%p164_p2), %v2627_v3 }
   0xc   : > { %2425 = vmatprep.subr.bf16.mxu0 (!%p164_p2), %v2628_v4  ;;  %2341 = vmatprep.subr.bf16.mxu1 (!%p164_p2), %v2629_v5 }
   0xd   : > { %s3428_s19 = smov (!%p190_p3, %s189_s19), 71 }
   0xe   : > { %s2072_s30 = sshll.u32 %s3428_s19, 2 }
   0xf   : > { %s2726_s7 = scalar_lea.vmem %s3420_s0, %s2072_s30  ;;  %2426 = vmatpush3.bf16.msra.mxu0 %v2628_v4  ;;  %2342 = vmatpush3.bf16.msra.mxu1 %v2629_v5  ;;  %v1544_v4 = vld [vmem:[%s3423_s3 + $0x10] sm:$0xff]  ;;  %s3263_s5 = scalar_lea.vmem %s3424_s4, %s2072_s30 }
  0x10   : > { %v2732_v8 = vld [vmem:[%s2726_s7 + $0x8] sm:$0xf]  ;;  %v205_v9 = vld [vmem:[%s2726_s7 + $0xc] sm:$0xf]  ;;  %v2739_v11 = vld [vmem:[%s2726_s7 + $0x10] sm:$0xff]   ;;  %2463 = vmatprep.subr.bf16.mxu0 %v2634_v14  ;;  %2379 = vmatprep.subr.bf16.mxu1 %v2633_v7  ;;  %vm1580_vm2 = vcmp.gt.f32.partialorder %v1544_v4, 0.5 }
  0x11   : > { %v2736_v10 = vcombine.low %v2732_v8, %v205_v9  ;;  %v2742_v12 = vld [vmem:[%s2726_s7] sm:$0xf]  ;;  %v203_v13 = vld [vmem:[%s2726_s7 + $0x4] sm:$0xf]  ;;  %v351_v18 = vshll.u32 %v2739_v11, 16  ;;  %v2757_v19 = vld [vmem:[%s2726_s7 + $0x18] sm:$0xff]  }
  0x12   : > { %v2751_v15 = vcombine.low %v2742_v12, %v203_v13  ;;  %v355_v20 = vshrl.u32 %v2739_v11, 16  ;;  %v2763_v24 = vld [vmem:[%s2726_s7 + $0x20] sm:$0xff]   ;;  %v359_v26 = vshll.u32 %v2757_v19, 16  ;;  %v2773_v29 = vld [vmem:[%s2726_s7 + $0x28] sm:$0xff]   ;;  %v363_v35 = vshrl.u32 %v2757_v19, 16  ;;  %v2800_v43 = vld [vmem:[%s2726_s7 + $0x30] sm:$0xff]  }
  0x13   : > { %2427 = vmatprep.mubr.msk.bf16.mxu0 %vm512_vm0, %v2736_v10  ;;  %v343_v16 = vshll.u32 %v2736_v10, 16  ;;  %v347_v17 = vshrl.u32 %v2736_v10, 16  ;;  %v353_v25 = vrot.slane %v351_v18, 1  ;;  %v367_v33 = vshll.u32 %v2763_v24, 16  ;;  %v2809_v47 = vld [vmem:[%s2726_s7 + $0x38] sm:$0xff]   ;;  %v2822_v54 = vld [vmem:[%s2726_s7 + $0x40] sm:$0xff]  }
  0x14   : > { %v336_v21 = vshrl.u32 %v2751_v15, 16  ;;  %v338_v22 = vshll.u32 %v2751_v15, 16  ;;  %2428 = vmatmul.mubr.msk.bf16.vlgmr.msra.gmra.mrb[0].mxu0 %vm512_vm0, %v2739_v11  ;;  %v361_v31 = vrot.slane %v359_v26, 1  ;;  %v371_v37 = vshrl.u32 %v2763_v24, 16  ;;  %v2841_v62 = vld [vmem:[%s2726_s7 + $0x48] sm:$0xff]   ;;  %v1545_v13 = vld [vmem:[%s3423_s3 + $0x18] sm:$0xff] }
  0x15   : > { %v345_v23 = vrot.slane %v343_v16, 1  ;;  %2464 = vmatpush3.bf16.msra.mxu0 %v2634_v14  ;;  %2431 = vmatprep.mubr.msk.bf16.mxu0 %vm512_vm0, %v2757_v19  ;;  %v357_v30 = vor.u32 %v355_v20, %v353_v25  ;;  %v375_v38 = vshll.u32 %v2773_v29, 16  ;;  %v369_v42 = vrot.slane %v367_v33, 1  ;;  %v2849_v2 = vld [vmem:[%s2726_s7 + $0x88] sm:$0xff]   ;;  %v2889_v33 = vld [vmem:[%s2726_s7 + $0x58] sm:$0xff]  }
  0x16   : > { %v2768_v27 = vrot.slane %v338_v22, 1  ;;  %2465 = vmatprep.subr.bf16.mxu0 %v2642_v40  ;;  %v365_v44 = vor.u32 %v363_v35, %v361_v31  ;;  %v383_v48 = vshll.u32 %v2800_v43, 16  ;;  %v379_v50 = vshrl.u32 %v2773_v29, 16 }
  0x17   : > { %v349_v28 = vor.u32 %v347_v17, %v345_v23  ;;  %v2795_v41 = vsel %vm334_vm1, %v357_v30, %v361_v31  ;;  %v373_v45 = vor.u32 %v371_v37, %v369_v42  ;;  %v377_v46 = vrot.slane %v375_v38, 1  ;;  %v1543_v17 = vld [vmem:[%s3423_s3 + $0x8] sm:$0xff] }
  0x18   : > { %v2776_v32 = vor.u32 %v2768_v27, %v336_v21  ;;  %v2813_v49 = vsel %vm334_vm1, %v365_v44, %v369_v42  ;;  %v387_v52 = vshrl.u32 %v2800_v43, 16  ;;  %v391_v53 = vshll.u32 %v2809_v47, 16  ;;  %v2873_v21 = vld [vmem:[%s2726_s7 + $0x50] sm:$0xff]  }
  0x19   : > { %v2780_v34 = vsel %vm334_vm1, %v349_v28, %v353_v25  ;;  %2466 = vmatpush3.bf16.msra.mxu0 %v2642_v40  ;;  %v2817_v51 = vsel %vm334_vm1, %v373_v45, %v377_v46  ;;  %v385_v55 = vrot.slane %v383_v48, 1  ;;  %v381_v58 = vor.u32 %v379_v50, %v377_v46  ;;  %v1547_v28 = vld [vmem:[%s3423_s3 + $0x28] sm:$0xff]  ;;  %v1549_v46 = vld [vmem:[%s3423_s3 + $0x38] sm:$0xff] }
  0x1a   : > { %v346_v36 = vsel %vm334_vm1, %v2776_v32, %v345_v23  ;;  %v2092_v59 = vcombine.low %v2742_v12, %v2742_v12  ;;  %v393_v61 = vrot.slane %v391_v53, 1  ;;  %2467 = vmatprep.subr.bf16.mxu0 %v2650_v57  ;;  %v395_v63 = vshrl.u32 %v2809_v47, 16  ;;  %v1542_v12 = vld [vmem:[%s3423_s3] sm:$0xff]  ;;  %v1548_v53 = vld [vmem:[%s3423_s3 + $0x30] sm:$0xff] }
  0x1b   : > { %2343 = vmatprep.mubr.msk.bf16.mxu1 %vm512_vm0, %v346_v36  ;;  %v389_v60 = vor.u32 %v387_v52, %v385_v55  ;;  %v399_v0 = vshll.u32 %v2822_v54, 16  ;;  %v2846_v1 = vsel %vm334_vm1, %v381_v58, %v385_v55  ;;  %v407_v9 = vshll.u32 %v2841_v62, 16  ;;  %v1546_v36 = vld [vmem:[%s3423_s3 + $0x20] sm:$0xff] }
  0x1c   : > { %2344 = vmatmul.mubr.msk.bf16.vlgmr.msra.gmra.mrb[0].mxu1 %vm512_vm0, %v2780_v34  ;;  %2432 = vmatmul.mubr.msk.bf16.gmra.mrb[4].mxu0 %vm512_vm0, %v2763_v24  ;;  %v481_v3 = vshll.u32 %v2092_v59, 16  ;;  %v471_v14 = vshll.u32 %v2849_v2, 16  ;;  %v475_v16 = vshrl.u32 %v2849_v2, 16  ;;  %v397_v18 = vor.u32 %v395_v63, %v393_v61 }
  0x1d   : > { %2380 = vmatpush3.bf16.msra.mxu1 %v2633_v7  ;;  %2347 = vmatprep.mubr.msk.bf16.mxu1 %vm512_vm0, %v2795_v41  ;;  %v2855_v5 = vsel %vm334_vm1, %v389_v60, %v393_v61  ;;  %v403_v7 = vshrl.u32 %v2822_v54, 16  ;;  %v401_v20 = vrot.slane %v399_v0, 1  ;;  %v1616_v22 = vsel %vm1580_vm2, 1, %v2664_v6  ;;  %v1551_v61 = vld [vmem:[%s3423_s3 + $0x48] sm:$0xff] }
  0x1e   : > { %2435 = vmatprep.mubr.msk.bf16.mxu0 %vm512_vm0, %v2773_v29  ;;  %2381 = vmatprep.subr.bf16.mxu1 %v2641_v39  ;;  %vm1578_vm4 = vcmp.gt.f32.partialorder %v1542_v12, 0.5  ;;  %v2880_v23 = vrot.slane %v471_v14, 1  ;;  %v483_v25 = vrot.slane %v481_v3, 1  ;;  %vm1581_vm5 = vcmp.gt.f32.partialorder %v1545_v13, 0.5  ;;  %v2945_v3 = vld [vmem:[%s2726_s7 + $0x68] sm:$0xff]  }
  0x1f   : > { %2468 = vmatpush3.bf16.msra.mxu0 %v2650_v57  ;;  %v1614_v26 = vsel %vm1578_vm4, 1, %v2664_v6  ;;  %v405_v30 = vor.u32 %v403_v7, %v401_v20  ;;  %v409_v31 = vrot.slane %v407_v9, 1  ;;  %1657 = vperm.xlu1 %2623, %v1616_v22   ;;  %vm1579_vm7 = vcmp.gt.f32.partialorder %v1543_v17, 0.5  ;;  %v2930_v57 = vld [vmem:[%s2726_s7 + $0x60] sm:$0xff]   ;;  %v1553_v17 = vld [vmem:[%s3423_s3 + $0x58] sm:$0xff] }
  0x20   : > { %v2901_v37 = vor.u32 %v475_v16, %v2880_v23  ;;  %1651 = vperm.xlu0 %2622, %v1614_v26   ;;  %v1617_v38 = vsel %vm1581_vm5, 1, %v2664_v6  ;;  %v1615_v40 = vsel %vm1579_vm7, 1, %v2664_v6  ;;  %vm1583_vm8 = vcmp.gt.f32.partialorder %v1547_v28, 0.5 }
  0x21   : > { %2382 = vmatpush3.bf16.msra.mxu1 %v2641_v39  ;;  %v415_v39 = vshll.u32 %v2873_v21, 16  ;;  %v2907_v42 = vsel %vm334_vm1, %v397_v18, %v401_v20  ;;  %v411_v44 = vshrl.u32 %v2841_v62, 16  ;;  %vm1582_vm9 = vcmp.gt.f32.partialorder %v1546_v36, 0.5 }
  0x22   : > { %2383 = vmatprep.subr.bf16.mxu1 %v2649_v56  ;;  %v2913_v45 = vsel %vm2893_vm6, %v2901_v37, %v483_v25  ;;  %v2919_v48 = vsel %vm334_vm1, %v405_v30, %v409_v31  ;;  %v419_v50 = vshrl.u32 %v2873_v21, 16  ;;  %v423_v52 = vshll.u32 %v2889_v33, 16  ;;  %v1552_v25 = vld [vmem:[%s3423_s3 + $0x50] sm:$0xff] }
  0x23   : > { %1660 = vperm.xlu1 %2623, %v1617_v38   ;;  %v1619_v55 = vsel %vm1583_vm8, 1, %v2664_v6  ;;  %v1618_v58 = vsel %vm1582_vm9, 1, %v2664_v6  ;;  %vm1585_vm10 = vcmp.gt.f32.partialorder %v1549_v46, 0.5  ;;  %v2156_v59 = vcombine.low %v2732_v8, %v2732_v8  ;;  %v1550_v8 = vld [vmem:[%s3423_s3 + $0x40] sm:$0xff] }
  0x24   : > { %2348 = vmatmul.mubr.msk.bf16.gmra.mrb[4].mxu1 %vm512_vm0, %v2813_v49  ;;  %2436 = vmatmul.mubr.msk.bf16.gmra.mrb[8].mxu0 %vm512_vm0, %v2800_v43  ;;  %v413_v60 = vor.u32 %v411_v44, %v409_v31  ;;  %vm1584_vm11 = vcmp.gt.f32.partialorder %v1548_v53, 0.5  ;;  %v425_v0 = vrot.slane %v423_v52, 1  ;;  %v1621_v4 = vsel %vm1585_vm10, 1, %v2664_v6  ;;  %v2976_v31 = vld [vmem:[%s2726_s7 + $0x70] sm:$0xff]  }
  0x25   : > { %2351 = vmatprep.mubr.msk.bf16.mxu1 %vm512_vm0, %v2817_v51  ;;  %2439 = vmatprep.mubr.msk.bf16.mxu0 %vm512_vm0, %v2809_v47  ;;  %v1219_v7 = vsel %vm2893_vm6, %v2901_v37, %v2768_v27  ;;  %v431_v9 = vshll.u32 %v2930_v57, 16  ;;  %v1620_v12 = vsel %vm1584_vm11, 1, %v2664_v6  ;;  %vm1587_vm12 = vcmp.gt.f32.partialorder %v1551_v61, 0.5 }
  0x26   : > { %2384 = vmatpush3.bf16.msra.mxu1 %v2649_v56  ;;  %1654 = vperm.xlu0 %2622, %v1615_v40   ;;  %v417_v56 = vrot.slane %v415_v39, 1  ;;  %v1214_v13 = vshll.u32 %v2156_v59, 16  ;;  %v427_v16 = vshrl.u32 %v2889_v33, 16  ;;  %vm1586_vm13 = vcmp.gt.f32.partialorder %v1550_v8, 0.5  ;;  %v1555_v40 = vld [vmem:[%s3423_s3 + $0x68] sm:$0xff]  ;;  %v1557_v59 = vld [vmem:[%s3423_s3 + $0x78] sm:$0xff] }
  0x27   : > { %1666 = vperm.xlu1 %2623, %v1619_v55   ;;  %v435_v20 = vshrl.u32 %v2930_v57, 16  ;;  %v439_v22 = vshll.u32 %v2945_v3, 16  ;;  %v1623_v28 = vsel %vm1587_vm12, 1, %v2664_v6  ;;  %v433_v30 = vrot.slane %v431_v9, 1  ;;  %v3020_v9 = vld [vmem:[%s2726_s7 + $0x80] sm:$0xff]  }
  0x28   : > { %v421_v63 = vor.u32 %v419_v50, %v417_v56  ;;  %v2958_v14 = vsel %vm334_vm1, %v413_v60, %v417_v56  ;;  %v1216_v26 = vrot.slane %v1214_v13, 1  ;;  %v1622_v36 = vsel %vm1586_vm13, 1, %v2664_v6  ;;  %v2993_v50 = vld [vmem:[%s2726_s7 + $0x78] sm:$0xff]  }
  0x29   : > { %vm1589_vm14 = vcmp.gt.f32.partialorder %v1553_v17, 0.5  ;;  %v429_v39 = vor.u32 %v427_v16, %v425_v0  ;;  %vm1588_vm15 = vcmp.gt.f32.partialorder %v1552_v25, 0.5  ;;  %v437_v44 = vor.u32 %v435_v20, %v433_v30  ;;  %v1559_v16 = vld [vmem:[%s3423_s3 + $0x88] sm:$0xff] }
  0x2a   : > { %1663 = vperm.xlu0 %2622, %v1618_v58   ;;  %v2965_v18 = vsel %vm334_vm1, %v421_v63, %v425_v0  ;;  %v2981_v38 = vsel %vm334_vm1, %v2776_v32, %v1216_v26  ;;  %v441_v46 = vrot.slane %v439_v22, 1  ;;  %v1554_v32 = vld [vmem:[%s3423_s3 + $0x60] sm:$0xff]  ;;  %v1625_v52 = vsel %vm1589_vm14, 1, %v2664_v6  ;;  %v1556_v0 = vld [vmem:[%s3423_s3 + $0x70] sm:$0xff] }
  0x2b   : > { %1672 = vperm.xlu1 %2623, %v1621_v4   ;;  %v447_v53 = vshll.u32 %v2976_v31, 16  ;;  %v1624_v55 = vsel %vm1588_vm15, 1, %v2664_v6  ;;  %vm1591_vm2 = vcmp.gt.f32.partialorder %v1555_v40, 0.5  ;;  %v3002_v56 = vsel %vm334_vm1, %v429_v39, %v433_v30  ;;  %v1558_v22 = vld [vmem:[%s3423_s3 + $0x80] sm:$0xff]  ;;  %v1561_v39 = vld [vmem:[%s3423_s3 + $0x98] sm:$0xff] }
  0x2c   : > { %2352 = vmatmul.mubr.msk.bf16.gmra.mrb[8].mxu1 %vm512_vm0, %v2846_v1  ;;  %2440 = vmatmul.mubr.msk.bf16.gmra.mrb[12].mxu0 %vm512_vm0, %v2822_v54  ;;  %v443_v58 = vshrl.u32 %v2945_v3, 16  ;;  %vm1590_vm3 = vcmp.gt.f32.partialorder %v1554_v32, 0.5  ;;  %v3009_v60 = vsel %vm334_vm1, %v437_v44, %v441_v46  ;;  %v451_v61 = vshrl.u32 %v2976_v31, 16 }
  0x2d   : > { %2355 = vmatprep.mubr.msk.bf16.mxu1 %vm512_vm0, %v2855_v5  ;;  %2443 = vmatprep.mubr.msk.bf16.mxu0 %vm512_vm0, %v2841_v62  ;;  %v455_v63 = vshll.u32 %v2993_v50, 16  ;;  %v1627_v8 = vsel %vm1591_vm2, 1, %v2664_v6  ;;  %v449_v4 = vrot.slane %v447_v53, 1  ;;  %vm1593_vm4 = vcmp.gt.f32.partialorder %v1557_v59, 0.5 }
  0x2e   : > { %1669 = vperm.xlu0 %2622, %v1620_v12   ;;  %v1626_v12 = vsel %vm1590_vm3, 1, %v2664_v6  ;;  %v445_v13 = vor.u32 %v443_v58, %v441_v46  ;;  %vm1592_vm5 = vcmp.gt.f32.partialorder %v1556_v0, 0.5  ;;  %v1629_v25 = vsel %vm1593_vm4, 1, %v2664_v6  ;;  %v1560_v46 = vld [vmem:[%s3423_s3 + $0x90] sm:$0xff]  ;;  %v1563_v58 = vld [vmem:[%s3423_s3 + $0xa8] sm:$0xff] }
  0x2f   : > { %1678 = vperm.xlu1 %2623, %v1623_v28   ;;  %v453_v17 = vor.u32 %v451_v61, %v449_v4  ;;  %v457_v20 = vrot.slane %v455_v63, 1  ;;  %v463_v26 = vshll.u32 %v3020_v9, 16  ;;  %v1628_v28 = vsel %vm1592_vm5, 1, %v2664_v6  ;;  %v1562_v61 = vld [vmem:[%s3423_s3 + $0xa0] sm:$0xff] }
  0x30   : > { %vm1595_vm7 = vcmp.gt.f32.partialorder %v1559_v16, 0.5  ;;  %v3039_v30 = vsel %vm334_vm1, %v445_v13, %v449_v4  ;;  %vm1594_vm8 = vcmp.gt.f32.partialorder %v1558_v22, 0.5  ;;  %v467_v44 = vshrl.u32 %v3020_v9, 16  ;;  %v1565_v4 = vld [vmem:[%s3423_s3 + $0xb8] sm:$0xff]  ;;  %v1564_v13 = vld [vmem:[%s3423_s3 + $0xb0] sm:$0xff] }
  0x31   : > { %v3046_v40 = vsel %vm334_vm1, %v453_v17, %v457_v20  ;;  %v1631_v32 = vsel %vm1595_vm7, 1, %v2664_v6  ;;  %v1630_v53 = vsel %vm1594_vm8, 1, %v2664_v6  ;;  %vm1597_vm9 = vcmp.gt.f32.partialorder %v1561_v39, 0.5  ;;  %v1571_v39 = vld [vmem:[%s3423_s3 + $0xe8] sm:$0xff] }
  0x32   : > { %1675 = vperm.xlu0 %2622, %v1622_v36   ;;  %v459_v36 = vshrl.u32 %v2993_v50, 16  ;;  %vm1596_vm10 = vcmp.gt.f32.partialorder %v1560_v46, 0.5  ;;  %v1633_v63 = vsel %vm1597_vm9, 1, %v2664_v6  ;;  %vm1599_vm11 = vcmp.gt.f32.partialorder %v1563_v58, 0.5 }
  0x33   : > { %1684 = vperm.xlu1 %2623, %v1625_v52   ;;  %v465_v52 = vrot.slane %v463_v26, 1  ;;  %v1632_v0 = vsel %vm1596_vm10, 1, %v2664_v6  ;;  %vm1598_vm12 = vcmp.gt.f32.partialorder %v1562_v61, 0.5  ;;  %v1635_v16 = vsel %vm1599_vm11, 1, %v2664_v6  ;;  %v1569_v26 = vld [vmem:[%s3423_s3 + $0xd8] sm:$0xff] }
  0x34   : > { %2356 = vmatmul.mubr.msk.bf16.gmra.mrb[12].mxu1 %vm512_vm0, %v2907_v42  ;;  %2444 = vmatmul.mubr.msk.bf16.gmra.mrb[16].mxu0 %vm512_vm0, %v2873_v21  ;;  %v1634_v17 = vsel %vm1598_vm12, 1, %v2664_v6  ;;  %vm1601_vm13 = vcmp.gt.f32.partialorder %v1565_v4, 0.5  ;;  %vm1605_vm2 = vcmp.gt.f32.partialorder %v1569_v26, 0.5  ;;  %vm1607_vm4 = vcmp.gt.f32.partialorder %v1571_v39, 0.5 }
  0x35   : > { %2359 = vmatprep.mubr.msk.bf16.mxu1 %vm512_vm0, %v2919_v48  ;;  %2447 = vmatprep.mubr.msk.bf16.mxu0 %vm512_vm0, %v2889_v33  ;;  %v469_v59 = vor.u32 %v467_v44, %v465_v52  ;;  %v1637_v22 = vsel %vm1601_vm13, 1, %v2664_v6  ;;  %v1641_v44 = vsel %vm1605_vm2, 1, %v2664_v6  ;;  %v1643_v46 = vsel %vm1607_vm4, 1, %v2664_v6 }
  0x36   : > { %1681 = vperm.xlu0 %2622, %v1624_v55   ;;  %v461_v55 = vor.u32 %v459_v36, %v457_v20  ;;  %v1566_v20 = vld [vmem:[%s3423_s3 + $0xc0] sm:$0xff]  ;;  %vm1974_vm13 = vcmask 257024  }
  0x37   : > { %1690 = vperm.xlu1 %2623, %v1627_v8   ;;  %vm1602_vm15 = vcmp.gt.f32.partialorder %v1566_v20, 0.5 }
  0x38   : > { %v3071_v8 = vsel %vm334_vm1, %v461_v55, %v465_v52  ;;  %v1638_v36 = vsel %vm1602_vm15, 1, %v2664_v6  ;;  %v1575_v52 = vld [vmem:[%s3423_s3 + $0x108] sm:$0xff] }
  0x39   : > { %vm1611_vm9 = vcmp.gt.f32.partialorder %v1575_v52, 0.5 }
  0x3a   : > { %1687 = vperm.xlu0 %2622, %v1626_v12   ;;  %v3078_v12 = vsel %vm334_vm1, %v469_v59, %v2880_v23  ;;  %vm1600_vm1 = vcmp.gt.f32.partialorder %v1564_v13, 0.5  ;;  %v1567_v23 = vld [vmem:[%s3423_s3 + $0xc8] sm:$0xff]  ;;  %v1647_v55 = vsel %vm1611_vm9, 1, %v2664_v6 }
  0x3b   : > { %1696 = vperm.xlu1 %2623, %v1629_v25   ;;  %v1636_v25 = vsel %vm1600_vm1, 1, %v2664_v6  ;;  %vm1603_vm14 = vcmp.gt.f32.partialorder %v1567_v23, 0.5 }
  0x3c   : > { %2360 = vmatmul.mubr.msk.bf16.gmra.mrb[16].mxu1 %vm512_vm0, %v2958_v14  ;;  %2448 = vmatmul.mubr.msk.bf16.gmra.mrb[20].mxu0 %vm512_vm0, %v2930_v57 }
  0x3d   : > { %2363 = vmatprep.mubr.msk.bf16.mxu1 %vm512_vm0, %v2965_v18  ;;  %2451 = vmatprep.mubr.msk.bf16.mxu0 %vm512_vm0, %v2945_v3 }
  0x3e   : > { %1693 = vperm.xlu0 %2622, %v1628_v28   ;;  %v1639_v28 = vsel %vm1603_vm14, 1, %v2664_v6 }
  0x3f   : > { %1702 = vperm.xlu1 %2623, %v1631_v32  }
  0x42   : > { %1699 = vperm.xlu0 %2622, %v1630_v53  }
  0x43   : > { %1708 = vperm.xlu1 %2623, %v1633_v63  }
  0x44   : > { %2364 = vmatmul.mubr.msk.bf16.gmra.mrb[20].mxu1 %vm512_vm0, %v3002_v56  ;;  %2452 = vmatmul.mubr.msk.bf16.gmra.mrb[24].mxu0 %vm512_vm0, %v2976_v31 }
  0x45   : > { %2367 = vmatprep.mubr.msk.bf16.mxu1 %vm512_vm0, %v3009_v60  ;;  %2455 = vmatprep.mubr.msk.bf16.mxu0 %vm512_vm0, %v2993_v50 }
  0x46   : > { %1705 = vperm.xlu0 %2622, %v1632_v0  }
  0x47   : > { %1714 = vperm.xlu1 %2623, %v1635_v16  }
  0x4a   : > { %1711 = vperm.xlu0 %2622, %v1634_v17  }
  0x4b   : > { %1720 = vperm.xlu1 %2623, %v1637_v22  }
  0x4c   : > { %2368 = vmatmul.mubr.msk.bf16.gmra.mrb[24].mxu1 %vm512_vm0, %v3039_v30  ;;  %2456 = vmatmul.mubr.msk.bf16.gmra.mrb[28].mxu0 %vm512_vm0, %v3020_v9 }
  0x4d   : > { %2371 = vmatprep.mubr.msk.bf16.mxu1 %vm512_vm0, %v3046_v40  ;;  %2459 = vmatprep.mubr.msk.bf16.mxu0 %vm512_vm0, %v2849_v2 }
  0x4e   : > { %1717 = vperm.xlu0 %2622, %v1636_v25  }
  0x4f   : > { %1726 = vperm.xlu1 %2623, %v1639_v28  }
  0x52   : > { %1723 = vperm.xlu0 %2622, %v1638_v36  }
  0x53   : > { %1732 = vperm.xlu1 %2623, %v1641_v44  }
  0x54   : > { %2372 = vmatmul.mubr.msk.bf16.gmra.mrb[28].mxu1 %vm512_vm0, %v3071_v8  ;;  %2460 = vmatmul.mubr.msk.bf16.gmra.mrb[32].mxu0 %vm512_vm0, %v2751_v15 }
  0x55   : > { %2375 = vmatprep.mubr.msk.bf16.mxu1 %vm512_vm0, %v3078_v12  ;;  %2469 = vmatprep.mubr.msk.bf16.mxu0 %vm512_vm0, %v2780_v34  ;;  %v1568_v34 = vld [vmem:[%s3423_s3 + $0xd0] sm:$0xff] }
  0x56   : > { %vm1604_vm3 = vcmp.gt.f32.partialorder %v1568_v34, 0.5 }
  0x57   : > { %1738 = vperm.xlu1 %2623, %v1643_v46  }
  0x5c   : > { %2376 = vmatmul.mubr.msk.bf16.gmra.mrb[32].mxu1 %vm512_vm0, %v2913_v45  ;;  %2470 = vmatmul.mubr.msk.bf16.vlgmr.msra.gmra.mrb[0].mxu0 %vm512_vm0, %v2795_v41  ;;  %v1570_v45 = vld [vmem:[%s3423_s3 + $0xe0] sm:$0xff]  ;;  %v1640_v41 = vsel %vm1604_vm3, 1, %v2664_v6 }
  0x5d   : > { %2385 = vmatprep.mubr.msk.bf16.mxu1 %vm512_vm0, %v2751_v15  ;;  %2473 = vmatprep.mubr.msk.bf16.mxu0 %vm512_vm0, %v2813_v49  ;;  %vm1606_vm5 = vcmp.gt.f32.partialorder %v1570_v45, 0.5  ;;  %v1573_v15 = vld [vmem:[%s3423_s3 + $0xf8] sm:$0xff]  ;;  %v1572_v49 = vld [vmem:[%s3423_s3 + $0xf0] sm:$0xff] }
  0x5e   : > { %1729 = vperm.xlu0 %2622, %v1640_v41   ;;  %v1642_v32 = vsel %vm1606_vm5, 1, %v2664_v6  ;;  %vm1609_vm7 = vcmp.gt.f32.partialorder %v1573_v15, 0.5  ;;  %vm1608_vm8 = vcmp.gt.f32.partialorder %v1572_v49, 0.5 }
  0x5f   : > { %v1645_v53 = vsel %vm1609_vm7, 1, %v2664_v6 }
  0x60   : > { %1744 = vperm.xlu1 %2623, %v1645_v53  }
  0x62   : > { %1735 = vperm.xlu0 %2622, %v1642_v32  }
  0x64   : > { %2386 = vmatmul.mubr.msk.bf16.vlgmr.msra.gmra.mrb[0].mxu1 %vm512_vm0, %v2736_v10  ;;  %2474 = vmatmul.mubr.msk.bf16.gmra.mrb[4].mxu0 %vm512_vm0, %v2817_v51  ;;  %v1574_v10 = vld [vmem:[%s3423_s3 + $0x100] sm:$0xff]  ;;  %v1644_v51 = vsel %vm1608_vm8, 1, %v2664_v6 }
  0x65   : > { %2389 = vmatprep.mubr.msk.bf16.mxu1 %vm512_vm0, %v2739_v11  ;;  %2477 = vmatprep.mubr.msk.bf16.mxu0 %vm512_vm0, %v2846_v1  ;;  %vm1610_vm10 = vcmp.gt.f32.partialorder %v1574_v10, 0.5  ;;  %v1577_v11 = vld [vmem:[%s3423_s3 + $0x118] sm:$0xff]  ;;  %v1576_v1 = vld [vmem:[%s3423_s3 + $0x110] sm:$0xff] }
  0x66   : > { %1741 = vperm.xlu0 %2622, %v1644_v51   ;;  %v1646_v58 = vsel %vm1610_vm10, 1, %v2664_v6  ;;  %vm1613_vm11 = vcmp.gt.f32.partialorder %v1577_v11, 0.5  ;;  %vm1612_vm12 = vcmp.gt.f32.partialorder %v1576_v1, 0.5  ;;  %1750 = vperm.xlu1 %2623, %v1647_v55  }
  0x67   : > { %v1649_v59 = vsel %vm1613_vm11, 1, %v2664_v6  ;;  %v1648_v61 = vsel %vm1612_vm12, 1, %v2664_v6 }
  0x6a   : > { %1747 = vperm.xlu0 %2622, %v1646_v58   ;;  %1756 = vperm.xlu1 %2623, %v1649_v59  }
  0x6c   : > { %2390 = vmatmul.mubr.msk.bf16.gmra.mrb[4].mxu1 %vm512_vm0, %v2757_v19  ;;  %2478 = vmatmul.mubr.msk.bf16.gmra.mrb[8].mxu0 %vm512_vm0, %v2855_v5 }
  0x6d   : > { %2393 = vmatprep.mubr.msk.bf16.mxu1 %vm512_vm0, %v2763_v24  ;;  %2481 = vmatprep.mubr.msk.bf16.mxu0 %vm512_vm0, %v2907_v42 }
  0x6e   : > { %1753 = vperm.xlu0 %2622, %v1648_v61  }
  0x74   : > { %2394 = vmatmul.mubr.msk.bf16.gmra.mrb[8].mxu1 %vm512_vm0, %v2773_v29  ;;  %2482 = vmatmul.mubr.msk.bf16.gmra.mrb[12].mxu0 %vm512_vm0, %v2919_v48 }
  0x75   : > { %2397 = vmatprep.mubr.msk.bf16.mxu1 %vm512_vm0, %v2800_v43  ;;  %2485 = vmatprep.mubr.msk.bf16.mxu0 %vm512_vm0, %v2958_v14 }
  0x7c   : > { %2398 = vmatmul.mubr.msk.bf16.gmra.mrb[12].mxu1 %vm512_vm0, %v2809_v47  ;;  %2486 = vmatmul.mubr.msk.bf16.gmra.mrb[16].mxu0 %vm512_vm0, %v2965_v18 }
  0x7d   : > { %2401 = vmatprep.mubr.msk.bf16.mxu1 %vm512_vm0, %v2822_v54  ;;  %2489 = vmatprep.mubr.msk.bf16.mxu0 %vm512_vm0, %v3002_v56 }
  0x84   : > { %2402 = vmatmul.mubr.msk.bf16.gmra.mrb[16].mxu1 %vm512_vm0, %v2841_v62  ;;  %2490 = vmatmul.mubr.msk.bf16.gmra.mrb[20].mxu0 %vm512_vm0, %v3009_v60 }
  0x85   : > { %2405 = vmatprep.mubr.msk.bf16.mxu1 %vm512_vm0, %v2873_v21  ;;  %2493 = vmatprep.mubr.msk.bf16.mxu0 %vm512_vm0, %v3039_v30 }
  0x8c   : > { %2406 = vmatmul.mubr.msk.bf16.gmra.mrb[20].mxu1 %vm512_vm0, %v2889_v33  ;;  %2494 = vmatmul.mubr.msk.bf16.gmra.mrb[24].mxu0 %vm512_vm0, %v3046_v40 }
  0x8d   : > { %2409 = vmatprep.mubr.msk.bf16.mxu1 %vm512_vm0, %v2930_v57  ;;  %2497 = vmatprep.mubr.msk.bf16.mxu0 %vm512_vm0, %v3071_v8 }
  0x94   : > { %2410 = vmatmul.mubr.msk.bf16.gmra.mrb[24].mxu1 %vm512_vm0, %v2945_v3  ;;  %2498 = vmatmul.mubr.msk.bf16.gmra.mrb[28].mxu0 %vm512_vm0, %v3078_v12 }
  0x95   : > { %2413 = vmatprep.mubr.msk.bf16.mxu1 %vm512_vm0, %v2976_v31  ;;  %2501 = vmatprep.mubr.msk.bf16.mxu0 %vm512_vm0, %v1219_v7 }
  0x9c   : > { %2414 = vmatmul.mubr.msk.bf16.gmra.mrb[28].mxu1 %vm512_vm0, %v2993_v50  ;;  %2502 = vmatmul.mubr.msk.bf16.gmra.mrb[32].mxu0 %vm512_vm0, %v2981_v38  ;;  %v3250_v38 = vld [vmem:[%s3422_s2] ss:$0 sm:$0xff] }
  0x9d   : > { %2417 = vmatprep.mubr.msk.bf16.mxu1 %vm512_vm0, %v3020_v9 }
  0x9e   : > { %v1658_v6 = vpop.permute.xlu1 %1657 }
  0x9f   : > { %v1652_v19 = vpop.permute.xlu0 %1651 }
  0xa0   : > { %vm1758_vm6 = vcmp.eq.s32.totalorder %v1652_v19, 1 }
  0xa2   : > { %v1661_v24 = vpop.permute.xlu1 %1660 }
  0xa3   : > { %vm1761_vm1 = vcmp.eq.s32.totalorder %v1661_v24, 1 }
  0xa4   : > { %2418 = vmatmul.mubr.msk.bf16.gmra.mrb[32].mxu1 %vm512_vm0, %v2849_v2  ;;  %vm1760_vm0 = vcmp.eq.s32.totalorder %v1658_v6, 1 }
  0xa5   : > { %v1655_v29 = vpop.permute.xlu0 %1654 }
  0xa6   : > { %v3219_v43 = vpop.permute.xlu1 %1666  ;;  %vm1759_vm14 = vcmp.eq.s32.totalorder %v1655_v29, 1 }
  0xa7   : > { %vm1763_vm4 = vcmp.eq.s32.totalorder %v3219_v43, 1 }
  0xa9   : > { %v3221_v27 = vpop.permute.xlu0 %1663 }
  0xaa   : > { %v3223_v47 = vpop.permute.xlu1 %1672  ;;  %vm1762_vm2 = vcmp.eq.s32.totalorder %v3221_v27, 1 }
  0xab   : > { %vm1765_vm3 = vcmp.eq.s32.totalorder %v3223_v47, 1 }
  0xad   : > { %v3225_v54 = vpop.permute.xlu0 %1669 }
  0xae   : > { %v3227_v62 = vpop.permute.xlu1 %1678  ;;  %vm1764_vm15 = vcmp.eq.s32.totalorder %v3225_v54, 1 }
  0xaf   : > { %vm1767_vm9 = vcmp.eq.s32.totalorder %v3227_v62, 1 }
  0xb1   : > { %v3229_v5 = vpop.permute.xlu0 %1675 }
  0xb2   : > { %v3231_v21 = vpop.permute.xlu1 %1684  ;;  %vm1766_vm7 = vcmp.eq.s32.totalorder %v3229_v5, 1 }
  0xb3   : > { %vm1769_vm8 = vcmp.eq.s32.totalorder %v3231_v21, 1 }
  0xb5   : > { %v3233_v33 = vpop.permute.xlu0 %1681 }
  0xb6   : > { %v3235_v2 = vpop.permute.xlu1 %1690  ;;  %vm1768_vm5 = vcmp.eq.s32.totalorder %v3233_v33, 1 }
  0xb9   : > { %v3237_v35 = vpop.permute.xlu0 %1687 }
  0xba   : > { %v3239_v37 = vpop.permute.xlu1 %1696  ;;  %vm1770_vm11 = vcmp.eq.s32.totalorder %v3237_v35, 1 }
  0xbb   : > { %vm1773_vm12 = vcmp.eq.s32.totalorder %v3239_v37, 1 }
  0xbd   : > { %v3241_v48 = vpop.permute.xlu0 %1693 }
  0xbe   : > { %v3243_v14 = vpop.permute.xlu1 %1702  ;;  %vm1772_vm10 = vcmp.eq.s32.totalorder %v3241_v48, 1 }
  0xc1   : > { %v3245_v18 = vpop.permute.xlu0 %1699 }
  0xc2   : > { %v3256_v25 = vpop.permute.xlu1 %1708 }
  0xc5   : > { %v3265_v28 = vpop.permute.xlu0 %1705 }
 0x12f   : > { %v2471_v42 = vpop.f32.mrb[0].mxu0 }
 0x130   : > { %v1284_v57 = vpop.f32.mrb[1].mxu0 }
 0x131   : > { %v2472_v3 = vpop.f32.mrb[2].mxu0 }
 0x132   : > { %v1287_v7 = vpop.f32.mrb[3].mxu0 }
 0x137   : > { %v2387_v31 = vpop.f32.mrb[0].mxu1  ;;  %v2475_v60 = vpop.f32.mrb[4].mxu0 }
 0x138   : > { %v2505_v50 = vadd.f32 %v2471_v42, %v2387_v31  ;;  %v832_v56 = vpop.f32.mrb[1].mxu1  ;;  %v1300_v40 = vpop.f32.mrb[5].mxu0 }
 0x139   : > { %v2506_v9 = vadd.f32 %v1284_v57, %v832_v56  ;;  %v2388_v30 = vpop.f32.mrb[2].mxu1  ;;  %v2476_v4 = vpop.f32.mrb[6].mxu0 }
 0x13a   : > { %v1472_v63 = vadd.f32 %v2505_v50, %v3250_v38  ;;  %v2507_v0 = vadd.f32 %v2472_v3, %v2388_v30  ;;  %v835_v8 = vpop.f32.mrb[3].mxu1  ;;  %v1303_v16 = vpop.f32.mrb[7].mxu0 }
 0x13b   : > { %v1470_v12 = vadd.f32 %v2506_v9, %v3250_v38  ;;  %v2508_v13 = vadd.f32 %v1287_v7, %v835_v8  ;;  %v3281_v7 = vpop.permute.xlu1 %1714  ;;  %v3284_v56 = vpop.permute.xlu0 %1711 }
 0x13c   : > { %v1508_v17 = vmax.f32 %v1472_v63, 0.0  ;;  %v1473_v23 = vadd.f32 %v2507_v0, %v3250_v38 }
 0x13d   : > { %v1506_v20 = vmax.f32 %v1470_v12, 0.0  ;;  %v1471_v22 = vadd.f32 %v2508_v13, %v3250_v38 }
 0x13e   : > { %v1796_v26 = vsel %vm1760_vm0, %v1508_v17, 0.0  ;;  %v1509_v34 = vmax.f32 %v1473_v23, 0.0  ;;  %vm1771_vm0 = vcmp.eq.s32.totalorder %v3235_v2, 1 }
 0x13f   : > { %v2219_v36 = vpack.c.bf16 %v1796_v26, %v1796_v26  ;;  %v1794_v39 = vsel %vm1758_vm6, %v1506_v20, 0.0  ;;  %v1507_v45 = vmax.f32 %v1471_v22, 0.0  ;;  %v2391_v44 = vpop.f32.mrb[4].mxu1  ;;  %v2479_v32 = vpop.f32.mrb[8].mxu0  ;;  %vm1776_vm6 = vcmp.eq.s32.totalorder %v3265_v28, 1 }
 0x140   : > { %v2217_v41 = vpack.c.bf16 %v1794_v39, %v1794_v39  ;;  %v1797_v15 = vsel %vm1761_vm1, %v1509_v34, 0.0  ;;  %v2509_v49 = vadd.f32 %v2475_v60, %v2391_v44  ;;  %v848_v46 = vpop.f32.mrb[5].mxu1  ;;  %v1316_v11 = vpop.f32.mrb[9].mxu0  ;;  %vm1774_vm1 = vcmp.eq.s32.totalorder %v3245_v18, 1 }
 0x141   : > { %1977 = vst.msk [vmem:[%s3263_s5 + $0x8] sm:$0xf] %vm1974_vm13, %v2219_v36  ;;  %v2220_v52 = vpack.c.bf16 %v1797_v15, %v1797_v15  ;;  %v1795_v10 = vsel %vm1759_vm14, %v1507_v45, 0.0  ;;  %v2510_v53 = vadd.f32 %v1300_v40, %v848_v46  ;;  %v2392_v51 = vpop.f32.mrb[6].mxu1  ;;  %v2480_v61 = vpop.f32.mrb[10].mxu0  ;;  %vm1777_vm14 = vcmp.eq.s32.totalorder %v3256_v25, 1 }
 0x142   : > { %1975 = vst.msk [vmem:[%s3263_s5] sm:$0xf] %vm1974_vm13, %v2217_v41  ;;  %v2218_v1 = vpack.c.bf16 %v1795_v10, %v1795_v10  ;;  %v1476_v55 = vadd.f32 %v2509_v49, %v3250_v38  ;;  %v2511_v58 = vadd.f32 %v2476_v4, %v2392_v51  ;;  %v851_v59 = vpop.f32.mrb[7].mxu1  ;;  %v1319_v24 = vpop.f32.mrb[11].mxu0 }
 0x143   : > { %1978 = vst.msk [vmem:[%s3263_s5 + $0xc] sm:$0xf] %vm1974_vm13, %v2220_v52  ;;  %v1474_v6 = vadd.f32 %v2510_v53, %v3250_v38  ;;  %v2512_v19 = vadd.f32 %v1303_v16, %v851_v59  ;;  %v3301_v15 = vpop.permute.xlu1 %1720 }
 0x144   : > { %1976 = vst.msk [vmem:[%s3263_s5 + $0x4] sm:$0xf] %vm1974_vm13, %v2218_v1  ;;  %v1512_v29 = vmax.f32 %v1476_v55, 0.0  ;;  %v1477_v42 = vadd.f32 %v2511_v58, %v3250_v38 }
 0x145   : > { %v1510_v57 = vmax.f32 %v1474_v6, 0.0  ;;  %v1475_v3 = vadd.f32 %v2512_v19, %v3250_v38 }
 0x146   : > { %v1800_v31 = vsel %vm1764_vm15, %v1512_v29, 0.0  ;;  %v1513_v50 = vmax.f32 %v1477_v42, 0.0  ;;  %vm1775_vm15 = vcmp.eq.s32.totalorder %v3243_v14, 1 }
 0x147   : > { %v2223_v60 = vpack.c.bf16 %v1800_v31, %v1800_v31  ;;  %v1798_v9 = vsel %vm1762_vm2, %v1510_v57, 0.0  ;;  %v1511_v30 = vmax.f32 %v1475_v3, 0.0  ;;  %v2395_v40 = vpop.f32.mrb[8].mxu1  ;;  %v2483_v8 = vpop.f32.mrb[12].mxu0 }
 0x148   : > { %v2221_v54 = vpack.c.bf16 %v1798_v9, %v1798_v9  ;;  %v1801_v63 = vsel %vm1765_vm3, %v1513_v50, 0.0  ;;  %v2513_v27 = vadd.f32 %v2479_v32, %v2395_v40  ;;  %v864_v0 = vpop.f32.mrb[9].mxu1  ;;  %v1332_v16 = vpop.f32.mrb[13].mxu0  ;;  %vm1778_vm3 = vcmp.eq.s32.totalorder %v3284_v56, 1 }
 0x149   : > { %1981 = vst.msk [vmem:[%s3263_s5 + $0x18] sm:$0xf] %vm1974_vm13, %v2223_v60  ;;  %v2224_v4 = vpack.c.bf16 %v1801_v63, %v1801_v63  ;;  %v1799_v47 = vsel %vm1763_vm4, %v1511_v30, 0.0  ;;  %v2514_v12 = vadd.f32 %v1316_v11, %v864_v0  ;;  %v2396_v13 = vpop.f32.mrb[10].mxu1  ;;  %v2484_v22 = vpop.f32.mrb[14].mxu0  ;;  %vm1781_vm4 = vcmp.eq.s32.totalorder %v3301_v15, 1 }
 0x14a   : > { %1979 = vst.msk [vmem:[%s3263_s5 + $0x10] sm:$0xf] %vm1974_vm13, %v2221_v54  ;;  %v2222_v17 = vpack.c.bf16 %v1799_v47, %v1799_v47  ;;  %v1480_v23 = vadd.f32 %v2513_v27, %v3250_v38  ;;  %v2515_v43 = vadd.f32 %v2480_v61, %v2396_v13  ;;  %v867_v20 = vpop.f32.mrb[11].mxu1  ;;  %v1335_v36 = vpop.f32.mrb[15].mxu0 }
 0x14b   : > { %1982 = vst.msk [vmem:[%s3263_s5 + $0x1c] sm:$0xf] %vm1974_vm13, %v2224_v4  ;;  %v1478_v26 = vadd.f32 %v2514_v12, %v3250_v38  ;;  %v2516_v34 = vadd.f32 %v1319_v24, %v867_v20  ;;  %v3304_v32 = vpop.permute.xlu0 %1717  ;;  %v3321_v40 = vpop.permute.xlu1 %1726 }
 0x14c   : > { %1980 = vst.msk [vmem:[%s3263_s5 + $0x14] sm:$0xf] %vm1974_vm13, %v2222_v17  ;;  %v1516_v39 = vmax.f32 %v1480_v23, 0.0  ;;  %v1481_v45 = vadd.f32 %v2515_v43, %v3250_v38  ;;  %vm1780_vm2 = vcmp.eq.s32.totalorder %v3304_v32, 1 }
 0x14d   : > { %v1514_v44 = vmax.f32 %v1478_v26, 0.0  ;;  %v1479_v41 = vadd.f32 %v2516_v34, %v3250_v38 }
 0x14e   : > { %v1804_v49 = vsel %vm1768_vm5, %v1516_v39, 0.0  ;;  %v1517_v46 = vmax.f32 %v1481_v45, 0.0  ;;  %vm1779_vm5 = vcmp.eq.s32.totalorder %v3281_v7, 1 }
 0x14f   : > { %v2227_v52 = vpack.c.bf16 %v1804_v49, %v1804_v49  ;;  %v1802_v10 = vsel %vm1766_vm7, %v1514_v44, 0.0  ;;  %v1515_v53 = vmax.f32 %v1479_v41, 0.0  ;;  %v2399_v51 = vpop.f32.mrb[12].mxu1  ;;  %v2487_v55 = vpop.f32.mrb[16].mxu0 }
 0x150   : > { %v2225_v33 = vpack.c.bf16 %v1802_v10, %v1802_v10  ;;  %v1805_v11 = vsel %vm1769_vm8, %v1517_v46, 0.0  ;;  %v2517_v5 = vadd.f32 %v2483_v8, %v2399_v51  ;;  %v880_v1 = vpop.f32.mrb[13].mxu1  ;;  %v1348_v6 = vpop.f32.mrb[17].mxu0 }
 0x151   : > { %1985 = vst.msk [vmem:[%s3263_s5 + $0x28] sm:$0xf] %vm1974_vm13, %v2227_v52  ;;  %v2228_v58 = vpack.c.bf16 %v1805_v11, %v1805_v11  ;;  %v1803_v21 = vsel %vm1767_vm9, %v1515_v53, 0.0  ;;  %v2518_v59 = vadd.f32 %v1332_v16, %v880_v1  ;;  %v2400_v61 = vpop.f32.mrb[14].mxu1  ;;  %v2488_v42 = vpop.f32.mrb[18].mxu0 }
 0x152   : > { %1983 = vst.msk [vmem:[%s3263_s5 + $0x20] sm:$0xf] %vm1974_vm13, %v2225_v33  ;;  %v2226_v19 = vpack.c.bf16 %v1803_v21, %v1803_v21  ;;  %v1484_v24 = vadd.f32 %v2517_v5, %v3250_v38  ;;  %v2519_v62 = vadd.f32 %v2484_v22, %v2400_v61  ;;  %v883_v29 = vpop.f32.mrb[15].mxu1  ;;  %v1351_v31 = vpop.f32.mrb[19].mxu0 }
 0x153   : > { %1986 = vst.msk [vmem:[%s3263_s5 + $0x2c] sm:$0xf] %vm1974_vm13, %v2228_v58  ;;  %v1482_v57 = vadd.f32 %v2518_v59, %v3250_v38  ;;  %v2520_v3 = vadd.f32 %v1335_v36, %v883_v29  ;;  %v3324_v27 = vpop.permute.xlu0 %1723  ;;  %v3341_v10 = vpop.permute.xlu1 %1732 }
 0x154   : > { %1984 = vst.msk [vmem:[%s3263_s5 + $0x24] sm:$0xf] %vm1974_vm13, %v2226_v19  ;;  %v1520_v50 = vmax.f32 %v1484_v24, 0.0  ;;  %v1485_v60 = vadd.f32 %v2519_v62, %v3250_v38  ;;  %vm1782_vm8 = vcmp.eq.s32.totalorder %v3324_v27, 1  ;;  %vm1785_vm9 = vcmp.eq.s32.totalorder %v3341_v10, 1 }
 0x155   : > { %v1518_v9 = vmax.f32 %v1482_v57, 0.0  ;;  %v1483_v30 = vadd.f32 %v2520_v3, %v3250_v38 }
 0x156   : > { %v1808_v54 = vsel %vm1772_vm10, %v1520_v50, 0.0  ;;  %v1521_v63 = vmax.f32 %v1485_v60, 0.0  ;;  %vm1783_vm10 = vcmp.eq.s32.totalorder %v3321_v40, 1 }
 0x157   : > { %v2231_v0 = vpack.c.bf16 %v1808_v54, %v1808_v54  ;;  %v1806_v8 = vsel %vm1770_vm11, %v1518_v9, 0.0  ;;  %v1519_v4 = vmax.f32 %v1483_v30, 0.0  ;;  %v2403_v47 = vpop.f32.mrb[16].mxu1  ;;  %v2491_v16 = vpop.f32.mrb[20].mxu0 }
 0x158   : > { %v2229_v48 = vpack.c.bf16 %v1806_v8, %v1806_v8  ;;  %v1809_v12 = vsel %vm1773_vm12, %v1521_v63, 0.0  ;;  %v2521_v35 = vadd.f32 %v2487_v55, %v2403_v47  ;;  %v896_v13 = vpop.f32.mrb[17].mxu1  ;;  %v1364_v20 = vpop.f32.mrb[21].mxu0 }
 0x159   : > { %1989 = vst.msk [vmem:[%s3263_s5 + $0x38] sm:$0xf] %vm1974_vm13, %v2231_v0  ;;  %v2232_v17 = vpack.c.bf16 %v1809_v12, %v1809_v12  ;;  %v1807_v37 = vsel %vm1771_vm0, %v1519_v4, 0.0  ;;  %v2522_v23 = vadd.f32 %v1348_v6, %v896_v13  ;;  %v2404_v43 = vpop.f32.mrb[18].mxu1  ;;  %v2492_v36 = vpop.f32.mrb[22].mxu0 }
 0x15a   : > { %1987 = vst.msk [vmem:[%s3263_s5 + $0x30] sm:$0xf] %vm1974_vm13, %v2229_v48  ;;  %v2230_v22 = vpack.c.bf16 %v1807_v37, %v1807_v37  ;;  %v1488_v26 = vadd.f32 %v2521_v35, %v3250_v38  ;;  %v2523_v2 = vadd.f32 %v2488_v42, %v2404_v43  ;;  %v899_v34 = vpop.f32.mrb[19].mxu1  ;;  %v1367_v44 = vpop.f32.mrb[23].mxu0 }
 0x15b   : > { %1990 = vst.msk [vmem:[%s3263_s5 + $0x3c] sm:$0xf] %vm1974_vm13, %v2232_v17  ;;  %v1486_v39 = vadd.f32 %v2522_v23, %v3250_v38  ;;  %v2524_v45 = vadd.f32 %v1351_v31, %v899_v34  ;;  %v3344_v33 = vpop.permute.xlu0 %1729  ;;  %v3361_v63 = vpop.permute.xlu1 %1738 }
 0x15c   : > { %1988 = vst.msk [vmem:[%s3263_s5 + $0x34] sm:$0xf] %vm1974_vm13, %v2230_v22  ;;  %v1524_v41 = vmax.f32 %v1488_v26, 0.0  ;;  %v1489_v49 = vadd.f32 %v2523_v2, %v3250_v38  ;;  %vm1784_vm7 = vcmp.eq.s32.totalorder %v3344_v33, 1 }
 0x15d   : > { %v1522_v46 = vmax.f32 %v1486_v39, 0.0  ;;  %v1487_v52 = vadd.f32 %v2524_v45, %v3250_v38 }
 0x15e   : > { %v1812_v53 = vsel %vm1776_vm6, %v1524_v41, 0.0  ;;  %v1525_v51 = vmax.f32 %v1489_v49, 0.0  ;;  %vm1787_vm6 = vcmp.eq.s32.totalorder %v3361_v63, 1 }
 0x15f   : > { %v2235_v11 = vpack.c.bf16 %v1812_v53, %v1812_v53  ;;  %v1810_v5 = vsel %vm1774_vm1, %v1522_v46, 0.0  ;;  %v1523_v1 = vmax.f32 %v1487_v52, 0.0  ;;  %v2407_v55 = vpop.f32.mrb[20].mxu1  ;;  %v2495_v59 = vpop.f32.mrb[24].mxu0 }
 0x160   : > { %v2233_v28 = vpack.c.bf16 %v1810_v5, %v1810_v5  ;;  %v1813_v58 = vsel %vm1777_vm14, %v1525_v51, 0.0  ;;  %v2525_v18 = vadd.f32 %v2491_v16, %v2407_v55  ;;  %v912_v21 = vpop.f32.mrb[21].mxu1  ;;  %v1380_v24 = vpop.f32.mrb[25].mxu0 }
 0x161   : > { %1993 = vst.msk [vmem:[%s3263_s5 + $0x48] sm:$0xf] %vm1974_vm13, %v2235_v11  ;;  %v2236_v61 = vpack.c.bf16 %v1813_v58, %v1813_v58  ;;  %v1811_v25 = vsel %vm1775_vm15, %v1523_v1, 0.0  ;;  %v2526_v6 = vadd.f32 %v1364_v20, %v912_v21  ;;  %v2408_v19 = vpop.f32.mrb[22].mxu1  ;;  %v2496_v57 = vpop.f32.mrb[26].mxu0 }
 0x162   : > { %1991 = vst.msk [vmem:[%s3263_s5 + $0x40] sm:$0xf] %vm1974_vm13, %v2233_v28  ;;  %v2234_v62 = vpack.c.bf16 %v1811_v25, %v1811_v25  ;;  %v1492_v29 = vadd.f32 %v2525_v18, %v3250_v38  ;;  %v2527_v14 = vadd.f32 %v2492_v36, %v2408_v19  ;;  %v915_v42 = vpop.f32.mrb[23].mxu1  ;;  %v1383_v50 = vpop.f32.mrb[27].mxu0 }
 0x163   : > { %1994 = vst.msk [vmem:[%s3263_s5 + $0x4c] sm:$0xf] %vm1974_vm13, %v2236_v61  ;;  %v1490_v3 = vadd.f32 %v2526_v6, %v3250_v38  ;;  %v2528_v31 = vadd.f32 %v1367_v44, %v915_v42  ;;  %v3364_v4 = vpop.permute.xlu0 %1735  ;;  %v1745_v11 = vpop.permute.xlu1 %1744 }
 0x164   : > { %1992 = vst.msk [vmem:[%s3263_s5 + $0x44] sm:$0xf] %vm1974_vm13, %v2234_v62  ;;  %v1528_v60 = vmax.f32 %v1492_v29, 0.0  ;;  %v1493_v9 = vadd.f32 %v2527_v14, %v3250_v38  ;;  %vm1786_vm12 = vcmp.eq.s32.totalorder %v3364_v4, 1  ;;  %vm1789_vm0 = vcmp.eq.s32.totalorder %v1745_v11, 1 }
 0x165   : > { %v1526_v30 = vmax.f32 %v1490_v3, 0.0  ;;  %v1491_v54 = vadd.f32 %v2528_v31, %v3250_v38 }
 0x166   : > { %v1816_v0 = vsel %vm1780_vm2, %v1528_v60, 0.0  ;;  %v1529_v8 = vmax.f32 %v1493_v9, 0.0 }
 0x167   : > { %v2239_v47 = vpack.c.bf16 %v1816_v0, %v1816_v0  ;;  %v1814_v48 = vsel %vm1778_vm3, %v1526_v30, 0.0  ;;  %v1527_v12 = vmax.f32 %v1491_v54, 0.0  ;;  %v2411_v35 = vpop.f32.mrb[24].mxu1  ;;  %v2499_v17 = vpop.f32.mrb[28].mxu0 }
 0x168   : > { %v2237_v32 = vpack.c.bf16 %v1814_v48, %v1814_v48  ;;  %v1817_v13 = vsel %vm1781_vm4, %v1529_v8, 0.0  ;;  %v2529_v56 = vadd.f32 %v2495_v59, %v2411_v35  ;;  %v928_v16 = vpop.f32.mrb[25].mxu1  ;;  %v1396_v20 = vpop.f32.mrb[29].mxu0 }
 0x169   : > { %1997 = vst.msk [vmem:[%s3263_s5 + $0x58] sm:$0xf] %vm1974_vm13, %v2239_v47  ;;  %v2240_v37 = vpack.c.bf16 %v1817_v13, %v1817_v13  ;;  %v1815_v15 = vsel %vm1779_vm5, %v1527_v12, 0.0  ;;  %v2530_v23 = vadd.f32 %v1380_v24, %v928_v16  ;;  %v2412_v43 = vpop.f32.mrb[26].mxu1  ;;  %v2500_v34 = vpop.f32.mrb[30].mxu0 }
 0x16a   : > { %1995 = vst.msk [vmem:[%s3263_s5 + $0x50] sm:$0xf] %vm1974_vm13, %v2237_v32  ;;  %v2238_v22 = vpack.c.bf16 %v1815_v15, %v1815_v15  ;;  %v1496_v26 = vadd.f32 %v2529_v56, %v3250_v38  ;;  %v2531_v7 = vadd.f32 %v2496_v57, %v2412_v43  ;;  %v931_v2 = vpop.f32.mrb[27].mxu1  ;;  %v1399_v45 = vpop.f32.mrb[31].mxu0 }
 0x16b   : > { %1998 = vst.msk [vmem:[%s3263_s5 + $0x5c] sm:$0xf] %vm1974_vm13, %v2240_v37  ;;  %v1494_v36 = vadd.f32 %v2530_v23, %v3250_v38  ;;  %v2532_v39 = vadd.f32 %v1383_v50, %v931_v2  ;;  %v1742_v52 = vpop.permute.xlu0 %1741  ;;  %v1751_v30 = vpop.permute.xlu1 %1750 }
 0x16c   : > { %1996 = vst.msk [vmem:[%s3263_s5 + $0x54] sm:$0xf] %vm1974_vm13, %v2238_v22  ;;  %v1532_v44 = vmax.f32 %v1496_v26, 0.0  ;;  %v1497_v41 = vadd.f32 %v2531_v7, %v3250_v38  ;;  %vm1788_vm11 = vcmp.eq.s32.totalorder %v1742_v52, 1  ;;  %vm1791_vm2 = vcmp.eq.s32.totalorder %v1751_v30, 1 }
 0x16d   : > { %v1530_v49 = vmax.f32 %v1494_v36, 0.0  ;;  %v1495_v46 = vadd.f32 %v2532_v39, %v3250_v38 }
 0x16e   : > { %v1820_v53 = vsel %vm1784_vm7, %v1532_v44, 0.0  ;;  %v1533_v51 = vmax.f32 %v1497_v41, 0.0 }
 0x16f   : > { %v2243_v5 = vpack.c.bf16 %v1820_v53, %v1820_v53  ;;  %v1818_v1 = vsel %vm1782_vm8, %v1530_v49, 0.0  ;;  %v1531_v55 = vmax.f32 %v1495_v46, 0.0  ;;  %v2415_v28 = vpop.f32.mrb[28].mxu1  ;;  %v2503_v27 = vpop.f32.mrb[32].mxu0 }
 0x170   : > { %v2241_v33 = vpack.c.bf16 %v1818_v1, %v1818_v1  ;;  %v1821_v58 = vsel %vm1785_vm9, %v1533_v51, 0.0  ;;  %v2533_v18 = vadd.f32 %v2499_v17, %v2415_v28  ;;  %v944_v21 = vpop.f32.mrb[29].mxu1  ;;  %v1412_v6 = vpop.f32.mrb[33].mxu0 }
 0x171   : > { %2001 = vst.msk [vmem:[%s3263_s5 + $0x68] sm:$0xf] %vm1974_vm13, %v2243_v5  ;;  %v2244_v59 = vpack.c.bf16 %v1821_v58, %v1821_v58  ;;  %v1819_v61 = vsel %vm1783_vm10, %v1531_v55, 0.0  ;;  %v2534_v10 = vadd.f32 %v1396_v20, %v944_v21  ;;  %v2416_v25 = vpop.f32.mrb[30].mxu1  ;;  %v2504_v29 = vpop.f32.mrb[34].mxu0 }
 0x172   : > { %1999 = vst.msk [vmem:[%s3263_s5 + $0x60] sm:$0xf] %vm1974_vm13, %v2241_v33  ;;  %v2242_v19 = vpack.c.bf16 %v1819_v61, %v1819_v61  ;;  %v1500_v24 = vadd.f32 %v2533_v18, %v3250_v38  ;;  %v2535_v40 = vadd.f32 %v2500_v34, %v2416_v25  ;;  %v947_v62 = vpop.f32.mrb[31].mxu1  ;;  %v1415_v57 = vpop.f32.mrb[35].mxu0 }
 0x173   : > { %2002 = vst.msk [vmem:[%s3263_s5 + $0x6c] sm:$0xf] %vm1974_vm13, %v2244_v59  ;;  %v1498_v14 = vadd.f32 %v2534_v10, %v3250_v38  ;;  %v2536_v42 = vadd.f32 %v1399_v45, %v947_v62  ;;  %v1748_v3 = vpop.permute.xlu0 %1747  ;;  %v1757_v7 = vpop.permute.xlu1 %1756 }
 0x174   : > { %2000 = vst.msk [vmem:[%s3263_s5 + $0x64] sm:$0xf] %vm1974_vm13, %v2242_v19  ;;  %v1536_v31 = vmax.f32 %v1500_v24, 0.0  ;;  %v1501_v50 = vadd.f32 %v2535_v40, %v3250_v38  ;;  %vm1790_vm14 = vcmp.eq.s32.totalorder %v1748_v3, 1  ;;  %vm1793_vm15 = vcmp.eq.s32.totalorder %v1757_v7, 1 }
 0x175   : > { %v1534_v60 = vmax.f32 %v1498_v14, 0.0  ;;  %v1499_v9 = vadd.f32 %v2536_v42, %v3250_v38 }
 0x176   : > { %v1824_v54 = vsel %vm1788_vm11, %v1536_v31, 0.0  ;;  %v1537_v0 = vmax.f32 %v1501_v50, 0.0 }
 0x177   : > { %v2247_v8 = vpack.c.bf16 %v1824_v54, %v1824_v54  ;;  %v1822_v47 = vsel %vm1786_vm12, %v1534_v60, 0.0  ;;  %v1535_v48 = vmax.f32 %v1499_v9, 0.0  ;;  %v2419_v12 = vpop.f32.mrb[32].mxu1  ;;  %v1754_v15 = vpop.permute.xlu0 %1753 }
 0x178   : > { %v2245_v35 = vpack.c.bf16 %v1822_v47, %v1822_v47  ;;  %v1825_v32 = vsel %vm1789_vm0, %v1537_v0, 0.0  ;;  %v2537_v13 = vadd.f32 %v2503_v27, %v2419_v12  ;;  %v960_v56 = vpop.f32.mrb[33].mxu1  ;;  %vm1792_vm1 = vcmp.eq.s32.totalorder %v1754_v15, 1 }
 0x179   : > { %2005 = vst.msk [vmem:[%s3263_s5 + $0x78] sm:$0xf] %vm1974_vm13, %v2247_v8  ;;  %v2248_v4 = vpack.c.bf16 %v1825_v32, %v1825_v32  ;;  %v1823_v16 = vsel %vm1787_vm6, %v1535_v48, 0.0  ;;  %v2538_v17 = vadd.f32 %v1412_v6, %v960_v56  ;;  %v2420_v37 = vpop.f32.mrb[34].mxu1 }
 0x17a   : > { %2003 = vst.msk [vmem:[%s3263_s5 + $0x70] sm:$0xf] %vm1974_vm13, %v2245_v35  ;;  %v2246_v23 = vpack.c.bf16 %v1823_v16, %v1823_v16  ;;  %v1504_v43 = vadd.f32 %v2537_v13, %v3250_v38  ;;  %v2539_v20 = vadd.f32 %v2504_v29, %v2420_v37  ;;  %v963_v63 = vpop.f32.mrb[35].mxu1 }
 0x17b   : > { %2006 = vst.msk [vmem:[%s3263_s5 + $0x7c] sm:$0xf] %vm1974_vm13, %v2248_v4  ;;  %v1502_v22 = vadd.f32 %v2538_v17, %v3250_v38  ;;  %v2540_v26 = vadd.f32 %v1415_v57, %v963_v63 }
 0x17c   : > { %2004 = vst.msk [vmem:[%s3263_s5 + $0x74] sm:$0xf] %vm1974_vm13, %v2246_v23  ;;  %v1540_v2 = vmax.f32 %v1504_v43, 0.0  ;;  %v1505_v34 = vadd.f32 %v2539_v20, %v3250_v38 }
 0x17d   : > { %v1538_v36 = vmax.f32 %v1502_v22, 0.0  ;;  %v1503_v39 = vadd.f32 %v2540_v26, %v3250_v38 }
 0x17e   : > { %v1828_v45 = vsel %vm1792_vm1, %v1540_v2, 0.0  ;;  %v1541_v44 = vmax.f32 %v1505_v34, 0.0 }
 0x17f   : > { %v2251_v41 = vpack.c.bf16 %v1828_v45, %v1828_v45  ;;  %v1826_v49 = vsel %vm1790_vm14, %v1538_v36, 0.0  ;;  %v1539_v46 = vmax.f32 %v1503_v39, 0.0 }
 0x180   : > { %v2249_v52 = vpack.c.bf16 %v1826_v49, %v1826_v49  ;;  %v1829_v53 = vsel %vm1793_vm15, %v1541_v44, 0.0 }
 0x181   : > { %2009 = vst.msk [vmem:[%s3263_s5 + $0x88] sm:$0xf] %vm1974_vm13, %v2251_v41  ;;  %v2252_v51 = vpack.c.bf16 %v1829_v53, %v1829_v53  ;;  %v1827_v11 = vsel %vm1791_vm2, %v1539_v46, 0.0 }
 0x182   : > { %2007 = vst.msk [vmem:[%s3263_s5 + $0x80] sm:$0xf] %vm1974_vm13, %v2249_v52  ;;  %v2250_v5 = vpack.c.bf16 %v1827_v11, %v1827_v11 }
 0x183   : > { %2010 = vst.msk [vmem:[%s3263_s5 + $0x8c] sm:$0xf] %vm1974_vm13, %v2252_v51 }
 0x184   : > { %2008 = vst.msk [vmem:[%s3263_s5 + $0x84] sm:$0xf] %vm1974_vm13, %v2250_v5 }
 0x185 PF: > { %s14_s15 = sadd.s32 1, %s2662_s15  }
 0x186   : > { %p11_p4 = scmp.ge.s32.totalorder %s14_s15, 4  }
 0x188   :  { %13 = sbr.rel (!%p11_p4) target bundleno = 1 (0x1), region = 66 }

// kernel: dmlab_encoder_forward.6
= control target key start
LH: loop header
LB: loop body
LE: loop exit
PB: predicated region body
PF: predicated region fallthrough
CT: control target
= control target key end

     0   :  { %s1371_s15 = smov 0   ;;  %s1624_s0 = inlined_call_operand.vmem [shape: bf16[128,128], index: 0, kind: input, shape index: {}]   ;;  %s1625_s1 = inlined_call_operand.vmem [shape: bf16[512,64], index: 1, kind: input, shape index: {}]   ;;  %s1626_s2 = inlined_call_operand.vmem [shape: f32[1,64], index: 2, kind: input, shape index: {}]   ;;  %s1627_s3 = inlined_call_operand.vmem [shape: f32[64,1], index: 3, kind: input, shape index: {}]   ;;  %s1628_s4 = inlined_call_operand.vmem [shape: bf16[128,64], index: 4, kind: output, shape index: {}]  }
   0x1 LB: > { %s1048_s16 = sadd.s32 4294967295, %s1343_s15   ;;  %p1052_p0 = scmp.ge.s32.totalorder %s1343_s15, 1  ;;  %s1343_s15 = sphi %s1371_s15, %s14_s15  }
   0x2   : > { %p163_p1 = scmp.lt.s32.totalorder %s1343_s15, 3 }
   0x4   : > { %p164_p2 = pnand %p1052_p0, %p163_p1 }
   0x5   : > { %v1296_v0 = vld [vmem:[%s1625_s1 + $0x40] sm:$0xff] (!%p164_p2)   ;;  %s1053_s19 = sshll.u32 (!%p164_p2), %s1048_s16, 3  ;;  %v1298_v2 = vld [vmem:[%s1625_s1 + $0x48] sm:$0xff] (!%p164_p2)   ;;  %v1300_v4 = vld [vmem:[%s1625_s1 + $0x50] sm:$0xff] (!%p164_p2)   ;;  %v1345_v6 = vmov (!%p164_p2), 0   ;;  %vm288_vm1 = vcmask (!%p164_p2), 1047552  }
   0x6   : > { %167 = sbr.rel (%p164_p2) target bundleno = 304 (0x130), region = 36  ;;  %v1297_v1 = vld [vmem:[%s1625_s1 + $0x80] sm:$0xff] (!%p164_p2)   ;;  %1165 = vmatprep.subr.bf16.mxu1 (!%p164_p2), %v1296_v0  ;;  %p190_p3 = scmp.lt.s32.totalorder (!%p164_p2), %s1053_s19, 15  ;;  %v1299_v3 = vld [vmem:[%s1625_s1 + $0x88] sm:$0xff] (!%p164_p2)   ;;  %v1301_v5 = vld [vmem:[%s1625_s1 + $0x90] sm:$0xff] (!%p164_p2)   ;;  %1295 = vset.pattern.permute.xlu1 (!%p164_p2), %v1345_v6  ;;  %vm544_vm3 = vcmask (!%p164_p2), 1043456  }
   0x7   : > { %1213 = vmatprep.subr.bf16.mxu0 (!%p164_p2), %v1297_v1  ;;  %1166 = vmatpush3.bf16.msra.mxu1 (!%p164_p2), %v1296_v0  ;;  %v1302_v7 = vld [vmem:[%s1625_s1 + $0x58] sm:$0xff] (!%p164_p2)   ;;  %v1304_v9 = vld [vmem:[%s1625_s1 + $0x60] sm:$0xff] (!%p164_p2)   ;;  %v1306_v11 = vld [vmem:[%s1625_s1 + $0x68] sm:$0xff] (!%p164_p2)   ;;  %vm246_vm0 = vsmask.f32 (!%p164_p2), 7424 }
   0x8   : > { %1214 = vmatpush3.bf16.msra.mxu0 (!%p164_p2), %v1297_v1  ;;  %1167 = vmatprep.subr.bf16.mxu1 (!%p164_p2), %v1298_v2  ;;  %v1303_v8 = vld [vmem:[%s1625_s1 + $0x98] sm:$0xff] (!%p164_p2)   ;;  %v1305_v10 = vld [vmem:[%s1625_s1 + $0xa0] sm:$0xff] (!%p164_p2)   ;;  %v1307_v15 = vld [vmem:[%s1625_s1 + $0xa8] sm:$0xff] (!%p164_p2)   ;;  %vm724_vm12 = vsmask.f32 (!%p164_p2), 3328 }
   0x9   : > { %1215 = vmatprep.subr.bf16.mxu0 (!%p164_p2), %v1299_v3  ;;  %1294 = vset.pattern.permute.xlu0 (!%p164_p2), %v1345_v6  ;;  %v1308_v22 = vld [vmem:[%s1625_s1 + $0x70] sm:$0xff] (!%p164_p2)   ;;  %v1310_v33 = vld [vmem:[%s1625_s1 + $0x78] sm:$0xff] (!%p164_p2)   ;;  %v1314_v38 = vld [vmem:[%s1625_s1] sm:$0xff] (!%p164_p2)  }
   0xa   : > { %v1309_v26 = vld [vmem:[%s1625_s1 + $0xb0] sm:$0xff] (!%p164_p2)   ;;  %v1311_v34 = vld [vmem:[%s1625_s1 + $0xb8] sm:$0xff] (!%p164_p2)   ;;  %v1316_v40 = vld [vmem:[%s1625_s1 + $0xc0] sm:$0xff] (!%p164_p2)  }
   0xb   : > { %1168 = vmatpush3.bf16.msra.mxu1 (!%p164_p2), %v1298_v2  ;;  %v1319_v47 = vld [vmem:[%s1625_s1 + $0x8] sm:$0xff] (!%p164_p2)   ;;  %v1321_v58 = vld [vmem:[%s1625_s1 + $0x10] sm:$0xff] (!%p164_p2)   ;;  %vm1497_vm2 = vmand (!%p164_p2), %vm288_vm1, %vm246_vm0 }
   0xc   : > { %1216 = vmatpush3.bf16.msra.mxu0 (!%p164_p2), %v1299_v3  ;;  %1169 = vmatprep.subr.bf16.mxu1 (!%p164_p2), %v1300_v4  ;;  %v1320_v50 = vld [vmem:[%s1625_s1 + $0xc8] sm:$0xff] (!%p164_p2)   ;;  %v889_v63 = vld [vmem:[%s1627_s3 + $0x10] sm:$0xff] (!%p164_p2)  ;;  %v887_v1 = vld [vmem:[%s1627_s3] sm:$0xff] (!%p164_p2) }
   0xd   : > { %s1632_s19 = smov (!%p190_p3, %s1053_s19), 15  ;;  %1217 = vmatprep.subr.bf16.mxu0 %v1301_v5  ;;  %v1322_v0 = vld [vmem:[%s1625_s1 + $0xd0] sm:$0xff]   ;;  %vm897_vm4 = vcmp.gt.f32.partialorder %v889_v63, 0.5  ;;  %v890_v2 = vld [vmem:[%s1627_s3 + $0x18] sm:$0xff]  ;;  %vm895_vm5 = vcmp.gt.f32.partialorder %v887_v1, 0.5  ;;  %vm725_vm13 = vmand %vm544_vm3, %vm724_vm12 }
   0xe   : > { %s1054_s8 = sshll.u32 %s1632_s19, 2  ;;  %vm898_vm6 = vcmp.gt.f32.partialorder %v890_v2, 0.5 }
   0xf   : > { %1170 = vmatpush3.bf16.msra.mxu1 %v1300_v4  ;;  %s1419_s16 = scalar_lea.vmem %s1624_s0, %s1054_s8  ;;  %s1603_s11 = scalar_lea.vmem %s1628_s4, %s1054_s8 }
  0x10   : > { %1218 = vmatpush3.bf16.msra.mxu0 %v1301_v5  ;;  %1171 = vmatprep.subr.bf16.mxu1 %v1302_v7  ;;  %v202_v12 = vld [vmem:[%s1419_s16] sm:$0xf]  ;;  %v203_v13 = vld [vmem:[%s1419_s16 + $0x4] sm:$0xf]  ;;  %v204_v14 = vld [vmem:[%s1419_s16 + $0x8] sm:$0xf] }
  0x11   : > { %1219 = vmatprep.subr.bf16.mxu0 %v1303_v8  ;;  %v205_v16 = vld [vmem:[%s1419_s16 + $0xc] sm:$0xf]  ;;  %v1431_v17 = vcombine.low %v202_v12, %v203_v13  ;;  %v1433_v18 = vcombine.low %v203_v13, %v204_v14  ;;  %v206_v24 = vld [vmem:[%s1419_s16 + $0x10] sm:$0xf]  ;;  %v207_v25 = vld [vmem:[%s1419_s16 + $0x14] sm:$0xf]  ;;  %v1061_v39 = vcombine.low %v202_v12, %v202_v12 }
  0x12   : > { %v1435_v19 = vcombine.low %v204_v14, %v205_v16  ;;  %v1451_v28 = vcombine.low %v206_v24, %v207_v25  ;;  %v1473_v44 = vcombine.low %v205_v16, %v206_v24  ;;  %v208_v45 = vld [vmem:[%s1419_s16 + $0x18] sm:$0xf]  ;;  %v209_v46 = vld [vmem:[%s1419_s16 + $0x1c] sm:$0xf]  ;;  %v888_v5 = vld [vmem:[%s1627_s3 + $0x8] sm:$0xff]  ;;  %v903_v13 = vsel %vm895_vm5, 1, %v1345_v6 }
  0x13   : > { %1172 = vmatpush3.bf16.msra.mxu1 %v1302_v7  ;;  %v248_v20 = vshrl.u32 %v1431_v17, 16  ;;  %v250_v21 = vshll.u32 %v1431_v17, 16  ;;  %1229 = vmatprep.mubr.bf16.mxu0 %v1433_v18  ;;  %v688_v42 = vshll.u32 %v1433_v18, 16  ;;  %v1480_v48 = vcombine.low %v208_v45, %v209_v46  ;;  %v1324_v14 = vld [vmem:[%s1625_s1 + $0xd8] sm:$0xff]   ;;  %v891_v16 = vld [vmem:[%s1627_s3 + $0x20] sm:$0xff] }
  0x14   : > { %1220 = vmatpush3.bf16.msra.mxu0 %v1303_v8  ;;  %1173 = vmatprep.subr.bf16.mxu1 %v1304_v9  ;;  %v255_v23 = vshll.u32 %v1435_v19, 16  ;;  %v259_v31 = vshrl.u32 %v1435_v19, 16  ;;  %v263_v32 = vshll.u32 %v1451_v28, 16  ;;  %v267_v41 = vshrl.u32 %v1451_v28, 16 }
  0x15   : > { %1221 = vmatprep.subr.bf16.mxu0 %v1305_v10  ;;  %v252_v27 = vrot.slane %v250_v21, 1  ;;  %v284_v49 = vshll.u32 %v1061_v39, 16  ;;  %v1485_v52 = vcombine.low %v207_v25, %v208_v45  ;;  %v686_v53 = vshrl.u32 %v1433_v18, 16  ;;  %912 = vperm.xlu0 %1294, %v903_v13   ;;  %v1326_v25 = vld [vmem:[%s1625_s1 + $0xe0] sm:$0xff]  }
  0x16   : > { %v257_v29 = vrot.slane %v255_v23, 1  ;;  %v265_v37 = vrot.slane %v263_v32, 1  ;;  %v271_v54 = vshll.u32 %v1480_v48, 16  ;;  %v275_v55 = vshrl.u32 %v1480_v48, 16  ;;  %v1325_v23 = vld [vmem:[%s1625_s1 + $0x20] sm:$0xff]   ;;  %v1328_v32 = vld [vmem:[%s1625_s1 + $0xe8] sm:$0xff]  }
  0x17   : > { %1174 = vmatpush3.bf16.msra.mxu1 %v1304_v9  ;;  %v253_v30 = vor.u32 %v252_v27, %v248_v20  ;;  %v690_v56 = vrot.slane %v688_v42, 1  ;;  %v693_v57 = vshll.u32 %v1473_v44, 16  ;;  %v286_v60 = vrot.slane %v284_v49, 1  ;;  %v893_v27 = vld [vmem:[%s1627_s3 + $0x30] sm:$0xff] }
  0x18   : > { %1222 = vmatpush3.bf16.msra.mxu0 %v1305_v10  ;;  %1175 = vmatprep.subr.bf16.mxu1 %v1306_v11  ;;  %v261_v36 = vor.u32 %v259_v31, %v257_v29  ;;  %v269_v51 = vor.u32 %v267_v41, %v265_v37  ;;  %v273_v59 = vrot.slane %v271_v54, 1  ;;  %v1501_v62 = vcombine.low %v209_v46, %v209_v46  ;;  %v1323_v10 = vld [vmem:[%s1625_s1 + $0x18] sm:$0xff]  }
  0x19   : > { %1223 = vmatprep.subr.bf16.mxu0 %v1307_v15  ;;  %v258_v35 = vsel %vm246_vm0, %v253_v30, %v257_v29  ;;  %v691_v7 = vor.u32 %v690_v56, %v686_v53  ;;  %v1520_v8 = vrot.slane %v693_v57, 1  ;;  %v905_v9 = vsel %vm897_vm4, 1, %v1345_v6  ;;  %v1327_v30 = vld [vmem:[%s1625_s1 + $0x28] sm:$0xff]  }
  0x1a   : > { %1181 = vmatprep.mubr.bf16.mxu1 %v258_v35  ;;  %v266_v43 = vsel %vm246_vm0, %v261_v36, %v265_v37  ;;  %v274_v3 = vsel %vm246_vm0, %v269_v51, %v273_v59  ;;  %v277_v4 = vor.u32 %v275_v55, %v273_v59  ;;  %v546_v12 = vsel %vm544_vm3, %v1501_v62, %v1061_v39  ;;  %v1334_v36 = vld [vmem:[%s1625_s1 + $0xf0] sm:$0xff]   ;;  %v1335_v39 = vld [vmem:[%s1625_s1 + $0x38] sm:$0xff]  }
  0x1b   : > { %1176 = vmatpush3.bf16.msra.mxu1 %v1306_v11  ;;  %918 = vperm.xlu1 %1295, %v905_v9   ;;  %vm896_vm7 = vcmp.gt.f32.partialorder %v888_v5, 0.5  ;;  %v696_v18 = vsel %vm246_vm0, %v691_v7, %v1520_v8  ;;  %vm899_vm9 = vcmp.gt.f32.partialorder %v891_v16, 0.5  ;;  %vm901_vm11 = vcmp.gt.f32.partialorder %v893_v27, 0.5 }
  0x1c   : > { %1224 = vmatpush3.bf16.msra.mxu0 %v1307_v15  ;;  %1177 = vmatprep.subr.bf16.mxu1 %v1308_v22  ;;  %v290_v11 = vsel %vm1497_vm2, %v277_v4, %v286_v60  ;;  %v892_v15 = vld [vmem:[%s1627_s3 + $0x28] sm:$0xff]  ;;  %v904_v24 = vsel %vm896_vm7, 1, %v1345_v6  ;;  %v907_v31 = vsel %vm899_vm9, 1, %v1345_v6  ;;  %v909_v35 = vsel %vm901_vm11, 1, %v1345_v6 }
  0x1d   : > { %1225 = vmatprep.subr.bf16.mxu0 %v1309_v26  ;;  %vm900_vm8 = vcmp.gt.f32.partialorder %v892_v15, 0.5  ;;  %915 = vperm.xlu0 %1294, %v904_v24   ;;  %v701_v37 = vshll.u32 %v1485_v52, 16  ;;  %v708_v41 = vshll.u32 %v1501_v62, 16  ;;  %v719_v49 = vrot.slane %v248_v20, 4 }
  0x1e   : > { %v908_v29 = vsel %vm900_vm8, 1, %v1345_v6 }
  0x1f   : > { %1178 = vmatpush3.bf16.msra.mxu1 %v1308_v22  ;;  %v906_v22 = vsel %vm898_vm6, 1, %v1345_v6  ;;  %v703_v42 = vrot.slane %v701_v37, 1  ;;  %v710_v45 = vrot.slane %v708_v41, 1 }
  0x20   : > { %1226 = vmatpush3.bf16.msra.mxu0 %v1309_v26  ;;  %1179 = vmatprep.subr.bf16.mxu1 %v1310_v33  ;;  %v894_v26 = vld [vmem:[%s1627_s3 + $0x38] sm:$0xff] }
  0x21   : > { %1227 = vmatprep.subr.bf16.mxu0 %v1311_v34  ;;  %921 = vperm.xlu1 %1295, %v906_v22   ;;  %vm902_vm10 = vcmp.gt.f32.partialorder %v894_v26, 0.5 }
  0x22   : > { %924 = vperm.xlu0 %1294, %v907_v31  }
  0x23   : > { %1180 = vmatpush3.bf16.msra.mxu1 %v1310_v33  ;;  %v910_v33 = vsel %vm902_vm10, 1, %v1345_v6  ;;  %v1336_v6 = vld [vmem:[%s1625_s1 + $0xf8] sm:$0xff]  }
  0x24   : > { %1228 = vmatpush3.bf16.msra.mxu0 %v1311_v34  ;;  %1189 = vmatprep.subr.bf16.mxu1 %v1314_v38  ;;  %v1332_v34 = vld [vmem:[%s1625_s1 + $0x30] sm:$0xff]  }
  0x25   : > { %1237 = vmatprep.subr.bf16.mxu0 %v1316_v40  ;;  %927 = vperm.xlu1 %1295, %v908_v29  }
  0x26   : > { %1182 = vmatmul.mubr.bf16.vlgmr.msra.gmra.mrb[0].mxu1 %v266_v43  ;;  %930 = vperm.xlu0 %1294, %v909_v35  }
  0x27   : > { %1190 = vmatpush3.bf16.msra.mxu1 %v1314_v38  ;;  %1230 = vmatmul.mubr.bf16.vlgmr.msra.gmra.mrb[0].mxu0 %v1473_v44  ;;  %v697_v38 = vshrl.u32 %v1473_v44, 16 }
  0x28   : > { %1238 = vmatpush3.bf16.msra.mxu0 %v1316_v40  ;;  %1191 = vmatprep.subr.bf16.mxu1 %v1319_v47  ;;  %v705_v40 = vshrl.u32 %v1485_v52, 16 }
  0x29   : > { %1239 = vmatprep.subr.bf16.mxu0 %v1320_v50  ;;  %1233 = vmatprep.mubr.bf16.mxu0 %v1485_v52  ;;  %v699_v43 = vor.u32 %v697_v38, %v1520_v8 }
  0x2a   : > { %1185 = vmatprep.mubr.bf16.mxu1 %v274_v3  ;;  %933 = vperm.xlu1 %1295, %v910_v33   ;;  %v707_v44 = vor.u32 %v705_v40, %v703_v42 }
  0x2b   : > { %1192 = vmatpush3.bf16.msra.mxu1 %v1319_v47  ;;  %v704_v46 = vsel %vm246_vm0, %v699_v43, %v703_v42  ;;  %v712_v47 = vshrl.u32 %v1501_v62, 16 }
  0x2c   : > { %1240 = vmatpush3.bf16.msra.mxu0 %v1320_v50  ;;  %1193 = vmatprep.subr.bf16.mxu1 %v1321_v58  ;;  %v720_v50 = vrot.slane %v250_v21, 5  ;;  %v711_v51 = vsel %vm246_vm0, %v707_v44, %v710_v45  ;;  %vm983_vm0 = vcmask 519168  }
  0x2d   : > { %1241 = vmatprep.subr.bf16.mxu0 %v1322_v0  ;;  %v714_v52 = vor.u32 %v712_v47, %v710_v45 }
  0x2e   : > { %1186 = vmatmul.mubr.bf16.gmra.mrb[4].mxu1 %v290_v11  ;;  %v721_v53 = vor.u32 %v720_v50, %v719_v49 }
  0x2f   : > { %1194 = vmatpush3.bf16.msra.mxu1 %v1321_v58  ;;  %1234 = vmatmul.mubr.bf16.gmra.mrb[4].mxu0 %v546_v12 }
  0x30   : > { %1242 = vmatpush3.bf16.msra.mxu0 %v1322_v0  ;;  %1195 = vmatprep.subr.bf16.mxu1 %v1323_v10  ;;  %v726_v54 = vsel %vm725_vm13, %v714_v52, %v721_v53 }
  0x31   : > { %1243 = vmatprep.subr.bf16.mxu0 %v1324_v14  ;;  %1205 = vmatprep.mubr.bf16.mxu1 %v1431_v17 }
  0x32   : > { %1253 = vmatprep.mubr.bf16.mxu0 %v696_v18 }
  0x33   : > { %1196 = vmatpush3.bf16.msra.mxu1 %v1323_v10 }
  0x34   : > { %1244 = vmatpush3.bf16.msra.mxu0 %v1324_v14  ;;  %1197 = vmatprep.subr.bf16.mxu1 %v1325_v23 }
  0x35   : > { %1245 = vmatprep.subr.bf16.mxu0 %v1326_v25 }
  0x37   : > { %1198 = vmatpush3.bf16.msra.mxu1 %v1325_v23 }
  0x38   : > { %1246 = vmatpush3.bf16.msra.mxu0 %v1326_v25  ;;  %1199 = vmatprep.subr.bf16.mxu1 %v1327_v30 }
  0x39   : > { %1247 = vmatprep.subr.bf16.mxu0 %v1328_v32 }
  0x3b   : > { %1200 = vmatpush3.bf16.msra.mxu1 %v1327_v30 }
  0x3c   : > { %1248 = vmatpush3.bf16.msra.mxu0 %v1328_v32  ;;  %1201 = vmatprep.subr.bf16.mxu1 %v1332_v34 }
  0x3d   : > { %1249 = vmatprep.subr.bf16.mxu0 %v1334_v36 }
  0x3f   : > { %1202 = vmatpush3.bf16.msra.mxu1 %v1332_v34 }
  0x40   : > { %1250 = vmatpush3.bf16.msra.mxu0 %v1334_v36  ;;  %1203 = vmatprep.subr.bf16.mxu1 %v1335_v39 }
  0x41   : > { %1251 = vmatprep.subr.bf16.mxu0 %v1336_v6 }
  0x43   : > { %1204 = vmatpush3.bf16.msra.mxu1 %v1335_v39 }
  0x44   : > { %1252 = vmatpush3.bf16.msra.mxu0 %v1336_v6 }
  0x46   : > { %1206 = vmatmul.mubr.bf16.vlgmr.msra.gmra.mrb[0].mxu1 %v1435_v19  ;;  %v1098_v19 = vld [vmem:[%s1626_s2] ss:$0 sm:$0xff] }
  0x47   : > { %1254 = vmatmul.mubr.bf16.vlgmr.msra.gmra.mrb[0].mxu0 %v704_v46  ;;  %1209 = vmatprep.mubr.bf16.mxu1 %v1451_v28 }
  0x48   : > { %1257 = vmatprep.mubr.bf16.mxu0 %v711_v51 }
  0x4e   : > { %1210 = vmatmul.mubr.bf16.gmra.mrb[4].mxu1 %v1480_v48 }
  0x4f   : > { %1258 = vmatmul.mubr.bf16.gmra.mrb[4].mxu0 %v726_v54 }
  0x94   : > { %v913_v17 = vpop.permute.xlu0 %912 }
  0x95   : > { %vm935_vm15 = vcmp.eq.s32.totalorder %v913_v17, 1 }
  0x9a   : > { %v919_v20 = vpop.permute.xlu1 %918 }
  0x9b   : > { %vm937_vm14 = vcmp.eq.s32.totalorder %v919_v20, 1 }
  0x9c   : > { %v916_v55 = vpop.permute.xlu0 %915 }
  0x9d   : > { %vm936_vm2 = vcmp.eq.s32.totalorder %v916_v55, 1 }
  0xa0   : > { %v922_v21 = vpop.permute.xlu1 %921 }
  0xa1   : > { %v925_v4 = vpop.permute.xlu0 %924  ;;  %vm938_vm1 = vcmp.eq.s32.totalorder %v922_v21, 1 }
  0xa2   : > { %vm939_vm4 = vcmp.eq.s32.totalorder %v925_v4, 1 }
  0xa4   : > { %v928_v10 = vpop.permute.xlu1 %927 }
  0xa5   : > { %v931_v35 = vpop.permute.xlu0 %930  ;;  %vm940_vm6 = vcmp.eq.s32.totalorder %v928_v10, 1 }
  0xa6   : > { %vm941_vm3 = vcmp.eq.s32.totalorder %v931_v35, 1 }
  0xa9   : > { %v934_v40 = vpop.permute.xlu1 %933 }
  0xaa   : > { %vm942_vm5 = vcmp.eq.s32.totalorder %v934_v40, 1 }
 0x119   : > { %v1207_v56 = vpop.f32.mrb[0].mxu1 }
 0x11a   : > { %v1255_v57 = vpop.f32.mrb[0].mxu0  ;;  %v506_v28 = vpop.f32.mrb[1].mxu1 }
 0x11b   : > { %v1261_v58 = vadd.f32 %v1255_v57, %v1207_v56  ;;  %v825_v59 = vpop.f32.mrb[1].mxu0  ;;  %v1208_v60 = vpop.f32.mrb[2].mxu1 }
 0x11c   : > { %v1262_v61 = vadd.f32 %v825_v59, %v506_v28  ;;  %v1256_v62 = vpop.f32.mrb[2].mxu0  ;;  %v509_v63 = vpop.f32.mrb[3].mxu1 }
 0x11d   : > { %v873_v48 = vadd.f32 %v1261_v58, %v1098_v19  ;;  %v1263_v0 = vadd.f32 %v1256_v62, %v1208_v60  ;;  %v828_v1 = vpop.f32.mrb[3].mxu0 }
 0x11e   : > { %v871_v2 = vadd.f32 %v1262_v61, %v1098_v19  ;;  %v1264_v3 = vadd.f32 %v828_v1, %v509_v63 }
 0x11f   : > { %v881_v5 = vmax.f32 %v873_v48, 0.0  ;;  %v874_v7 = vadd.f32 %v1263_v0, %v1098_v19 }
 0x120   : > { %v879_v8 = vmax.f32 %v871_v2, 0.0  ;;  %v872_v9 = vadd.f32 %v1264_v3, %v1098_v19 }
 0x121   : > { %v945_v11 = vsel %vm937_vm14, %v881_v5, 0.0  ;;  %v882_v12 = vmax.f32 %v874_v7, 0.0  ;;  %v1211_v13 = vpop.f32.mrb[4].mxu1 }
 0x122   : > { %v1111_v14 = vpack.c.bf16 %v945_v11, %v945_v11  ;;  %v943_v15 = vsel %vm935_vm15, %v879_v8, 0.0  ;;  %v880_v16 = vmax.f32 %v872_v9, 0.0  ;;  %v1259_v18 = vpop.f32.mrb[4].mxu0  ;;  %v522_v22 = vpop.f32.mrb[5].mxu1 }
 0x123   : > { %v1109_v23 = vpack.c.bf16 %v943_v15, %v943_v15  ;;  %v946_v24 = vsel %vm938_vm1, %v882_v12, 0.0  ;;  %v1265_v25 = vadd.f32 %v1259_v18, %v1211_v13  ;;  %v841_v26 = vpop.f32.mrb[5].mxu0  ;;  %v1212_v27 = vpop.f32.mrb[6].mxu1 }
 0x124   : > { %986 = vst.msk [vmem:[%s1603_s11 + $0x8] sm:$0xf] %vm983_vm0, %v1111_v14  ;;  %v1112_v29 = vpack.c.bf16 %v946_v24, %v946_v24  ;;  %v944_v30 = vsel %vm936_vm2, %v880_v16, 0.0  ;;  %v1266_v31 = vadd.f32 %v841_v26, %v522_v22  ;;  %v1260_v32 = vpop.f32.mrb[6].mxu0  ;;  %v525_v33 = vpop.f32.mrb[7].mxu1 }
 0x125   : > { %984 = vst.msk [vmem:[%s1603_s11] sm:$0xf] %vm983_vm0, %v1109_v23  ;;  %v1110_v34 = vpack.c.bf16 %v944_v30, %v944_v30  ;;  %v877_v36 = vadd.f32 %v1265_v25, %v1098_v19  ;;  %v1267_v37 = vadd.f32 %v1260_v32, %v1212_v27  ;;  %v844_v38 = vpop.f32.mrb[7].mxu0 }
 0x126   : > { %987 = vst.msk [vmem:[%s1603_s11 + $0xc] sm:$0xf] %vm983_vm0, %v1112_v29  ;;  %v875_v39 = vadd.f32 %v1266_v31, %v1098_v19  ;;  %v1268_v6 = vadd.f32 %v844_v38, %v525_v33 }
 0x127   : > { %985 = vst.msk [vmem:[%s1603_s11 + $0x4] sm:$0xf] %vm983_vm0, %v1110_v34  ;;  %v885_v41 = vmax.f32 %v877_v36, 0.0  ;;  %v878_v42 = vadd.f32 %v1267_v37, %v1098_v19 }
 0x128   : > { %v883_v43 = vmax.f32 %v875_v39, 0.0  ;;  %v876_v44 = vadd.f32 %v1268_v6, %v1098_v19 }
 0x129   : > { %v949_v45 = vsel %vm941_vm3, %v885_v41, 0.0  ;;  %v886_v46 = vmax.f32 %v878_v42, 0.0 }
 0x12a   : > { %v1115_v47 = vpack.c.bf16 %v949_v45, %v949_v45  ;;  %v947_v49 = vsel %vm939_vm4, %v883_v43, 0.0  ;;  %v884_v50 = vmax.f32 %v876_v44, 0.0 }
 0x12b   : > { %v1113_v51 = vpack.c.bf16 %v947_v49, %v947_v49  ;;  %v950_v52 = vsel %vm942_vm5, %v886_v46, 0.0 }
 0x12c   : > { %990 = vst.msk [vmem:[%s1603_s11 + $0x18] sm:$0xf] %vm983_vm0, %v1115_v47  ;;  %v1116_v53 = vpack.c.bf16 %v950_v52, %v950_v52  ;;  %v948_v54 = vsel %vm940_vm6, %v884_v50, 0.0 }
 0x12d   : > { %988 = vst.msk [vmem:[%s1603_s11 + $0x10] sm:$0xf] %vm983_vm0, %v1113_v51  ;;  %v1114_v20 = vpack.c.bf16 %v948_v54, %v948_v54 }
 0x12e   : > { %991 = vst.msk [vmem:[%s1603_s11 + $0x1c] sm:$0xf] %vm983_vm0, %v1116_v53 }
 0x12f   : > { %989 = vst.msk [vmem:[%s1603_s11 + $0x14] sm:$0xf] %vm983_vm0, %v1114_v20 }
 0x130 PF: > { %s14_s15 = sadd.s32 1, %s1343_s15  }
 0x131   : > { %p11_p4 = scmp.ge.s32.totalorder %s14_s15, 4  }
 0x133   :  { %13 = sbr.rel (!%p11_p4) target bundleno = 1 (0x1), region = 66 }

// kernel: dmlab_encoder_forward.9
= control target key start
LH: loop header
LB: loop body
LE: loop exit
PB: predicated region body
PF: predicated region fallthrough
CT: control target
= control target key end

     0   :  { %vm1782_vm0 = vcmask 261120   ;;  %s2905_s1 = inlined_call_operand.vmem [shape: bf16[2560,32], index: 1, kind: input, shape index: {}]   ;;  %s2906_s0 = inlined_call_operand.vmem [shape: bf16[8,2560], index: 0, kind: input, shape index: {}]   ;;  %s2907_s2 = inlined_call_operand.vmem [shape: f32[1,32], index: 2, kind: input, shape index: {}]   ;;  %s2908_s3 = inlined_call_operand.vmem [shape: f32[8,32], index: 3, kind: output, shape index: {}]  }
   0x1   :  { %v2189_v0 = vld [vmem:[%s2905_s1 + $0x40] sm:$0xff]   ;;  %v2193_v4 = vld [vmem:[%s2905_s1 + $0x48] sm:$0xff]   ;;  %v2197_v8 = vld [vmem:[%s2905_s1 + $0x50] sm:$0xff]  }
   0x2   :  { %v2190_v1 = vld [vmem:[%s2905_s1 + $0xc0] sm:$0xff]   ;;  %1969 = vmatprep.subr.bf16.mxu0 %v2189_v0  ;;  %v2194_v5 = vld [vmem:[%s2905_s1 + $0xc8] sm:$0xff]   ;;  %v2198_v9 = vld [vmem:[%s2905_s1 + $0xd0] sm:$0xff]  }
   0x3   :  { %v2191_v2 = vld [vmem:[%s2905_s1] sm:$0xff]   ;;  %1991 = vmatprep.subr.bf16.mxu1 %v2190_v1  ;;  %v2195_v6 = vld [vmem:[%s2905_s1 + $0x8] sm:$0xff]   ;;  %v2199_v10 = vld [vmem:[%s2905_s1 + $0x10] sm:$0xff]  }
   0x4   :  { %v2192_v3 = vld [vmem:[%s2905_s1 + $0x80] sm:$0xff]   ;;  %1970 = vmatpush3.bf16.msra.mxu0 %v2191_v2  ;;  %v2196_v7 = vld [vmem:[%s2905_s1 + $0x88] sm:$0xff]   ;;  %v2200_v11 = vld [vmem:[%s2905_s1 + $0x90] sm:$0xff]  }
   0x5   :  { %1992 = vmatpush3.bf16.msra.mxu1 %v2192_v3  ;;  %1971 = vmatprep.subr.bf16.mxu0 %v2193_v4  ;;  %v2201_v12 = vld [vmem:[%s2905_s1 + $0x58] sm:$0xff]   ;;  %v2205_v16 = vld [vmem:[%s2905_s1 + $0x60] sm:$0xff]   ;;  %v2209_v20 = vld [vmem:[%s2905_s1 + $0x68] sm:$0xff]  }
   0x6   :  { %1993 = vmatprep.subr.bf16.mxu1 %v2194_v5  ;;  %v2202_v13 = vld [vmem:[%s2905_s1 + $0xd8] sm:$0xff]   ;;  %v2206_v17 = vld [vmem:[%s2905_s1 + $0xe0] sm:$0xff]   ;;  %v2210_v21 = vld [vmem:[%s2905_s1 + $0xe8] sm:$0xff]  }
   0x7   :  { %v2203_v14 = vld [vmem:[%s2905_s1 + $0x18] sm:$0xff]   ;;  %v2207_v18 = vld [vmem:[%s2905_s1 + $0x20] sm:$0xff]   ;;  %v2211_v22 = vld [vmem:[%s2905_s1 + $0x28] sm:$0xff]  }
   0x8   :  { %1972 = vmatpush3.bf16.msra.mxu0 %v2195_v6  ;;  %v2204_v15 = vld [vmem:[%s2905_s1 + $0x98] sm:$0xff]   ;;  %v2208_v19 = vld [vmem:[%s2905_s1 + $0xa0] sm:$0xff]   ;;  %v2212_v23 = vld [vmem:[%s2905_s1 + $0xa8] sm:$0xff]  }
   0x9   :  { %1994 = vmatpush3.bf16.msra.mxu1 %v2196_v7  ;;  %1973 = vmatprep.subr.bf16.mxu0 %v2197_v8  ;;  %v2213_v24 = vld [vmem:[%s2905_s1 + $0x70] sm:$0xff]   ;;  %v2217_v28 = vld [vmem:[%s2905_s1 + $0x78] sm:$0xff]   ;;  %v15_v32 = vld [vmem:[%s2906_s0] sm:$0xff] }
   0xa   :  { %1995 = vmatprep.subr.bf16.mxu1 %v2198_v9  ;;  %v2214_v25 = vld [vmem:[%s2905_s1 + $0xf0] sm:$0xff]   ;;  %v2218_v29 = vld [vmem:[%s2905_s1 + $0xf8] sm:$0xff]   ;;  %v16_v33 = vld [vmem:[%s2906_s0 + $0x8] sm:$0xff]  ;;  %v1789_v34 = vcombine.low %v15_v32, %v15_v32  ;;  %v1790_v35 = vcombine.high %v15_v32, %v15_v32 }
   0xb   :  { %v2215_v26 = vld [vmem:[%s2905_s1 + $0x30] sm:$0xff]   ;;  %v2219_v30 = vld [vmem:[%s2905_s1 + $0x38] sm:$0xff]   ;;  %v1791_v36 = vcombine.low %v16_v33, %v16_v33  ;;  %v1792_v37 = vcombine.high %v16_v33, %v16_v33  ;;  %v2225_v38 = vld [vmem:[%s2905_s1 + $0x140] sm:$0xff]  }
   0xc   :  { %1974 = vmatpush3.bf16.msra.mxu0 %v2199_v10  ;;  %v2216_v27 = vld [vmem:[%s2905_s1 + $0xb0] sm:$0xff]   ;;  %v2220_v31 = vld [vmem:[%s2905_s1 + $0xb8] sm:$0xff]   ;;  %v2226_v39 = vld [vmem:[%s2905_s1 + $0x1c0] sm:$0xff]   ;;  %1414 = vmatprep.mubr.bf16.mxu0 %v1790_v35 }
   0xd   :  { %1996 = vmatpush3.bf16.msra.mxu1 %v2200_v11  ;;  %1975 = vmatprep.subr.bf16.mxu0 %v2201_v12  ;;  %v2227_v40 = vld [vmem:[%s2905_s1 + $0x100] sm:$0xff]   ;;  %v2229_v42 = vld [vmem:[%s2905_s1 + $0x148] sm:$0xff]   ;;  %v2233_v46 = vld [vmem:[%s2905_s1 + $0x150] sm:$0xff]  }
   0xe   :  { %1997 = vmatprep.subr.bf16.mxu1 %v2202_v13  ;;  %1454 = vmatprep.mubr.bf16.mxu1 %v1792_v37  ;;  %v2228_v41 = vld [vmem:[%s2905_s1 + $0x180] sm:$0xff]   ;;  %v2230_v43 = vld [vmem:[%s2905_s1 + $0x1c8] sm:$0xff]   ;;  %v2234_v47 = vld [vmem:[%s2905_s1 + $0x1d0] sm:$0xff]  }
   0xf   :  { %v2231_v44 = vld [vmem:[%s2905_s1 + $0x108] sm:$0xff]   ;;  %v2235_v48 = vld [vmem:[%s2905_s1 + $0x110] sm:$0xff]   ;;  %v2237_v50 = vld [vmem:[%s2905_s1 + $0x158] sm:$0xff]  }
  0x10   :  { %1976 = vmatpush3.bf16.msra.mxu0 %v2203_v14  ;;  %v2232_v45 = vld [vmem:[%s2905_s1 + $0x188] sm:$0xff]   ;;  %v2236_v49 = vld [vmem:[%s2905_s1 + $0x190] sm:$0xff]   ;;  %v2238_v51 = vld [vmem:[%s2905_s1 + $0x1d8] sm:$0xff]  }
  0x11   :  { %1998 = vmatpush3.bf16.msra.mxu1 %v2204_v15  ;;  %1977 = vmatprep.subr.bf16.mxu0 %v2205_v16  ;;  %v2239_v52 = vld [vmem:[%s2905_s1 + $0x118] sm:$0xff]   ;;  %v2241_v54 = vld [vmem:[%s2905_s1 + $0x160] sm:$0xff]   ;;  %v2245_v58 = vld [vmem:[%s2905_s1 + $0x168] sm:$0xff]  }
  0x12   :  { %1999 = vmatprep.subr.bf16.mxu1 %v2206_v17  ;;  %v2240_v53 = vld [vmem:[%s2905_s1 + $0x198] sm:$0xff]   ;;  %v2242_v55 = vld [vmem:[%s2905_s1 + $0x1e0] sm:$0xff]   ;;  %v2246_v59 = vld [vmem:[%s2905_s1 + $0x1e8] sm:$0xff]  }
  0x13   :  { %v2243_v56 = vld [vmem:[%s2905_s1 + $0x120] sm:$0xff]   ;;  %v2247_v60 = vld [vmem:[%s2905_s1 + $0x128] sm:$0xff]   ;;  %v2249_v62 = vld [vmem:[%s2905_s1 + $0x170] sm:$0xff]  }
  0x14   :  { %1978 = vmatpush3.bf16.msra.mxu0 %v2207_v18  ;;  %v2244_v57 = vld [vmem:[%s2905_s1 + $0x1a0] sm:$0xff]   ;;  %v2248_v61 = vld [vmem:[%s2905_s1 + $0x1a8] sm:$0xff]   ;;  %v2250_v63 = vld [vmem:[%s2905_s1 + $0x1f0] sm:$0xff]  }
  0x15   :  { %2000 = vmatpush3.bf16.msra.mxu1 %v2208_v19  ;;  %1979 = vmatprep.subr.bf16.mxu0 %v2209_v20  ;;  %v2251_v0 = vld [vmem:[%s2905_s1 + $0x130] sm:$0xff]   ;;  %v2253_v2 = vld [vmem:[%s2905_s1 + $0x178] sm:$0xff]   ;;  %v2261_v12 = vld [vmem:[%s2905_s1 + $0x240] sm:$0xff]  }
  0x16   :  { %2001 = vmatprep.subr.bf16.mxu1 %v2210_v21  ;;  %v2252_v1 = vld [vmem:[%s2905_s1 + $0x1b0] sm:$0xff]   ;;  %v2254_v3 = vld [vmem:[%s2905_s1 + $0x1f8] sm:$0xff]   ;;  %v2262_v13 = vld [vmem:[%s2905_s1 + $0x2c0] sm:$0xff]  }
  0x17   :  { %v2255_v4 = vld [vmem:[%s2905_s1 + $0x138] sm:$0xff]   ;;  %v17_v6 = vld [vmem:[%s2906_s0 + $0x10] sm:$0xff]  ;;  %v2263_v14 = vld [vmem:[%s2905_s1 + $0x200] sm:$0xff]  }
  0x18   :  { %1980 = vmatpush3.bf16.msra.mxu0 %v2211_v22  ;;  %v2256_v5 = vld [vmem:[%s2905_s1 + $0x1b8] sm:$0xff]   ;;  %v1793_v7 = vcombine.low %v17_v6, %v17_v6  ;;  %v1794_v8 = vcombine.high %v17_v6, %v17_v6  ;;  %v2264_v15 = vld [vmem:[%s2905_s1 + $0x280] sm:$0xff]   ;;  %v2265_v16 = vld [vmem:[%s2905_s1 + $0x248] sm:$0xff]  }
  0x19   :  { %2002 = vmatpush3.bf16.msra.mxu1 %v2212_v23  ;;  %1981 = vmatprep.subr.bf16.mxu0 %v2213_v24  ;;  %v18_v9 = vld [vmem:[%s2906_s0 + $0x18] sm:$0xff]  ;;  %v2266_v17 = vld [vmem:[%s2905_s1 + $0x2c8] sm:$0xff]   ;;  %v2269_v20 = vld [vmem:[%s2905_s1 + $0x250] sm:$0xff]  }
  0x1a   :  { %2003 = vmatprep.subr.bf16.mxu1 %v2214_v25  ;;  %v1795_v10 = vcombine.low %v18_v9, %v18_v9  ;;  %v1796_v11 = vcombine.high %v18_v9, %v18_v9  ;;  %v2267_v18 = vld [vmem:[%s2905_s1 + $0x208] sm:$0xff]   ;;  %v2270_v21 = vld [vmem:[%s2905_s1 + $0x2d0] sm:$0xff]   ;;  %v2273_v24 = vld [vmem:[%s2905_s1 + $0x258] sm:$0xff]  }
  0x1b   :  { %v2268_v19 = vld [vmem:[%s2905_s1 + $0x288] sm:$0xff]   ;;  %v2271_v22 = vld [vmem:[%s2905_s1 + $0x210] sm:$0xff]   ;;  %v2274_v25 = vld [vmem:[%s2905_s1 + $0x2d8] sm:$0xff]  }
  0x1c   :  { %1982 = vmatpush3.bf16.msra.mxu0 %v2215_v26  ;;  %v2272_v23 = vld [vmem:[%s2905_s1 + $0x290] sm:$0xff]   ;;  %v2275_v26 = vld [vmem:[%s2905_s1 + $0x218] sm:$0xff]   ;;  %v2281_v32 = vld [vmem:[%s2905_s1 + $0x268] sm:$0xff]  }
  0x1d   :  { %2004 = vmatpush3.bf16.msra.mxu1 %v2216_v27  ;;  %1983 = vmatprep.subr.bf16.mxu0 %v2217_v28  ;;  %v2276_v27 = vld [vmem:[%s2905_s1 + $0x298] sm:$0xff]   ;;  %v2277_v28 = vld [vmem:[%s2905_s1 + $0x260] sm:$0xff]   ;;  %v2282_v33 = vld [vmem:[%s2905_s1 + $0x2e8] sm:$0xff]  }
  0x1e   :  { %2005 = vmatprep.subr.bf16.mxu1 %v2218_v29  ;;  %v2278_v29 = vld [vmem:[%s2905_s1 + $0x2e0] sm:$0xff]   ;;  %v2284_v35 = vld [vmem:[%s2905_s1 + $0x2a8] sm:$0xff]   ;;  %v2286_v37 = vld [vmem:[%s2905_s1 + $0x2f0] sm:$0xff]  }
  0x1f   :  { %v2317_v6 = vld [vmem:[%s2905_s1 + $0x368] sm:$0xff]  }
  0x20   :  { %1984 = vmatpush3.bf16.msra.mxu0 %v2219_v30  ;;  %v2279_v30 = vld [vmem:[%s2905_s1 + $0x220] sm:$0xff]   ;;  %v2320_v9 = vld [vmem:[%s2905_s1 + $0x3a8] sm:$0xff]  }
  0x21   :  { %2006 = vmatpush3.bf16.msra.mxu1 %v2220_v31  ;;  %2013 = vmatprep.subr.bf16.mxu0 %v2225_v38  ;;  %v2280_v31 = vld [vmem:[%s2905_s1 + $0x2a0] sm:$0xff]   ;;  %v2287_v38 = vld [vmem:[%s2905_s1 + $0x230] sm:$0xff]  }
  0x22   :  { %2035 = vmatprep.subr.bf16.mxu1 %v2226_v39  ;;  %v2288_v39 = vld [vmem:[%s2905_s1 + $0x2b0] sm:$0xff]  }
  0x23   :  { %1415 = vmatmul.mubr.bf16.vlgmr.msra.gmra.mrb[0].mxu0 %v1789_v34  ;;  %v2283_v34 = vld [vmem:[%s2905_s1 + $0x228] sm:$0xff]  }
  0x24   :  { %1455 = vmatmul.mubr.bf16.vlgmr.msra.gmra.mrb[0].mxu1 %v1791_v36  ;;  %2014 = vmatpush3.bf16.msra.mxu0 %v2227_v40  ;;  %v2285_v36 = vld [vmem:[%s2905_s1 + $0x270] sm:$0xff]   ;;  %v2289_v40 = vld [vmem:[%s2905_s1 + $0x278] sm:$0xff]  }
  0x25   :  { %2036 = vmatpush3.bf16.msra.mxu1 %v2228_v41  ;;  %2015 = vmatprep.subr.bf16.mxu0 %v2229_v42  ;;  %v2290_v41 = vld [vmem:[%s2905_s1 + $0x2f8] sm:$0xff]  }
  0x26   :  { %2037 = vmatprep.subr.bf16.mxu1 %v2230_v43  ;;  %1494 = vmatprep.mubr.bf16.mxu0 %v1794_v8  ;;  %v2291_v42 = vld [vmem:[%s2905_s1 + $0x238] sm:$0xff]   ;;  %v2319_v8 = vld [vmem:[%s2905_s1 + $0x328] sm:$0xff]  }
  0x27   :  { %1534 = vmatprep.mubr.bf16.mxu1 %v1796_v11  ;;  %v2292_v43 = vld [vmem:[%s2905_s1 + $0x2b8] sm:$0xff]   ;;  %v2322_v11 = vld [vmem:[%s2905_s1 + $0x3f0] sm:$0xff]  }
  0x28   :  { %2016 = vmatpush3.bf16.msra.mxu0 %v2231_v44  ;;  %v19_v44 = vld [vmem:[%s2906_s0 + $0x20] sm:$0xff] }
  0x29   :  { %2038 = vmatpush3.bf16.msra.mxu1 %v2232_v45  ;;  %2017 = vmatprep.subr.bf16.mxu0 %v2233_v46  ;;  %v20_v45 = vld [vmem:[%s2906_s0 + $0x28] sm:$0xff]  ;;  %v1797_v46 = vcombine.low %v19_v44, %v19_v44 }
  0x2a   :  { %2039 = vmatprep.subr.bf16.mxu1 %v2234_v47  ;;  %v1798_v47 = vcombine.high %v19_v44, %v19_v44  ;;  %v2353_v44 = vld [vmem:[%s2905_s1 + $0x468] sm:$0xff]  }
  0x2c   :  { %2018 = vmatpush3.bf16.msra.mxu0 %v2235_v48  ;;  %v1799_v48 = vcombine.low %v20_v45, %v20_v45 }
  0x2d   :  { %2040 = vmatpush3.bf16.msra.mxu1 %v2236_v49  ;;  %2019 = vmatprep.subr.bf16.mxu0 %v2237_v50  ;;  %v1800_v49 = vcombine.high %v20_v45, %v20_v45  ;;  %v2297_v50 = vld [vmem:[%s2905_s1 + $0x340] sm:$0xff]   ;;  %v2354_v45 = vld [vmem:[%s2905_s1 + $0x4e8] sm:$0xff]  }
  0x2e   :  { %2041 = vmatprep.subr.bf16.mxu1 %v2238_v51  ;;  %v2298_v51 = vld [vmem:[%s2905_s1 + $0x3c0] sm:$0xff]  }
  0x30   :  { %2020 = vmatpush3.bf16.msra.mxu0 %v2239_v52  ;;  %v2299_v52 = vld [vmem:[%s2905_s1 + $0x300] sm:$0xff]  }
  0x31   :  { %2042 = vmatpush3.bf16.msra.mxu1 %v2240_v53  ;;  %2021 = vmatprep.subr.bf16.mxu0 %v2241_v54  ;;  %v2300_v53 = vld [vmem:[%s2905_s1 + $0x380] sm:$0xff]   ;;  %v2301_v54 = vld [vmem:[%s2905_s1 + $0x348] sm:$0xff]  }
  0x32   :  { %2043 = vmatprep.subr.bf16.mxu1 %v2242_v55  ;;  %v2302_v55 = vld [vmem:[%s2905_s1 + $0x3c8] sm:$0xff]  }
  0x34   :  { %2022 = vmatpush3.bf16.msra.mxu0 %v2243_v56  ;;  %v2303_v56 = vld [vmem:[%s2905_s1 + $0x308] sm:$0xff]  }
  0x35   :  { %2044 = vmatpush3.bf16.msra.mxu1 %v2244_v57  ;;  %2023 = vmatprep.subr.bf16.mxu0 %v2245_v58  ;;  %v2304_v57 = vld [vmem:[%s2905_s1 + $0x388] sm:$0xff]   ;;  %v2305_v58 = vld [vmem:[%s2905_s1 + $0x350] sm:$0xff]  }
  0x36   :  { %2045 = vmatprep.subr.bf16.mxu1 %v2246_v59  ;;  %v2306_v59 = vld [vmem:[%s2905_s1 + $0x3d0] sm:$0xff]  }
  0x38   :  { %2024 = vmatpush3.bf16.msra.mxu0 %v2247_v60  ;;  %v2307_v60 = vld [vmem:[%s2905_s1 + $0x310] sm:$0xff]  }
  0x39   :  { %2046 = vmatpush3.bf16.msra.mxu1 %v2248_v61  ;;  %2025 = vmatprep.subr.bf16.mxu0 %v2249_v62  ;;  %v2308_v61 = vld [vmem:[%s2905_s1 + $0x390] sm:$0xff]   ;;  %v2309_v62 = vld [vmem:[%s2905_s1 + $0x358] sm:$0xff]  }
  0x3a   :  { %2047 = vmatprep.subr.bf16.mxu1 %v2250_v63  ;;  %v2310_v63 = vld [vmem:[%s2905_s1 + $0x3d8] sm:$0xff]  }
  0x3c   :  { %2026 = vmatpush3.bf16.msra.mxu0 %v2251_v0  ;;  %v2311_v0 = vld [vmem:[%s2905_s1 + $0x318] sm:$0xff]  }
  0x3d   :  { %2048 = vmatpush3.bf16.msra.mxu1 %v2252_v1  ;;  %2027 = vmatprep.subr.bf16.mxu0 %v2253_v2  ;;  %v2312_v1 = vld [vmem:[%s2905_s1 + $0x398] sm:$0xff]   ;;  %v2313_v2 = vld [vmem:[%s2905_s1 + $0x360] sm:$0xff]  }
  0x3e   :  { %2049 = vmatprep.subr.bf16.mxu1 %v2254_v3  ;;  %v2314_v3 = vld [vmem:[%s2905_s1 + $0x3e0] sm:$0xff]  }
  0x40   :  { %2028 = vmatpush3.bf16.msra.mxu0 %v2255_v4  ;;  %v2315_v4 = vld [vmem:[%s2905_s1 + $0x320] sm:$0xff]  }
  0x41   :  { %2050 = vmatpush3.bf16.msra.mxu1 %v2256_v5  ;;  %2057 = vmatprep.subr.bf16.mxu0 %v2261_v12  ;;  %v2316_v5 = vld [vmem:[%s2905_s1 + $0x3a0] sm:$0xff]   ;;  %v2323_v12 = vld [vmem:[%s2905_s1 + $0x330] sm:$0xff]  }
  0x42   :  { %2079 = vmatprep.subr.bf16.mxu1 %v2262_v13  ;;  %v2324_v13 = vld [vmem:[%s2905_s1 + $0x3b0] sm:$0xff]  }
  0x43   :  { %1495 = vmatmul.mubr.bf16.vlgmr.msra.gmra.mrb[4].mxu0 %v1793_v7  ;;  %v2318_v7 = vld [vmem:[%s2905_s1 + $0x3e8] sm:$0xff]  }
  0x44   :  { %1535 = vmatmul.mubr.bf16.vlgmr.msra.gmra.mrb[4].mxu1 %v1795_v10  ;;  %2058 = vmatpush3.bf16.msra.mxu0 %v2263_v14  ;;  %v2321_v10 = vld [vmem:[%s2905_s1 + $0x370] sm:$0xff]   ;;  %v2325_v14 = vld [vmem:[%s2905_s1 + $0x378] sm:$0xff]  }
  0x45   :  { %2080 = vmatpush3.bf16.msra.mxu1 %v2264_v15  ;;  %2059 = vmatprep.subr.bf16.mxu0 %v2265_v16  ;;  %v2326_v15 = vld [vmem:[%s2905_s1 + $0x3f8] sm:$0xff]  }
  0x46   :  { %2081 = vmatprep.subr.bf16.mxu1 %v2266_v17  ;;  %1574 = vmatprep.mubr.bf16.mxu0 %v1798_v47  ;;  %v2327_v16 = vld [vmem:[%s2905_s1 + $0x338] sm:$0xff]   ;;  %v2356_v47 = vld [vmem:[%s2905_s1 + $0x4a8] sm:$0xff]  }
  0x47   :  { %1614 = vmatprep.mubr.bf16.mxu1 %v1800_v49  ;;  %v2328_v17 = vld [vmem:[%s2905_s1 + $0x3b8] sm:$0xff]   ;;  %v2358_v49 = vld [vmem:[%s2905_s1 + $0x4f0] sm:$0xff]  }
  0x48   :  { %2060 = vmatpush3.bf16.msra.mxu0 %v2267_v18  ;;  %v21_v18 = vld [vmem:[%s2906_s0 + $0x30] sm:$0xff] }
  0x49   :  { %2082 = vmatpush3.bf16.msra.mxu1 %v2268_v19  ;;  %2061 = vmatprep.subr.bf16.mxu0 %v2269_v20  ;;  %v22_v19 = vld [vmem:[%s2906_s0 + $0x38] sm:$0xff]  ;;  %v1801_v20 = vcombine.low %v21_v18, %v21_v18 }
  0x4a   :  { %2083 = vmatprep.subr.bf16.mxu1 %v2270_v21  ;;  %v1802_v21 = vcombine.high %v21_v18, %v21_v18 }
  0x4c   :  { %2062 = vmatpush3.bf16.msra.mxu0 %v2271_v22  ;;  %v1803_v22 = vcombine.low %v22_v19, %v22_v19 }
  0x4d   :  { %2084 = vmatpush3.bf16.msra.mxu1 %v2272_v23  ;;  %2063 = vmatprep.subr.bf16.mxu0 %v2273_v24  ;;  %v2333_v23 = vld [vmem:[%s2905_s1 + $0x440] sm:$0xff]   ;;  %v1804_v24 = vcombine.high %v22_v19, %v22_v19 }
  0x4e   :  { %2085 = vmatprep.subr.bf16.mxu1 %v2274_v25  ;;  %v2334_v25 = vld [vmem:[%s2905_s1 + $0x4c0] sm:$0xff]  }
  0x50   :  { %2064 = vmatpush3.bf16.msra.mxu0 %v2275_v26  ;;  %v2335_v26 = vld [vmem:[%s2905_s1 + $0x400] sm:$0xff]  }
  0x51   :  { %2086 = vmatpush3.bf16.msra.mxu1 %v2276_v27  ;;  %2065 = vmatprep.subr.bf16.mxu0 %v2277_v28  ;;  %v2336_v27 = vld [vmem:[%s2905_s1 + $0x480] sm:$0xff]   ;;  %v2337_v28 = vld [vmem:[%s2905_s1 + $0x448] sm:$0xff]  }
  0x52   :  { %2087 = vmatprep.subr.bf16.mxu1 %v2278_v29  ;;  %v2338_v29 = vld [vmem:[%s2905_s1 + $0x4c8] sm:$0xff]  }
  0x54   :  { %2066 = vmatpush3.bf16.msra.mxu0 %v2279_v30  ;;  %v2339_v30 = vld [vmem:[%s2905_s1 + $0x408] sm:$0xff]  }
  0x55   :  { %2088 = vmatpush3.bf16.msra.mxu1 %v2280_v31  ;;  %2067 = vmatprep.subr.bf16.mxu0 %v2281_v32  ;;  %v2340_v31 = vld [vmem:[%s2905_s1 + $0x488] sm:$0xff]   ;;  %v2341_v32 = vld [vmem:[%s2905_s1 + $0x450] sm:$0xff]  }
  0x56   :  { %2089 = vmatprep.subr.bf16.mxu1 %v2282_v33  ;;  %v2342_v33 = vld [vmem:[%s2905_s1 + $0x4d0] sm:$0xff]  }
  0x58   :  { %2068 = vmatpush3.bf16.msra.mxu0 %v2283_v34  ;;  %v2343_v34 = vld [vmem:[%s2905_s1 + $0x410] sm:$0xff]  }
  0x59   :  { %2090 = vmatpush3.bf16.msra.mxu1 %v2284_v35  ;;  %2069 = vmatprep.subr.bf16.mxu0 %v2285_v36  ;;  %v2344_v35 = vld [vmem:[%s2905_s1 + $0x490] sm:$0xff]   ;;  %v2345_v36 = vld [vmem:[%s2905_s1 + $0x458] sm:$0xff]  }
  0x5a   :  { %2091 = vmatprep.subr.bf16.mxu1 %v2286_v37  ;;  %v2346_v37 = vld [vmem:[%s2905_s1 + $0x4d8] sm:$0xff]  }
  0x5c   :  { %2070 = vmatpush3.bf16.msra.mxu0 %v2287_v38  ;;  %v2347_v38 = vld [vmem:[%s2905_s1 + $0x418] sm:$0xff]  }
  0x5d   :  { %2092 = vmatpush3.bf16.msra.mxu1 %v2288_v39  ;;  %2071 = vmatprep.subr.bf16.mxu0 %v2289_v40  ;;  %v2348_v39 = vld [vmem:[%s2905_s1 + $0x498] sm:$0xff]   ;;  %v2349_v40 = vld [vmem:[%s2905_s1 + $0x460] sm:$0xff]  }
  0x5e   :  { %2093 = vmatprep.subr.bf16.mxu1 %v2290_v41  ;;  %v2350_v41 = vld [vmem:[%s2905_s1 + $0x4e0] sm:$0xff]  }
  0x60   :  { %2072 = vmatpush3.bf16.msra.mxu0 %v2291_v42  ;;  %v2351_v42 = vld [vmem:[%s2905_s1 + $0x420] sm:$0xff]  }
  0x61   :  { %2094 = vmatpush3.bf16.msra.mxu1 %v2292_v43  ;;  %2101 = vmatprep.subr.bf16.mxu0 %v2297_v50  ;;  %v2352_v43 = vld [vmem:[%s2905_s1 + $0x4a0] sm:$0xff]   ;;  %v2359_v50 = vld [vmem:[%s2905_s1 + $0x430] sm:$0xff]  }
  0x62   :  { %2123 = vmatprep.subr.bf16.mxu1 %v2298_v51  ;;  %v2360_v51 = vld [vmem:[%s2905_s1 + $0x4b0] sm:$0xff]  }
  0x63   :  { %1575 = vmatmul.mubr.bf16.vlgmr.msra.gmra.mrb[8].mxu0 %v1797_v46  ;;  %v2355_v46 = vld [vmem:[%s2905_s1 + $0x428] sm:$0xff]  }
  0x64   :  { %1615 = vmatmul.mubr.bf16.vlgmr.msra.gmra.mrb[8].mxu1 %v1799_v48  ;;  %2102 = vmatpush3.bf16.msra.mxu0 %v2299_v52  ;;  %v2357_v48 = vld [vmem:[%s2905_s1 + $0x470] sm:$0xff]   ;;  %v2361_v52 = vld [vmem:[%s2905_s1 + $0x478] sm:$0xff]  }
  0x65   :  { %2124 = vmatpush3.bf16.msra.mxu1 %v2300_v53  ;;  %2103 = vmatprep.subr.bf16.mxu0 %v2301_v54  ;;  %v2362_v53 = vld [vmem:[%s2905_s1 + $0x4f8] sm:$0xff]  }
  0x66   :  { %2125 = vmatprep.subr.bf16.mxu1 %v2302_v55  ;;  %1654 = vmatprep.mubr.bf16.mxu0 %v1802_v21  ;;  %v2363_v54 = vld [vmem:[%s2905_s1 + $0x438] sm:$0xff]  }
  0x67   :  { %1694 = vmatprep.mubr.bf16.mxu1 %v1804_v24  ;;  %v2364_v55 = vld [vmem:[%s2905_s1 + $0x4b8] sm:$0xff]  }
  0x68   :  { %2104 = vmatpush3.bf16.msra.mxu0 %v2303_v56  ;;  %v23_v56 = vld [vmem:[%s2906_s0 + $0x40] sm:$0xff] }
  0x69   :  { %2126 = vmatpush3.bf16.msra.mxu1 %v2304_v57  ;;  %2105 = vmatprep.subr.bf16.mxu0 %v2305_v58  ;;  %v1805_v57 = vcombine.low %v23_v56, %v23_v56  ;;  %v1806_v58 = vcombine.high %v23_v56, %v23_v56 }
  0x6a   :  { %2127 = vmatprep.subr.bf16.mxu1 %v2306_v59  ;;  %v24_v59 = vld [vmem:[%s2906_s0 + $0x48] sm:$0xff] }
  0x6c   :  { %2106 = vmatpush3.bf16.msra.mxu0 %v2307_v60  ;;  %v1807_v60 = vcombine.low %v24_v59, %v24_v59 }
  0x6d   :  { %2128 = vmatpush3.bf16.msra.mxu1 %v2308_v61  ;;  %2107 = vmatprep.subr.bf16.mxu0 %v2309_v62  ;;  %v1808_v61 = vcombine.high %v24_v59, %v24_v59 }
  0x6e   :  { %2129 = vmatprep.subr.bf16.mxu1 %v2310_v63 }
  0x70   :  { %2108 = vmatpush3.bf16.msra.mxu0 %v2311_v0  ;;  %v1788_v0 = vld [vmem:[%s2907_s2] ss:$0 sm:$0xff] }
  0x71   :  { %2130 = vmatpush3.bf16.msra.mxu1 %v2312_v1  ;;  %2109 = vmatprep.subr.bf16.mxu0 %v2313_v2 }
  0x72   :  { %2131 = vmatprep.subr.bf16.mxu1 %v2314_v3 }
  0x74   :  { %2110 = vmatpush3.bf16.msra.mxu0 %v2315_v4 }
  0x75   :  { %2132 = vmatpush3.bf16.msra.mxu1 %v2316_v5  ;;  %2111 = vmatprep.subr.bf16.mxu0 %v2317_v6 }
  0x76   :  { %2133 = vmatprep.subr.bf16.mxu1 %v2318_v7 }
  0x78   :  { %2112 = vmatpush3.bf16.msra.mxu0 %v2319_v8 }
  0x79   :  { %2134 = vmatpush3.bf16.msra.mxu1 %v2320_v9  ;;  %2113 = vmatprep.subr.bf16.mxu0 %v2321_v10 }
  0x7a   :  { %2135 = vmatprep.subr.bf16.mxu1 %v2322_v11 }
  0x7c   :  { %2114 = vmatpush3.bf16.msra.mxu0 %v2323_v12 }
  0x7d   :  { %2136 = vmatpush3.bf16.msra.mxu1 %v2324_v13  ;;  %2115 = vmatprep.subr.bf16.mxu0 %v2325_v14 }
  0x7e   :  { %2137 = vmatprep.subr.bf16.mxu1 %v2326_v15 }
  0x80   :  { %2116 = vmatpush3.bf16.msra.mxu0 %v2327_v16 }
  0x81   :  { %2138 = vmatpush3.bf16.msra.mxu1 %v2328_v17  ;;  %2145 = vmatprep.subr.bf16.mxu0 %v2333_v23 }
  0x82   :  { %2167 = vmatprep.subr.bf16.mxu1 %v2334_v25 }
  0x83   :  { %1655 = vmatmul.mubr.bf16.vlgmr.msra.gmra.mrb[12].mxu0 %v1801_v20 }
  0x84   :  { %1695 = vmatmul.mubr.bf16.vlgmr.msra.gmra.mrb[12].mxu1 %v1803_v22  ;;  %2146 = vmatpush3.bf16.msra.mxu0 %v2335_v26 }
  0x85   :  { %2168 = vmatpush3.bf16.msra.mxu1 %v2336_v27  ;;  %2147 = vmatprep.subr.bf16.mxu0 %v2337_v28 }
  0x86   :  { %2169 = vmatprep.subr.bf16.mxu1 %v2338_v29  ;;  %1734 = vmatprep.mubr.bf16.mxu0 %v1806_v58 }
  0x87   :  { %1774 = vmatprep.mubr.bf16.mxu1 %v1808_v61 }
  0x88   :  { %2148 = vmatpush3.bf16.msra.mxu0 %v2339_v30 }
  0x89   :  { %2170 = vmatpush3.bf16.msra.mxu1 %v2340_v31  ;;  %2149 = vmatprep.subr.bf16.mxu0 %v2341_v32 }
  0x8a   :  { %2171 = vmatprep.subr.bf16.mxu1 %v2342_v33 }
  0x8c   :  { %2150 = vmatpush3.bf16.msra.mxu0 %v2343_v34 }
  0x8d   :  { %2172 = vmatpush3.bf16.msra.mxu1 %v2344_v35  ;;  %2151 = vmatprep.subr.bf16.mxu0 %v2345_v36 }
  0x8e   :  { %2173 = vmatprep.subr.bf16.mxu1 %v2346_v37 }
  0x90   :  { %2152 = vmatpush3.bf16.msra.mxu0 %v2347_v38 }
  0x91   :  { %2174 = vmatpush3.bf16.msra.mxu1 %v2348_v39  ;;  %2153 = vmatprep.subr.bf16.mxu0 %v2349_v40 }
  0x92   :  { %2175 = vmatprep.subr.bf16.mxu1 %v2350_v41 }
  0x94   :  { %2154 = vmatpush3.bf16.msra.mxu0 %v2351_v42 }
  0x95   :  { %2176 = vmatpush3.bf16.msra.mxu1 %v2352_v43  ;;  %2155 = vmatprep.subr.bf16.mxu0 %v2353_v44 }
  0x96   :  { %2177 = vmatprep.subr.bf16.mxu1 %v2354_v45 }
  0x98   :  { %2156 = vmatpush3.bf16.msra.mxu0 %v2355_v46 }
  0x99   :  { %2178 = vmatpush3.bf16.msra.mxu1 %v2356_v47  ;;  %2157 = vmatprep.subr.bf16.mxu0 %v2357_v48 }
  0x9a   :  { %2179 = vmatprep.subr.bf16.mxu1 %v2358_v49 }
  0x9c   :  { %2158 = vmatpush3.bf16.msra.mxu0 %v2359_v50 }
  0x9d   :  { %2180 = vmatpush3.bf16.msra.mxu1 %v2360_v51  ;;  %2159 = vmatprep.subr.bf16.mxu0 %v2361_v52 }
  0x9e   :  { %2181 = vmatprep.subr.bf16.mxu1 %v2362_v53 }
  0xa0   :  { %2160 = vmatpush3.bf16.msra.mxu0 %v2363_v54 }
  0xa1   :  { %2182 = vmatpush3.bf16.msra.mxu1 %v2364_v55 }
  0xa3   :  { %1735 = vmatmul.mubr.bf16.vlgmr.msra.gmra.mrb[16].mxu0 %v1805_v57 }
  0xa4   :  { %1775 = vmatmul.mubr.bf16.vlgmr.msra.gmra.mrb[16].mxu1 %v1807_v60 }
  0xf6   :  { %v1985_v62 = vpop.f32.mrb[0].mxu0 }
  0xf7   :  { %v2007_v63 = vpop.f32.mrb[0].mxu1  ;;  %v1986_v1 = vpop.f32.mrb[1].mxu0 }
  0xf8   :  { %v2008_v2 = vpop.f32.mrb[1].mxu1  ;;  %v1987_v3 = vadd.f32 %v1986_v1, %v1985_v62  ;;  %v1988_v5 = vpop.f32.mrb[2].mxu0 }
  0xf9   :  { %v2009_v4 = vadd.f32 %v2008_v2, %v2007_v63  ;;  %v2010_v6 = vpop.f32.mrb[2].mxu1  ;;  %v1989_v7 = vpop.f32.mrb[3].mxu0 }
  0xfa   :  { %v2011_v8 = vpop.f32.mrb[3].mxu1  ;;  %v1417_v9 = vadd.f32 %v1987_v3, %v1788_v0 }
  0xfc   :  { %v1457_v10 = vadd.f32 %v2009_v4, %v1417_v9 }
 0x116   :  { %v2029_v11 = vpop.f32.mrb[4].mxu0 }
 0x117   :  { %v2051_v12 = vpop.f32.mrb[4].mxu1  ;;  %v2030_v13 = vpop.f32.mrb[5].mxu0 }
 0x118   :  { %v2052_v14 = vpop.f32.mrb[5].mxu1  ;;  %v2031_v15 = vadd.f32 %v2030_v13, %v2029_v11  ;;  %v2032_v17 = vpop.f32.mrb[6].mxu0 }
 0x119   :  { %v2053_v16 = vadd.f32 %v2052_v14, %v2051_v12  ;;  %v2054_v18 = vpop.f32.mrb[6].mxu1  ;;  %v2033_v19 = vpop.f32.mrb[7].mxu0 }
 0x11a   :  { %v2055_v20 = vpop.f32.mrb[7].mxu1  ;;  %v1497_v21 = vadd.f32 %v2031_v15, %v1457_v10 }
 0x11c   :  { %v1537_v22 = vadd.f32 %v2053_v16, %v1497_v21 }
 0x136   :  { %v2073_v23 = vpop.f32.mrb[8].mxu0 }
 0x137   :  { %v2095_v24 = vpop.f32.mrb[8].mxu1  ;;  %v2074_v25 = vpop.f32.mrb[9].mxu0 }
 0x138   :  { %v2075_v26 = vadd.f32 %v2074_v25, %v2073_v23  ;;  %v2096_v27 = vpop.f32.mrb[9].mxu1  ;;  %v2076_v28 = vpop.f32.mrb[10].mxu0 }
 0x139   :  { %v2097_v29 = vadd.f32 %v2096_v27, %v2095_v24  ;;  %v2098_v30 = vpop.f32.mrb[10].mxu1  ;;  %v2077_v31 = vpop.f32.mrb[11].mxu0 }
 0x13a   :  { %v1577_v32 = vadd.f32 %v2075_v26, %v1537_v22  ;;  %v2099_v33 = vpop.f32.mrb[11].mxu1 }
 0x13c   :  { %v1617_v34 = vadd.f32 %v2097_v29, %v1577_v32 }
 0x156   :  { %v2117_v35 = vpop.f32.mrb[12].mxu0 }
 0x157   :  { %v2139_v36 = vpop.f32.mrb[12].mxu1  ;;  %v2118_v37 = vpop.f32.mrb[13].mxu0 }
 0x158   :  { %v2119_v38 = vadd.f32 %v2118_v37, %v2117_v35  ;;  %v2140_v39 = vpop.f32.mrb[13].mxu1  ;;  %v2120_v40 = vpop.f32.mrb[14].mxu0 }
 0x159   :  { %v2141_v41 = vadd.f32 %v2140_v39, %v2139_v36  ;;  %v2142_v42 = vpop.f32.mrb[14].mxu1  ;;  %v2121_v43 = vpop.f32.mrb[15].mxu0 }
 0x15a   :  { %v1657_v44 = vadd.f32 %v2119_v38, %v1617_v34  ;;  %v2143_v45 = vpop.f32.mrb[15].mxu1 }
 0x15c   :  { %v1697_v46 = vadd.f32 %v2141_v41, %v1657_v44 }
 0x176   :  { %v2161_v47 = vpop.f32.mrb[16].mxu0 }
 0x177   :  { %v2183_v48 = vpop.f32.mrb[16].mxu1  ;;  %v2162_v49 = vpop.f32.mrb[17].mxu0 }
 0x178   :  { %v2184_v50 = vpop.f32.mrb[17].mxu1  ;;  %v2163_v51 = vadd.f32 %v2162_v49, %v2161_v47  ;;  %v2164_v53 = vpop.f32.mrb[18].mxu0 }
 0x179   :  { %v2185_v52 = vadd.f32 %v2184_v50, %v2183_v48  ;;  %v2186_v54 = vpop.f32.mrb[18].mxu1  ;;  %v2165_v55 = vpop.f32.mrb[19].mxu0 }
 0x17a   :  { %v2187_v56 = vpop.f32.mrb[19].mxu1  ;;  %v1737_v57 = vadd.f32 %v2163_v51, %v1697_v46 }
 0x17c   :  { %v1777_v58 = vadd.f32 %v2185_v52, %v1737_v57 }
 0x17e   :  { %1783 = vst.msk [vmem:[%s2908_s3] sm:$0xff] %vm1782_vm0, %v1777_v58 }

// kernel: dmlab_encoder_forward.7
= control target key start
LH: loop header
LB: loop body
LE: loop exit
PB: predicated region body
PF: predicated region fallthrough
CT: control target
= control target key end

     0   :  { %s2344_s15 = smov 0   ;;  %s3017_s0 = inlined_call_operand.vmem [shape: bf16[160,64], index: 0, kind: input, shape index: {}]   ;;  %s3018_s1 = inlined_call_operand.vmem [shape: bf16[576,64], index: 1, kind: input, shape index: {}]   ;;  %s3019_s2 = inlined_call_operand.vmem [shape: f32[1,64], index: 2, kind: input, shape index: {}]   ;;  %s3020_s3 = inlined_call_operand.vmem [shape: f32[80,1], index: 3, kind: input, shape index: {}]   ;;  %s3021_s4 = inlined_call_operand.vmem [shape: bf16[160,64], index: 4, kind: output, shape index: {}]  }
   0x1 LB: > { %s1773_s16 = sadd.s32 4294967295, %s2314_s15   ;;  %p1777_p0 = scmp.ge.s32.totalorder %s2314_s15, 1  ;;  %s2314_s15 = sphi %s2344_s15, %s14_s15  }
   0x2   : > { %p163_p1 = scmp.lt.s32.totalorder %s2314_s15, 3 }
   0x4   : > { %p164_p2 = pnand %p1777_p0, %p163_p1 }
   0x5   : > { %v2250_v0 = vld [vmem:[%s3018_s1 + $0x20] sm:$0xff] (!%p164_p2)   ;;  %v2316_v1 = vmov (!%p164_p2), 0.0   ;;  %v2251_v2 = vld [vmem:[%s3018_s1 + $0x28] sm:$0xff] (!%p164_p2)   ;;  %s189_s21 = smul.u32 (!%p164_p2), 10, %s1773_s16  ;;  %vm2317_vm0 = vmmov (!%p164_p2), 0   ;;  %v2252_v3 = vld [vmem:[%s3018_s1 + $0x30] sm:$0xff] (!%p164_p2)  }
   0x6   : > { %167 = sbr.rel (%p164_p2) target bundleno = 426 (0x1aa), region = 36  ;;  %2229 = vmatprep.subr.bf16.mxu1 (!%p164_p2), %v2316_v1  ;;  %1977 = vmatprep.subr.bf16.mxu0 (!%p164_p2), %v2316_v1  ;;  %v2253_v4 = vld [vmem:[%s3018_s1 + $0x38] sm:$0xff] (!%p164_p2)   ;;  %vm309_vm1 = vcmask (!%p164_p2), 1043456   ;;  %vm345_vm2 = vcmask (!%p164_p2), 523264   ;;  %v2255_v12 = vld [vmem:[%s3018_s1] sm:$0xff] (!%p164_p2)   ;;  %v2256_v18 = vld [vmem:[%s3018_s1 + $0x8] sm:$0xff] (!%p164_p2)  }
   0x7   : > { %2233 = vmatpush3.bf16.msra.mxu1 (!%p164_p2), %v2250_v0  ;;  %1978 = vmatpush3.bf16.msra.mxu0 (!%p164_p2), %v2250_v0  ;;  %p190_p3 = scmp.lt.s32.totalorder (!%p164_p2), %s189_s21, 19  ;;  %v2262_v17 = vld [vmem:[%s3018_s1 + $0x40] sm:$0xff] (!%p164_p2)   ;;  %v2264_v23 = vld [vmem:[%s3018_s1 + $0x48] sm:$0xff] (!%p164_p2)   ;;  %v2263_v29 = vld [vmem:[%s3018_s1 + $0x10] sm:$0xff] (!%p164_p2)   ;;  %vm554_vm3 = vsmask.f32 (!%p164_p2), 3328 }
   0x8   : > { %2230 = vmatprep.subr.bf16.mxu1 (!%p164_p2), %v2316_v1  ;;  %1979 = vmatprep.subr.bf16.mxu0 (!%p164_p2), %v2316_v1  ;;  %v2270_v34 = vld [vmem:[%s3018_s1 + $0x50] sm:$0xff] (!%p164_p2)   ;;  %v2271_v42 = vld [vmem:[%s3018_s1 + $0x18] sm:$0xff] (!%p164_p2)   ;;  %vm576_vm4 = vmand (!%p164_p2), %vm309_vm1, %vm554_vm3  ;;  %vm247_vm5 = vsmask.f32 (!%p164_p2), 4352  ;;  %vm293_vm6 = vcmask (!%p164_p2), 1044480   ;;  %vm1004_vm9 = vcmask (!%p164_p2), 1047552  }
   0x9   : > { %1993 = vmatprep.mubr.msk.bf16.mxu1 (!%p164_p2), %vm2317_vm0, %v2316_v1  ;;  %1985 = vmatprep.mubr.msk.bf16.mxu0 (!%p164_p2), %vm2317_vm0, %v2316_v1  ;;  %v2272_v47 = vld [vmem:[%s3018_s1 + $0x58] sm:$0xff] (!%p164_p2)   ;;  %v2274_v59 = vld [vmem:[%s3018_s1 + $0x80] sm:$0xff] (!%p164_p2)   ;;  %vm2545_vm7 = vmand (!%p164_p2), %vm293_vm6, %vm247_vm5  ;;  %vm984_vm8 = vsmask.f32 (!%p164_p2), 7424  ;;  %vm710_vm11 = vsmask.f32 (!%p164_p2), 256 }
   0xa   : > { %vm2617_vm10 = vmand (!%p164_p2), %vm1004_vm9, %vm984_vm8  ;;  %vm726_vm12 = vcmask (!%p164_p2), 1040384  }
   0xb   : > { %2234 = vmatpush3.bf16.msra.mxu1 (!%p164_p2), %v2251_v2  ;;  %1980 = vmatpush3.bf16.msra.mxu0 (!%p164_p2), %v2251_v2  ;;  %vm727_vm13 = vmand (!%p164_p2), %vm726_vm12, %vm710_vm11 }
   0xc   : > { %2231 = vmatprep.subr.bf16.mxu1 (!%p164_p2), %v2316_v1  ;;  %1981 = vmatprep.subr.bf16.mxu0 (!%p164_p2), %v2316_v1 }
   0xd   : > { %s3027_s21 = smov (!%p190_p3, %s189_s21), 19 }
   0xe   : > { %s1778_s24 = sshll.u32 %s3027_s21, 2 }
   0xf   : > { %s2382_s29 = scalar_lea.vmem %s3017_s0, %s1778_s24  ;;  %2235 = vmatpush3.bf16.msra.mxu1 %v2252_v3  ;;  %1982 = vmatpush3.bf16.msra.mxu0 %v2252_v3  ;;  %s2970_s30 = scalar_lea.vmem %s3021_s4, %s1778_s24 }
  0x10   : > { %v205_v5 = vld [vmem:[%s2382_s29 + $0xc] sm:$0xf]  ;;  %v2386_v6 = vld [vmem:[%s2382_s29 + $0x10] sm:$0xf]  ;;  %v202_v7 = vld [vmem:[%s2382_s29] sm:$0xf]  ;;  %2232 = vmatprep.subr.bf16.mxu1 %v2316_v1  ;;  %1983 = vmatprep.subr.bf16.mxu0 %v2316_v1 }
  0x11   : > { %v211_v8 = vld [vmem:[%s2382_s29 + $0x24] sm:$0xf]  ;;  %v2392_v9 = vcombine.low %v202_v7, %v202_v7  ;;  %v2396_v11 = vcombine.low %v205_v5, %v2386_v6  ;;  %v2402_v13 = vld [vmem:[%s2382_s29 + $0x20] sm:$0xf]  ;;  %v207_v20 = vld [vmem:[%s2382_s29 + $0x14] sm:$0xf] }
  0x12   : > { %v203_v10 = vld [vmem:[%s2382_s29 + $0x4] sm:$0xf]  ;;  %v2409_v16 = vcombine.low %v211_v8, %v211_v8  ;;  %v2421_v19 = vcombine.low %v2402_v13, %v211_v8  ;;  %v208_v21 = vld [vmem:[%s2382_s29 + $0x18] sm:$0xf]  ;;  %v209_v22 = vld [vmem:[%s2382_s29 + $0x1c] sm:$0xf]  ;;  %v2509_v52 = vcombine.low %v2386_v6, %v207_v20 }
  0x13   : > { %2236 = vmatpush3.bf16.msra.mxu1 %v2253_v4  ;;  %1984 = vmatpush3.bf16.msra.mxu0 %v2253_v4  ;;  %v312_v14 = vsel %vm309_vm1, %v211_v8, %v2392_v9  ;;  %v2406_v15 = vcombine.low %v202_v7, %v203_v10  ;;  %v204_v24 = vld [vmem:[%s2382_s29 + $0x8] sm:$0xf]  ;;  %v2436_v26 = vcombine.low %v208_v21, %v209_v22  ;;  %v2273_v7 = vld [vmem:[%s3018_s1 + $0x60] sm:$0xff]  }
  0x14   : > { %2005 = vmatprep.subr.bf16.mxu1 %v2316_v1  ;;  %2033 = vmatprep.subr.bf16.mxu0 %v2316_v1  ;;  %v549_v28 = vshll.u32 %v2409_v16, 16  ;;  %v2450_v30 = vshrl.u32 %v2421_v19, 16  ;;  %v2453_v31 = vshll.u32 %v2421_v19, 16  ;;  %v2455_v32 = vcombine.low %v207_v20, %v208_v21 }
  0x15   : > { %v2434_v25 = vshrl.u32 %v2406_v15, 16  ;;  %v2440_v27 = vshll.u32 %v2406_v15, 16  ;;  %v2457_v33 = vcombine.low %v203_v10, %v204_v24  ;;  %v2463_v35 = vshrl.u32 %v2436_v26, 16 }
  0x16   : > { %1994 = vmatmul.mubr.msk.bf16.vlgmr.msra.gmra.mrb[0].mxu1 %vm345_vm2, %v2396_v11  ;;  %1986 = vmatmul.mubr.msk.bf16.vlgmr.msra.gmra.mrb[0].mxu0 %vm345_vm2, %v312_v14  ;;  %v2466_v36 = vshll.u32 %v2436_v26, 16  ;;  %v547_v37 = vshrl.u32 %v2409_v16, 16  ;;  %v2470_v38 = vrot.slane %v549_v28, 1  ;;  %v2474_v41 = vcombine.low %v204_v24, %v205_v5  ;;  %v2276_v5 = vld [vmem:[%s3018_s1 + $0x88] sm:$0xff]  }
  0x17   : > { %2006 = vmatpush3.bf16.msra.mxu1 %v2255_v12  ;;  %1997 = vmatprep.mubr.msk.bf16.mxu1 %vm2317_vm0, %v2316_v1  ;;  %v555_v39 = vrot.slane %v2434_v25, 4  ;;  %v556_v40 = vrot.slane %v2440_v27, 5  ;;  %v220_v43 = vrot.slane %v2450_v30, 3  ;;  %v223_v44 = vrot.slane %v2453_v31, 4 }
  0x18   : > { %2007 = vmatprep.subr.bf16.mxu1 %v2316_v1  ;;  %2034 = vmatpush3.bf16.msra.mxu0 %v2262_v17  ;;  %v277_v45 = vrot.slane %v2463_v35, 3  ;;  %v280_v46 = vrot.slane %v2466_v36, 4  ;;  %v552_v48 = vor.u32 %v2470_v38, %v547_v37  ;;  %v2500_v50 = vshrl.u32 %v2474_v41, 16 }
  0x19   : > { %2035 = vmatprep.subr.bf16.mxu0 %v2316_v1  ;;  %1989 = vmatprep.mubr.msk.bf16.mxu0 %vm2317_vm0, %v2316_v1  ;;  %v557_v49 = vor.u32 %v556_v40, %v555_v39  ;;  %v2503_v51 = vshll.u32 %v2474_v41, 16  ;;  %v2512_v53 = vcombine.low %v209_v22, %v2402_v13  ;;  %v2514_v54 = vor.u32 %v223_v44, %v220_v43 }
  0x1a   : > { %v251_v55 = vrot.slane %v2434_v25, 3  ;;  %v254_v56 = vrot.slane %v2440_v27, 4  ;;  %v2518_v57 = vor.u32 %v280_v46, %v277_v45  ;;  %v558_v60 = vrot.slane %v2500_v50, 4  ;;  %v2275_v45 = vld [vmem:[%s3018_s1 + $0x68] sm:$0xff]  }
  0x1b   : > { %2008 = vmatpush3.bf16.msra.mxu1 %v2256_v18  ;;  %v2520_v58 = vsel %vm576_vm4, %v552_v48, %v557_v49  ;;  %v559_v61 = vrot.slane %v2503_v51, 5  ;;  %v2535_v63 = vshrl.u32 %v2509_v52, 16  ;;  %v2540_v0 = vshll.u32 %v2509_v52, 16 }
  0x1c   : > { %2009 = vmatprep.subr.bf16.mxu1 %v2316_v1  ;;  %2036 = vmatpush3.bf16.msra.mxu0 %v2264_v23  ;;  %v2532_v62 = vsel %vm247_vm5, %v2518_v57, %v2514_v54  ;;  %v255_v2 = vor.u32 %v254_v56, %v251_v55  ;;  %v722_v4 = vrot.slane %v2450_v30, 7  ;;  %v985_v6 = vrot.slane %v2440_v27, 1  ;;  %v2281_v56 = vld [vmem:[%s3018_s1 + $0x98] sm:$0xff]  }
  0x1d   : > { %2037 = vmatprep.subr.bf16.mxu0 %v2316_v1  ;;  %v259_v8 = vrot.slane %v2500_v50, 3  ;;  %v560_v10 = vor.u32 %v559_v61, %v558_v60  ;;  %v987_v14 = vrot.slane %v2503_v51, 1  ;;  %v262_v17 = vrot.slane %v2503_v51, 4 }
  0x1e   : > { %1998 = vmatmul.mubr.msk.bf16.gmra.mrb[4].mxu1 %vm345_vm2, %v2455_v32  ;;  %1990 = vmatmul.mubr.msk.bf16.gmra.mrb[4].mxu0 %vm345_vm2, %v2457_v33  ;;  %v2564_v12 = vor.u32 %v722_v4, %v2453_v31  ;;  %v562_v18 = vrot.slane %v2535_v63, 4  ;;  %v986_v20 = vor.u32 %v985_v6, %v2434_v25  ;;  %v295_v21 = vsel %vm2545_vm7, %v2514_v54, %v255_v2 }
  0x1f   : > { %2010 = vmatpush3.bf16.msra.mxu1 %v2263_v29  ;;  %2001 = vmatprep.mubr.msk.bf16.mxu1 %vm2317_vm0, %v2316_v1  ;;  %v989_v22 = vor.u32 %v987_v14, %v2500_v50  ;;  %v563_v23 = vrot.slane %v2540_v0, 5  ;;  %v990_v28 = vrot.slane %v2540_v0, 1  ;;  %v561_v29 = vsel %vm554_vm3, %v557_v49, %v560_v10 }
  0x20   : > { %2038 = vmatpush3.bf16.msra.mxu0 %v2270_v34  ;;  %2011 = vmatprep.subr.bf16.mxu1 %v2316_v1  ;;  %v2576_v24 = vsel %vm984_vm8, %v986_v20, %v987_v14  ;;  %v2278_v34 = vld [vmem:[%s3018_s1 + $0x90] sm:$0xff]   ;;  %v993_v39 = vrot.slane %v2466_v36, 1  ;;  %v996_v43 = vrot.slane %v2453_v31, 1  ;;  %v263_v44 = vor.u32 %v262_v17, %v259_v8 }
  0x21   : > { %2039 = vmatprep.subr.bf16.mxu0 %v2316_v1  ;;  %2041 = vmatprep.mubr.msk.bf16.mxu0 %vm2317_vm0, %v2316_v1  ;;  %v2587_v40 = vsel %vm984_vm8, %v989_v22, %v990_v28  ;;  %v564_v48 = vor.u32 %v563_v23, %v562_v18  ;;  %v1138_v4 = vshrl.u32 %v2392_v9, 16  ;;  %v268_v6 = vrot.slane %v2535_v63, 3  ;;  %v2277_v14 = vld [vmem:[%s3018_s1 + $0x70] sm:$0xff]  }
  0x22   : > { %v995_v46 = vor.u32 %v993_v39, %v2463_v35  ;;  %v2604_v55 = vor.u32 %v996_v43, %v2450_v30  ;;  %v271_v8 = vrot.slane %v2540_v0, 4  ;;  %v570_v3 = vrot.slane %v2450_v30, 4 }
  0x23   : > { %2012 = vmatpush3.bf16.msra.mxu1 %v2271_v42  ;;  %v992_v42 = vor.u32 %v990_v28, %v2535_v63  ;;  %v1140_v18 = vrot.slane %v1138_v4, 3  ;;  %v565_v20 = vsel %vm554_vm3, %v560_v10, %v564_v48  ;;  %v2279_v10 = vld [vmem:[%s3018_s1 + $0x78] sm:$0xff]   ;;  %v2283_v4 = vld [vmem:[%s3018_s1 + $0xc0] sm:$0xff]   ;;  %v1404_v61 = vshll.u32 %v2512_v53, 16 }
  0x24   : > { %2040 = vmatpush3.bf16.msra.mxu0 %v2272_v47  ;;  %2061 = vmatprep.subr.bf16.mxu1 %v2316_v1  ;;  %v1000_v47 = vshll.u32 %v2392_v9, 16  ;;  %v272_v23 = vor.u32 %v271_v8, %v268_v6  ;;  %v2284_v8 = vld [vmem:[%s3018_s1 + $0xa8] sm:$0xff]  }
  0x25   : > { %2089 = vmatprep.subr.bf16.mxu0 %v2316_v1  ;;  %v2601_v49 = vsel %vm984_vm8, %v992_v42, %v993_v39  ;;  %v1785_v39 = vcombine.low %v2402_v13, %v2402_v13  ;;  %v571_v42 = vrot.slane %v2453_v31, 5  ;;  %v2672_v13 = vsel %vm309_vm1, %v2409_v16, %v2392_v9  ;;  %v2282_v16 = vld [vmem:[%s3018_s1 + $0xa0] sm:$0xff]  }
  0x26   : > { %2002 = vmatmul.mubr.msk.bf16.gmra.mrb[8].mxu1 %vm345_vm2, %v2512_v53  ;;  %v2614_v60 = vrot.slane %v1000_v47, 1  ;;  %v2679_v31 = vsel %vm247_vm5, %v272_v23, %v2518_v57 }
  0x27   : > { %2013 = vmatprep.mubr.msk.bf16.mxu1 %vm2317_vm0, %v2316_v1  ;;  %2042 = vmatmul.mubr.msk.bf16.vlgmr.msra.gmra.mrb[8].mxu0 %vm345_vm2, %v2520_v58  ;;  %v572_v30 = vor.u32 %v571_v42, %v570_v3  ;;  %v1589_v3 = vld [vmem:[%s3020_s3 + $0x18] sm:$0xff] }
  0x28   : > { %2090 = vmatpush3.bf16.msra.mxu0 %v2274_v59  ;;  %2045 = vmatprep.mubr.msk.bf16.mxu0 %vm2317_vm0, %v2316_v1  ;;  %v2612_v59 = vsel %vm984_vm8, %v995_v46, %v996_v43  ;;  %v1006_v17 = vsel %vm2617_vm10, %v2604_v55, %v2614_v60  ;;  %v284_v43 = vshrl.u32 %v1785_v39, 16  ;;  %v2296_v42 = vld [vmem:[%s3018_s1 + $0xf8] sm:$0xff]   ;;  %v1406_v60 = vrot.slane %v1404_v61, 1 }
  0x29   : > { %2091 = vmatprep.subr.bf16.mxu0 %v2316_v1 }
  0x2c   : > { %2092 = vmatpush3.bf16.msra.mxu0 %v2276_v5  ;;  %v1141_v5 = vrot.slane %v1000_v47, 4 }
  0x2d   : > { %2093 = vmatprep.subr.bf16.mxu0 %v2316_v1 }
  0x2e   : > { %2014 = vmatmul.mubr.msk.bf16.vlgmr.msra.gmra.mrb[12].mxu1 %vm345_vm2, %v295_v21  ;;  %v567_v21 = vrot.slane %v2466_v36, 5  ;;  %v1142_v22 = vor.u32 %v1141_v5, %v1140_v18  ;;  %v708_v5 = vrot.slane %v547_v37, 3 }
  0x2f   : > { %2062 = vmatpush3.bf16.msra.mxu1 %v2273_v7  ;;  %2017 = vmatprep.mubr.msk.bf16.mxu1 %vm2317_vm0, %v2316_v1  ;;  %v2625_v7 = vsel %vm247_vm5, %v255_v2, %v263_v44  ;;  %v566_v2 = vrot.slane %v2463_v35, 4 }
  0x30   : > { %2046 = vmatmul.mubr.msk.bf16.gmra.mrb[12].mxu0 %vm345_vm2, %v561_v29  ;;  %2063 = vmatprep.subr.bf16.mxu1 %v2316_v1  ;;  %v2650_v28 = vsel %vm2545_vm7, %v2514_v54, %v1142_v22  ;;  %v2292_v22 = vld [vmem:[%s3018_s1 + $0xe8] sm:$0xff]  }
  0x31   : > { %2049 = vmatprep.mubr.msk.bf16.mxu0 %vm2317_vm0, %v2316_v1  ;;  %2094 = vmatpush3.bf16.msra.mxu0 %v2278_v34  ;;  %v568_v29 = vor.u32 %v567_v21, %v566_v2  ;;  %v2657_v34 = vsel %vm247_vm5, %v263_v44, %v272_v23  ;;  %v287_v44 = vshll.u32 %v1785_v39, 16  ;;  %v719_v2 = vrot.slane %v2463_v35, 7 }
  0x32   : > { %2095 = vmatprep.subr.bf16.mxu0 %v2316_v1  ;;  %v2318_v21 = vmov 0  }
  0x33   : > { %2064 = vmatpush3.bf16.msra.mxu1 %v2275_v45  ;;  %v569_v54 = vsel %vm554_vm3, %v564_v48, %v568_v29  ;;  %v286_v45 = vrot.slane %v284_v43, 3  ;;  %v289_v46 = vrot.slane %v287_v44, 4  ;;  %v573_v47 = vsel %vm554_vm3, %v568_v29, %v572_v30  ;;  %2248 = vset.pattern.permute.xlu0 %v2318_v21  ;;  %v1588_v29 = vld [vmem:[%s3020_s3 + $0x10] sm:$0xff]  ;;  %v1591_v43 = vld [vmem:[%s3020_s3 + $0x28] sm:$0xff]  ;;  %v1590_v44 = vld [vmem:[%s3020_s3 + $0x20] sm:$0xff] }
  0x34   : > { %2065 = vmatprep.subr.bf16.mxu1 %v2316_v1  ;;  %v724_v35 = vsel %vm710_vm11, %v719_v2, %v2564_v12  ;;  %v1586_v12 = vld [vmem:[%s3020_s3] sm:$0xff]  ;;  %2249 = vset.pattern.permute.xlu1 %v2318_v21  ;;  %vm1598_vm1 = vcmp.gt.f32.partialorder %v1588_v29, 0.5  ;;  %vm1599_vm3 = vcmp.gt.f32.partialorder %v1589_v3, 0.5  ;;  %vm1601_vm4 = vcmp.gt.f32.partialorder %v1591_v43, 0.5 }
  0x35   : > { %2096 = vmatpush3.bf16.msra.mxu0 %v2281_v56  ;;  %v290_v9 = vor.u32 %v289_v46, %v286_v45  ;;  %v711_v56 = vrot.slane %v2434_v25, 7  ;;  %v2285_v25 = vld [vmem:[%s3018_s1 + $0xc8] sm:$0xff]   ;;  %vm1596_vm14 = vcmp.gt.f32.partialorder %v1586_v12, 0.5  ;;  %v1611_v30 = vsel %vm1601_vm4, 1, %v2318_v21  ;;  %v1593_v45 = vld [vmem:[%s3020_s3 + $0x38] sm:$0xff]  ;;  %v1592_v46 = vld [vmem:[%s3020_s3 + $0x30] sm:$0xff] }
  0x36   : > { %2018 = vmatmul.mubr.msk.bf16.gmra.mrb[16].mxu1 %vm345_vm2, %v2625_v7  ;;  %2145 = vmatprep.subr.bf16.mxu0 %v2316_v1  ;;  %v1606_v23 = vsel %vm1596_vm14, 1, %v2318_v21  ;;  %vm1603_vm6 = vcmp.gt.f32.partialorder %v1593_v45, 0.5  ;;  %vm1602_vm7 = vcmp.gt.f32.partialorder %v1592_v46, 0.5 }
  0x37   : > { %2021 = vmatprep.mubr.msk.bf16.mxu1 %vm2317_vm0, %v2316_v1  ;;  %2066 = vmatpush3.bf16.msra.mxu1 %v2277_v14  ;;  %v291_v48 = vsel %vm247_vm5, %v2518_v57, %v290_v9  ;;  %v712_v6 = vor.u32 %v711_v56, %v2440_v27  ;;  %v713_v27 = vrot.slane %v2500_v50, 7  ;;  %v2289_v50 = vld [vmem:[%s3018_s1 + $0xd8] sm:$0xff]   ;;  %v716_v14 = vrot.slane %v2535_v63, 7 }
  0x38   : > { %2050 = vmatmul.mubr.msk.bf16.gmra.mrb[16].mxu0 %vm345_vm2, %v565_v20  ;;  %2067 = vmatprep.subr.bf16.mxu1 %v2316_v1  ;;  %v2288_v63 = vld [vmem:[%s3018_s1 + $0xb8] sm:$0xff]   ;;  %vm1600_vm5 = vcmp.gt.f32.partialorder %v1590_v44, 0.5  ;;  %v1386_v9 = vshll.u32 %v2457_v33, 16 }
  0x39   : > { %2053 = vmatprep.mubr.msk.bf16.mxu0 %vm2317_vm0, %v2316_v1  ;;  %v728_v57 = vsel %vm727_vm13, %v708_v5, %v712_v6  ;;  %v714_v37 = vor.u32 %v713_v27, %v2503_v51  ;;  %v717_v18 = vor.u32 %v716_v14, %v2540_v0  ;;  %v720_v0 = vor.u32 %v719_v2, %v2466_v36  ;;  %v2290_v36 = vld [vmem:[%s3018_s1 + $0xe0] sm:$0xff]  }
  0x3a   : > { %1617 = vperm.xlu0 %2248, %v1606_v23   ;;  %v1384_v5 = vshrl.u32 %v2457_v33, 16  ;;  %v1388_v6 = vrot.slane %v1386_v9, 1 }
  0x3b   : > { %2068 = vmatpush3.bf16.msra.mxu1 %v2279_v10  ;;  %v715_v51 = vsel %vm710_vm11, %v711_v56, %v714_v37  ;;  %v718_v20 = vsel %vm710_vm11, %v713_v27, %v717_v18  ;;  %v1587_v10 = vld [vmem:[%s3020_s3 + $0x8] sm:$0xff]  ;;  %v1594_v56 = vld [vmem:[%s3020_s3 + $0x40] sm:$0xff]  ;;  %v1397_v37 = vshll.u32 %v2455_v32, 16 }
  0x3c   : > { %2117 = vmatprep.subr.bf16.mxu1 %v2316_v1  ;;  %vm1597_vm15 = vcmp.gt.f32.partialorder %v1587_v10, 0.5 }
  0x3d   : > { %v1607_v39 = vsel %vm1597_vm15, 1, %v2318_v21 }
  0x3e   : > { %2022 = vmatmul.mubr.msk.bf16.gmra.mrb[20].mxu1 %vm345_vm2, %v2657_v34  ;;  %1620 = vperm.xlu0 %2248, %v1607_v39  }
  0x3f   : > { %2025 = vmatprep.mubr.msk.bf16.mxu1 %vm2317_vm0, %v2316_v1 }
  0x40   : > { %2054 = vmatmul.mubr.msk.bf16.gmra.mrb[20].mxu0 %vm345_vm2, %v569_v54  ;;  %v1608_v54 = vsel %vm1598_vm1, 1, %v2318_v21 }
  0x41   : > { %2057 = vmatprep.mubr.msk.bf16.mxu0 %vm2317_vm0, %v2316_v1  ;;  %1623 = vperm.xlu1 %2249, %v1608_v54  }
  0x46   : > { %2026 = vmatmul.mubr.msk.bf16.gmra.mrb[24].mxu1 %vm345_vm2, %v2679_v31 }
  0x47   : > { %2029 = vmatprep.mubr.msk.bf16.mxu1 %vm2317_vm0, %v2316_v1 }
  0x48   : > { %2058 = vmatmul.mubr.msk.bf16.gmra.mrb[24].mxu0 %vm345_vm2, %v573_v47  ;;  %v1613_v47 = vsel %vm1603_vm6, 1, %v2318_v21 }
  0x49   : > { %2097 = vmatprep.mubr.msk.bf16.mxu0 %vm2317_vm0, %v2316_v1 }
  0x4e   : > { %2030 = vmatmul.mubr.msk.bf16.gmra.mrb[28].mxu1 %vm345_vm2, %v291_v48  ;;  %v1595_v48 = vld [vmem:[%s3020_s3 + $0x48] sm:$0xff] }
  0x4f   : > { %2069 = vmatprep.mubr.msk.bf16.mxu1 %vm2317_vm0, %v2316_v1  ;;  %vm1605_vm9 = vcmp.gt.f32.partialorder %v1595_v48, 0.5 }
  0x50   : > { %2098 = vmatmul.mubr.msk.bf16.vlgmr.msra.gmra.mrb[28].mxu0 %vm345_vm2, %v2406_v15  ;;  %v2287_v15 = vld [vmem:[%s3018_s1 + $0xd0] sm:$0xff]  }
  0x51   : > { %2146 = vmatpush3.bf16.msra.mxu0 %v2283_v4  ;;  %2101 = vmatprep.mubr.msk.bf16.mxu0 %vm2317_vm0, %v2316_v1 }
  0x52   : > { %2147 = vmatprep.subr.bf16.mxu0 %v2316_v1 }
  0x55   : > { %2148 = vmatpush3.bf16.msra.mxu0 %v2285_v25  ;;  %v1390_v25 = vshll.u32 %v2396_v11, 16 }
  0x56   : > { %2070 = vmatmul.mubr.msk.bf16.vlgmr.msra.gmra.mrb[32].mxu1 %vm345_vm2, %v728_v57  ;;  %2149 = vmatprep.subr.bf16.mxu0 %v2316_v1  ;;  %v1389_v57 = vor.u32 %v1388_v6, %v1384_v5 }
  0x57   : > { %2118 = vmatpush3.bf16.msra.mxu1 %v2282_v16  ;;  %2073 = vmatprep.mubr.msk.bf16.mxu1 %vm2317_vm0, %v2316_v1  ;;  %v1392_v16 = vrot.slane %v1390_v25, 1 }
  0x58   : > { %2102 = vmatmul.mubr.msk.bf16.gmra.mrb[32].mxu0 %vm345_vm2, %v2474_v41  ;;  %2119 = vmatprep.subr.bf16.mxu1 %v2316_v1  ;;  %v2286_v41 = vld [vmem:[%s3018_s1 + $0xb0] sm:$0xff]  }
  0x59   : > { %2105 = vmatprep.mubr.msk.bf16.mxu0 %vm2317_vm0, %v2316_v1  ;;  %2150 = vmatpush3.bf16.msra.mxu0 %v2287_v15  ;;  %v1393_v27 = vsel %vm984_vm8, %v1389_v57, %v1392_v16  ;;  %v1394_v15 = vshrl.u32 %v2396_v11, 16 }
  0x5a   : > { %2151 = vmatprep.subr.bf16.mxu0 %v2316_v1 }
  0x5b   : > { %2120 = vmatpush3.bf16.msra.mxu1 %v2284_v8 }
  0x5c   : > { %2121 = vmatprep.subr.bf16.mxu1 %v2316_v1 }
  0x5d   : > { %2152 = vmatpush3.bf16.msra.mxu0 %v2289_v50  ;;  %v1401_v50 = vshrl.u32 %v2455_v32, 16 }
  0x5e   : > { %2074 = vmatmul.mubr.msk.bf16.gmra.mrb[36].mxu1 %vm345_vm2, %v715_v51  ;;  %2201 = vmatprep.subr.bf16.mxu0 %v2316_v1  ;;  %v1408_v51 = vshrl.u32 %v2512_v53, 16 }
  0x5f   : > { %2077 = vmatprep.mubr.msk.bf16.mxu1 %vm2317_vm0, %v2316_v1  ;;  %2122 = vmatpush3.bf16.msra.mxu1 %v2286_v41 }
  0x60   : > { %2106 = vmatmul.mubr.msk.bf16.gmra.mrb[36].mxu0 %vm345_vm2, %v2509_v52  ;;  %2123 = vmatprep.subr.bf16.mxu1 %v2316_v1  ;;  %v721_v52 = vsel %vm710_vm11, %v716_v14, %v720_v0  ;;  %vm1604_vm11 = vcmp.gt.f32.partialorder %v1594_v56, 0.5 }
  0x61   : > { %2109 = vmatprep.mubr.msk.bf16.mxu0 %vm2317_vm0, %v2316_v1  ;;  %v1614_v4 = vsel %vm1604_vm11, 1, %v2318_v21 }
  0x63   : > { %2124 = vmatpush3.bf16.msra.mxu1 %v2288_v63 }
  0x64   : > { %2173 = vmatprep.subr.bf16.mxu1 %v2316_v1 }
  0x66   : > { %2078 = vmatmul.mubr.msk.bf16.gmra.mrb[40].mxu1 %vm345_vm2, %v718_v20 }
  0x67   : > { %2081 = vmatprep.mubr.msk.bf16.mxu1 %vm2317_vm0, %v2316_v1 }
  0x68   : > { %2110 = vmatmul.mubr.msk.bf16.gmra.mrb[40].mxu0 %vm345_vm2, %v2436_v26  ;;  %v2291_v26 = vld [vmem:[%s3018_s1 + $0x100] sm:$0xff]  }
  0x69   : > { %2113 = vmatprep.mubr.msk.bf16.mxu0 %vm2317_vm0, %v2316_v1 }
  0x6e   : > { %2082 = vmatmul.mubr.msk.bf16.gmra.mrb[44].mxu1 %vm345_vm2, %v721_v52 }
  0x6f   : > { %2085 = vmatprep.mubr.msk.bf16.mxu1 %vm2317_vm0, %v2316_v1 }
  0x70   : > { %2114 = vmatmul.mubr.msk.bf16.gmra.mrb[44].mxu0 %vm345_vm2, %v2421_v19  ;;  %v2293_v19 = vld [vmem:[%s3018_s1 + $0x108] sm:$0xff]  }
  0x71   : > { %2153 = vmatprep.mubr.msk.bf16.mxu0 %vm2317_vm0, %v2316_v1 }
  0x76   : > { %2086 = vmatmul.mubr.msk.bf16.gmra.mrb[48].mxu1 %vm345_vm2, %v724_v35 }
  0x77   : > { %2125 = vmatprep.mubr.msk.bf16.mxu1 %vm2317_vm0, %v2316_v1 }
  0x78   : > { %2154 = vmatmul.mubr.msk.bf16.vlgmr.msra.gmra.mrb[48].mxu0 %vm345_vm2, %v2625_v7  ;;  %v2295_v7 = vld [vmem:[%s3018_s1 + $0x110] sm:$0xff]  }
  0x79   : > { %2202 = vmatpush3.bf16.msra.mxu0 %v2291_v26  ;;  %2157 = vmatprep.mubr.msk.bf16.mxu0 %vm2317_vm0, %v2316_v1 }
  0x7a   : > { %2203 = vmatprep.subr.bf16.mxu0 %v2316_v1 }
  0x7d   : > { %2204 = vmatpush3.bf16.msra.mxu0 %v2293_v19 }
  0x7e   : > { %2126 = vmatmul.mubr.msk.bf16.vlgmr.msra.gmra.mrb[52].mxu1 %vm345_vm2, %v2576_v24  ;;  %2205 = vmatprep.subr.bf16.mxu0 %v2316_v1  ;;  %v2297_v24 = vld [vmem:[%s3018_s1 + $0x118] sm:$0xff]  }
  0x7f   : > { %2174 = vmatpush3.bf16.msra.mxu1 %v2290_v36  ;;  %2129 = vmatprep.mubr.msk.bf16.mxu1 %vm2317_vm0, %v2316_v1 }
  0x80   : > { %2158 = vmatmul.mubr.msk.bf16.gmra.mrb[52].mxu0 %vm345_vm2, %v2657_v34  ;;  %2175 = vmatprep.subr.bf16.mxu1 %v2316_v1  ;;  %v2294_v34 = vld [vmem:[%s3018_s1 + $0xf0] sm:$0xff]  }
  0x81   : > { %2161 = vmatprep.mubr.msk.bf16.mxu0 %vm2317_vm0, %v2316_v1  ;;  %2206 = vmatpush3.bf16.msra.mxu0 %v2295_v7 }
  0x82   : > { %2207 = vmatprep.subr.bf16.mxu0 %v2316_v1 }
  0x83   : > { %2176 = vmatpush3.bf16.msra.mxu1 %v2292_v22 }
  0x84   : > { %2177 = vmatprep.subr.bf16.mxu1 %v2316_v1 }
  0x85   : > { %2208 = vmatpush3.bf16.msra.mxu0 %v2297_v24 }
  0x86   : > { %2130 = vmatmul.mubr.msk.bf16.gmra.mrb[56].mxu1 %vm345_vm2, %v2587_v40  ;;  %v1609_v40 = vsel %vm1599_vm3, 1, %v2318_v21 }
  0x87   : > { %2133 = vmatprep.mubr.msk.bf16.mxu1 %vm2317_vm0, %v2316_v1  ;;  %2178 = vmatpush3.bf16.msra.mxu1 %v2294_v34 }
  0x88   : > { %2162 = vmatmul.mubr.msk.bf16.gmra.mrb[56].mxu0 %vm345_vm2, %v2679_v31  ;;  %2179 = vmatprep.subr.bf16.mxu1 %v2316_v1  ;;  %v1610_v31 = vsel %vm1600_vm5, 1, %v2318_v21 }
  0x89   : > { %2165 = vmatprep.mubr.msk.bf16.mxu0 %vm2317_vm0, %v2316_v1  ;;  %1626 = vperm.xlu1 %2249, %v1609_v40  }
  0x8a   : > { %1629 = vperm.xlu0 %2248, %v1610_v31  }
  0x8b   : > { %2180 = vmatpush3.bf16.msra.mxu1 %v2296_v42 }
  0x8d   : > { %1632 = vperm.xlu1 %2249, %v1611_v30  }
  0x8e   : > { %2134 = vmatmul.mubr.msk.bf16.gmra.mrb[60].mxu1 %vm345_vm2, %v2601_v49  ;;  %v1612_v49 = vsel %vm1602_vm7, 1, %v2318_v21 }
  0x8f   : > { %2137 = vmatprep.mubr.msk.bf16.mxu1 %vm2317_vm0, %v2316_v1  ;;  %1635 = vperm.xlu0 %2248, %v1612_v49  }
  0x90   : > { %2166 = vmatmul.mubr.msk.bf16.gmra.mrb[60].mxu0 %vm345_vm2, %v2532_v62  ;;  %v1615_v62 = vsel %vm1605_vm9, 1, %v2318_v21 }
  0x91   : > { %2169 = vmatprep.mubr.msk.bf16.mxu0 %vm2317_vm0, %v2316_v1  ;;  %1638 = vperm.xlu1 %2249, %v1613_v47  }
  0x93   : > { %1641 = vperm.xlu0 %2248, %v1614_v4  }
  0x95   : > { %1644 = vperm.xlu1 %2249, %v1615_v62  }
  0x96   : > { %2138 = vmatmul.mubr.msk.bf16.gmra.mrb[64].mxu1 %vm345_vm2, %v2612_v59  ;;  %v1396_v59 = vor.u32 %v1394_v15, %v1392_v16 }
  0x97   : > { %2141 = vmatprep.mubr.msk.bf16.mxu1 %vm2317_vm0, %v2316_v1 }
  0x98   : > { %2170 = vmatmul.mubr.msk.bf16.gmra.mrb[64].mxu0 %vm345_vm2, %v2650_v28  ;;  %v1399_v28 = vrot.slane %v1397_v37, 1 }
  0x99   : > { %2209 = vmatprep.mubr.msk.bf16.mxu0 %vm2317_vm0, %v2316_v1 }
  0x9a   : > { %v1400_v8 = vsel %vm984_vm8, %v1396_v59, %v1399_v28  ;;  %v1403_v55 = vor.u32 %v1401_v50, %v1399_v28 }
  0x9e   : > { %2142 = vmatmul.mubr.msk.bf16.gmra.mrb[68].mxu1 %vm345_vm2, %v1006_v17  ;;  %v1407_v17 = vsel %vm984_vm8, %v1403_v55, %v1406_v60 }
  0x9f   : > { %2181 = vmatprep.mubr.msk.bf16.mxu1 %vm2317_vm0, %v2316_v1 }
  0xa0   : > { %2210 = vmatmul.mubr.msk.bf16.vlgmr.msra.gmra.mrb[68].mxu0 %vm345_vm2, %v1393_v27 }
  0xa1   : > { %2213 = vmatprep.mubr.msk.bf16.mxu0 %vm2317_vm0, %v2316_v1 }
  0xa6   : > { %2182 = vmatmul.mubr.msk.bf16.vlgmr.msra.gmra.mrb[72].mxu1 %vm345_vm2, %v2457_v33  ;;  %v1410_v33 = vor.u32 %v1408_v51, %v1406_v60 }
  0xa7   : > { %2185 = vmatprep.mubr.msk.bf16.mxu1 %vm2317_vm0, %v2316_v1 }
  0xa8   : > { %2214 = vmatmul.mubr.msk.bf16.gmra.mrb[72].mxu0 %vm345_vm2, %v1400_v8  ;;  %v1411_v14 = vsel %vm984_vm8, %v1410_v33, %v2470_v38 }
  0xa9   : > { %2217 = vmatprep.mubr.msk.bf16.mxu0 %vm2317_vm0, %v2316_v1 }
  0xae   : > { %2186 = vmatmul.mubr.msk.bf16.gmra.mrb[76].mxu1 %vm345_vm2, %v2396_v11 }
  0xaf   : > { %2189 = vmatprep.mubr.msk.bf16.mxu1 %vm2317_vm0, %v2316_v1 }
  0xb0   : > { %2218 = vmatmul.mubr.msk.bf16.gmra.mrb[76].mxu0 %vm345_vm2, %v1407_v17 }
  0xb1   : > { %2221 = vmatprep.mubr.msk.bf16.mxu0 %vm2317_vm0, %v2316_v1 }
  0xb6   : > { %2190 = vmatmul.mubr.msk.bf16.gmra.mrb[80].mxu1 %vm345_vm2, %v2455_v32 }
  0xb7   : > { %2193 = vmatprep.mubr.msk.bf16.mxu1 %vm2317_vm0, %v2316_v1 }
  0xb8   : > { %2222 = vmatmul.mubr.msk.bf16.gmra.mrb[80].mxu0 %vm345_vm2, %v1411_v14 }
  0xb9   : > { %2225 = vmatprep.mubr.msk.bf16.mxu0 %vm2317_vm0, %v2316_v1 }
  0xbe   : > { %2194 = vmatmul.mubr.msk.bf16.gmra.mrb[84].mxu1 %vm345_vm2, %v2512_v53 }
  0xbf   : > { %2197 = vmatprep.mubr.msk.bf16.mxu1 %vm2317_vm0, %v2316_v1 }
  0xc0   : > { %2226 = vmatmul.mubr.msk.bf16.gmra.mrb[84].mxu0 %vm345_vm2, %v2520_v58 }
  0xc6   : > { %2198 = vmatmul.mubr.msk.bf16.gmra.mrb[88].mxu1 %vm345_vm2, %v2672_v13  ;;  %vm1706_vm2 = vcmask 519168  }
  0xe9   : > { %v410_v11 = vpop.f32.mrb[0].mxu1  ;;  %v394_v32 = vpop.f32.mrb[0].mxu0 }
  0xea   : > { %v1995_v38 = vpop.f32.mrb[1].mxu1  ;;  %v1987_v41 = vpop.f32.mrb[1].mxu0 }
  0xeb   : > { %v413_v18 = vpop.f32.mrb[2].mxu1  ;;  %v397_v63 = vpop.f32.mrb[2].mxu0 }
  0xec   : > { %v1996_v20 = vpop.f32.mrb[3].mxu1  ;;  %v1988_v2 = vpop.f32.mrb[3].mxu0 }
  0xf1   : > { %v418_v0 = vpop.f32.mrb[4].mxu1  ;;  %v402_v52 = vpop.f32.mrb[4].mxu0 }
  0xf2   : > { %v1999_v53 = vpop.f32.mrb[5].mxu1  ;;  %v1991_v35 = vpop.f32.mrb[5].mxu0 }
  0xf3   : > { %v421_v26 = vpop.f32.mrb[6].mxu1  ;;  %v405_v1 = vpop.f32.mrb[6].mxu0 }
  0xf4   : > { %v2000_v19 = vpop.f32.mrb[7].mxu1  ;;  %v1992_v36 = vpop.f32.mrb[7].mxu0 }
  0xf9   : > { %v426_v58 = vpop.f32.mrb[8].mxu1 }
  0xfa   : > { %v2003_v12 = vpop.f32.mrb[9].mxu1  ;;  %v659_v7 = vpop.f32.mrb[8].mxu0 }
  0xfb   : > { %v429_v13 = vpop.f32.mrb[10].mxu1  ;;  %v2043_v21 = vpop.f32.mrb[9].mxu0 }
  0xfc   : > { %v2004_v22 = vpop.f32.mrb[11].mxu1  ;;  %v662_v23 = vpop.f32.mrb[10].mxu0 }
  0xfd   : > { %v2044_v24 = vpop.f32.mrb[11].mxu0 }
 0x101   : > { %v506_v10 = vpop.f32.mrb[12].mxu1 }
 0x102   : > { %v507_v29 = vadd.f32 %v506_v10, %v394_v32  ;;  %v2015_v34 = vpop.f32.mrb[13].mxu1 }
 0x103   : > { %v509_v39 = vpop.f32.mrb[14].mxu1  ;;  %v667_v54 = vpop.f32.mrb[12].mxu0 }
 0x104   : > { %v698_v3 = vadd.f32 %v659_v7, %v507_v29  ;;  %v510_v42 = vadd.f32 %v509_v39, %v397_v63  ;;  %v2016_v40 = vpop.f32.mrb[15].mxu1  ;;  %v2047_v43 = vpop.f32.mrb[13].mxu0 }
 0x105   : > { %v670_v44 = vpop.f32.mrb[14].mxu0 }
 0x106   : > { %v699_v30 = vadd.f32 %v662_v23, %v510_v42  ;;  %v2048_v31 = vpop.f32.mrb[15].mxu0 }
 0x109   : > { %v514_v45 = vpop.f32.mrb[16].mxu1 }
 0x10a   : > { %v515_v46 = vadd.f32 %v514_v45, %v402_v52  ;;  %v2019_v47 = vpop.f32.mrb[17].mxu1 }
 0x10b   : > { %v517_v49 = vpop.f32.mrb[18].mxu1  ;;  %v675_v9 = vpop.f32.mrb[16].mxu0 }
 0x10c   : > { %v700_v48 = vadd.f32 %v667_v54, %v515_v46  ;;  %v518_v56 = vadd.f32 %v517_v49, %v405_v1  ;;  %v2020_v62 = vpop.f32.mrb[19].mxu1  ;;  %v2051_v4 = vpop.f32.mrb[17].mxu0 }
 0x10d   : > { %v678_v5 = vpop.f32.mrb[18].mxu0 }
 0x10e   : > { %v701_v6 = vadd.f32 %v670_v44, %v518_v56  ;;  %v2052_v25 = vpop.f32.mrb[19].mxu0 }
 0x111   : > { %v522_v57 = vpop.f32.mrb[20].mxu1 }
 0x112   : > { %v523_v16 = vadd.f32 %v522_v57, %v410_v11  ;;  %v2023_v27 = vpop.f32.mrb[21].mxu1 }
 0x113   : > { %v525_v15 = vpop.f32.mrb[22].mxu1  ;;  %v683_v37 = vpop.f32.mrb[20].mxu0 }
 0x114   : > { %v702_v59 = vadd.f32 %v675_v9, %v523_v16  ;;  %v526_v28 = vadd.f32 %v525_v15, %v413_v18  ;;  %v2024_v8 = vpop.f32.mrb[23].mxu1  ;;  %v2055_v50 = vpop.f32.mrb[21].mxu0 }
 0x115   : > { %v686_v61 = vpop.f32.mrb[22].mxu0 }
 0x116   : > { %v703_v55 = vadd.f32 %v678_v5, %v526_v28  ;;  %v2056_v60 = vpop.f32.mrb[23].mxu0 }
 0x119   : > { %v530_v17 = vpop.f32.mrb[24].mxu1 }
 0x11a   : > { %v531_v51 = vadd.f32 %v530_v17, %v418_v0  ;;  %v2027_v33 = vpop.f32.mrb[25].mxu1 }
 0x11b   : > { %v533_v14 = vpop.f32.mrb[26].mxu1  ;;  %v691_v32 = vpop.f32.mrb[24].mxu0 }
 0x11c   : > { %v704_v38 = vadd.f32 %v683_v37, %v531_v51  ;;  %v534_v41 = vadd.f32 %v533_v14, %v421_v26  ;;  %v2028_v63 = vpop.f32.mrb[27].mxu1  ;;  %v2059_v20 = vpop.f32.mrb[25].mxu0 }
 0x11d   : > { %v694_v11 = vpop.f32.mrb[26].mxu0 }
 0x11e   : > { %v705_v2 = vadd.f32 %v686_v61, %v534_v41  ;;  %v2060_v52 = vpop.f32.mrb[27].mxu0 }
 0x121   : > { %v538_v53 = vpop.f32.mrb[28].mxu1 }
 0x122   : > { %v539_v35 = vadd.f32 %v538_v53, %v426_v58  ;;  %v2031_v18 = vpop.f32.mrb[29].mxu1 }
 0x123   : > { %v541_v1 = vpop.f32.mrb[30].mxu1  ;;  %v935_v19 = vpop.f32.mrb[28].mxu0 }
 0x124   : > { %v706_v36 = vadd.f32 %v691_v32, %v539_v35  ;;  %v542_v12 = vadd.f32 %v541_v1, %v429_v13  ;;  %v2032_v7 = vpop.f32.mrb[31].mxu1  ;;  %v2099_v21 = vpop.f32.mrb[29].mxu0 }
 0x125   : > { %v938_v0 = vpop.f32.mrb[30].mxu0 }
 0x126   : > { %v707_v22 = vadd.f32 %v694_v11, %v542_v12  ;;  %v2100_v23 = vpop.f32.mrb[31].mxu0 }
 0x129   : > { %v810_v24 = vpop.f32.mrb[32].mxu1 }
 0x12a   : > { %v849_v10 = vadd.f32 %v810_v24, %v698_v3  ;;  %v2071_v26 = vpop.f32.mrb[33].mxu1 }
 0x12b   : > { %v813_v29 = vpop.f32.mrb[34].mxu1  ;;  %v943_v34 = vpop.f32.mrb[32].mxu0 }
 0x12c   : > { %v974_v39 = vadd.f32 %v935_v19, %v849_v10  ;;  %v850_v54 = vadd.f32 %v813_v29, %v699_v30  ;;  %v2072_v42 = vpop.f32.mrb[35].mxu1  ;;  %v2103_v40 = vpop.f32.mrb[33].mxu0 }
 0x12d   : > { %v946_v58 = vpop.f32.mrb[34].mxu0 }
 0x12e   : > { %v975_v43 = vadd.f32 %v938_v0, %v850_v54  ;;  %v2104_v44 = vpop.f32.mrb[35].mxu0 }
 0x131   : > { %v818_v31 = vpop.f32.mrb[36].mxu1 }
 0x132   : > { %v851_v45 = vadd.f32 %v818_v31, %v700_v48  ;;  %v2075_v13 = vpop.f32.mrb[37].mxu1 }
 0x133   : > { %v821_v46 = vpop.f32.mrb[38].mxu1  ;;  %v951_v47 = vpop.f32.mrb[36].mxu0 }
 0x134   : > { %v976_v49 = vadd.f32 %v943_v34, %v851_v45  ;;  %v852_v9 = vadd.f32 %v821_v46, %v701_v6  ;;  %v2076_v56 = vpop.f32.mrb[39].mxu1  ;;  %v2107_v62 = vpop.f32.mrb[37].mxu0 }
 0x135   : > { %v954_v3 = vpop.f32.mrb[38].mxu0 }
 0x136   : > { %v977_v4 = vadd.f32 %v946_v58, %v852_v9  ;;  %v2108_v5 = vpop.f32.mrb[39].mxu0 }
 0x139   : > { %v826_v25 = vpop.f32.mrb[40].mxu1 }
 0x13a   : > { %v853_v57 = vadd.f32 %v826_v25, %v702_v59  ;;  %v2079_v30 = vpop.f32.mrb[41].mxu1 }
 0x13b   : > { %v829_v16 = vpop.f32.mrb[42].mxu1  ;;  %v959_v27 = vpop.f32.mrb[40].mxu0 }
 0x13c   : > { %v978_v15 = vadd.f32 %v951_v47, %v853_v57  ;;  %v854_v37 = vadd.f32 %v829_v16, %v703_v55  ;;  %v2080_v28 = vpop.f32.mrb[43].mxu1  ;;  %v2111_v8 = vpop.f32.mrb[41].mxu0 }
 0x13d   : > { %v962_v48 = vpop.f32.mrb[42].mxu0 }
 0x13e   : > { %v979_v50 = vadd.f32 %v954_v3, %v854_v37  ;;  %v2112_v61 = vpop.f32.mrb[43].mxu0 }
 0x141   : > { %v834_v60 = vpop.f32.mrb[44].mxu1 }
 0x142   : > { %v855_v17 = vadd.f32 %v834_v60, %v704_v38  ;;  %v2083_v6 = vpop.f32.mrb[45].mxu1 }
 0x143   : > { %v837_v51 = vpop.f32.mrb[46].mxu1  ;;  %v967_v33 = vpop.f32.mrb[44].mxu0 }
 0x144   : > { %v980_v14 = vadd.f32 %v959_v27, %v855_v17  ;;  %v856_v32 = vadd.f32 %v837_v51, %v705_v2  ;;  %v2084_v41 = vpop.f32.mrb[47].mxu1  ;;  %v2115_v63 = vpop.f32.mrb[45].mxu0 }
 0x145   : > { %v970_v59 = vpop.f32.mrb[46].mxu0 }
 0x146   : > { %v981_v20 = vadd.f32 %v962_v48, %v856_v32  ;;  %v2116_v11 = vpop.f32.mrb[47].mxu0 }
 0x149   : > { %v842_v52 = vpop.f32.mrb[48].mxu1 }
 0x14a   : > { %v857_v53 = vadd.f32 %v842_v52, %v706_v36  ;;  %v2087_v55 = vpop.f32.mrb[49].mxu1 }
 0x14b   : > { %v845_v35 = vpop.f32.mrb[50].mxu1  ;;  %v1217_v18 = vpop.f32.mrb[48].mxu0 }
 0x14c   : > { %v982_v1 = vadd.f32 %v967_v33, %v857_v53  ;;  %v858_v19 = vadd.f32 %v845_v35, %v707_v22  ;;  %v2088_v12 = vpop.f32.mrb[51].mxu1  ;;  %v2155_v7 = vpop.f32.mrb[49].mxu0 }
 0x14d   : > { %v1220_v38 = vpop.f32.mrb[50].mxu0 }
 0x14e   : > { %v983_v21 = vadd.f32 %v970_v59, %v858_v19  ;;  %v2156_v0 = vpop.f32.mrb[51].mxu0 }
 0x151   : > { %v1088_v23 = vpop.f32.mrb[52].mxu1 }
 0x152   : > { %v1127_v24 = vadd.f32 %v1088_v23, %v974_v39  ;;  %v2127_v2 = vpop.f32.mrb[53].mxu1 }
 0x153   : > { %v1091_v10 = vpop.f32.mrb[54].mxu1  ;;  %v1225_v26 = vpop.f32.mrb[52].mxu0 }
 0x154   : > { %v1256_v29 = vadd.f32 %v1217_v18, %v1127_v24  ;;  %v1128_v34 = vadd.f32 %v1091_v10, %v975_v43  ;;  %v2128_v54 = vpop.f32.mrb[55].mxu1  ;;  %v2159_v42 = vpop.f32.mrb[53].mxu0 }
 0x155   : > { %v1228_v36 = vpop.f32.mrb[54].mxu0  ;;  %v1618_v24 = vpop.permute.xlu0 %1617  ;;  %v2298_v54 = vld [vmem:[%s2382_s29] sm:$0xf] }
 0x156   : > { %v1257_v40 = vadd.f32 %v1220_v38, %v1128_v34  ;;  %v2160_v58 = vpop.f32.mrb[55].mxu0  ;;  %v1556_v42 = vunpack.c.l.bf16 %v2298_v54  ;;  %vm1646_vm0 = vcmp.eq.s32.totalorder %v1618_v24, 1 }
 0x159   : > { %v1096_v44 = vpop.f32.mrb[56].mxu1 }
 0x15a   : > { %v1129_v31 = vadd.f32 %v1096_v44, %v976_v49  ;;  %v2131_v22 = vpop.f32.mrb[57].mxu1 }
 0x15b   : > { %v1099_v45 = vpop.f32.mrb[58].mxu1  ;;  %v1233_v13 = vpop.f32.mrb[56].mxu0 }
 0x15c   : > { %v2938_v46 = vadd.f32 %v1225_v26, %v1129_v31  ;;  %v1130_v47 = vadd.f32 %v1099_v45, %v977_v4  ;;  %v2132_v9 = vpop.f32.mrb[59].mxu1  ;;  %v2163_v39 = vpop.f32.mrb[57].mxu0 }
 0x15d   : > { %v1236_v56 = vpop.f32.mrb[58].mxu0  ;;  %v1621_v9 = vpop.permute.xlu0 %1620 }
 0x15e   : > { %v2940_v62 = vadd.f32 %v1228_v36, %v1130_v47  ;;  %v2164_v3 = vpop.f32.mrb[59].mxu0  ;;  %vm1647_vm8 = vcmp.eq.s32.totalorder %v1621_v9, 1 }
 0x161   : > { %v1104_v43 = vpop.f32.mrb[60].mxu1 }
 0x162   : > { %v1131_v5 = vadd.f32 %v1104_v43, %v978_v15  ;;  %v2135_v25 = vpop.f32.mrb[61].mxu1 }
 0x163   : > { %v1107_v57 = vpop.f32.mrb[62].mxu1  ;;  %v1241_v30 = vpop.f32.mrb[60].mxu0 }
 0x164   : > { %v2942_v16 = vadd.f32 %v1233_v13, %v1131_v5  ;;  %v1132_v49 = vadd.f32 %v1107_v57, %v979_v50  ;;  %v2136_v27 = vpop.f32.mrb[63].mxu1  ;;  %v2167_v37 = vpop.f32.mrb[61].mxu0  ;;  %v2300_v57 = vld [vmem:[%s2382_s29 + $0x8] sm:$0xf] }
 0x165   : > { %v1244_v28 = vpop.f32.mrb[62].mxu0  ;;  %v1624_v5 = vpop.permute.xlu1 %1623 }
 0x166   : > { %v2944_v8 = vadd.f32 %v1236_v56, %v1132_v49  ;;  %v2168_v4 = vpop.f32.mrb[63].mxu0  ;;  %vm1648_vm10 = vcmp.eq.s32.totalorder %v1624_v5, 1 }
 0x169   : > { %v1112_v48 = vpop.f32.mrb[64].mxu1 }
 0x16a   : > { %v1133_v61 = vadd.f32 %v1112_v48, %v980_v14  ;;  %v2139_v60 = vpop.f32.mrb[65].mxu1 }
 0x16b   : > { %v1115_v17 = vpop.f32.mrb[66].mxu1  ;;  %v1249_v6 = vpop.f32.mrb[64].mxu0 }
 0x16c   : > { %v2946_v51 = vadd.f32 %v1241_v30, %v1133_v61  ;;  %v1134_v15 = vadd.f32 %v1115_v17, %v981_v20  ;;  %v2140_v33 = vpop.f32.mrb[67].mxu1  ;;  %v2171_v32 = vpop.f32.mrb[65].mxu0  ;;  %v1558_v30 = vunpack.c.l.bf16 %v2300_v57 }
 0x16d   : > { %v1252_v41 = vpop.f32.mrb[66].mxu0  ;;  %v2301_v33 = vld [vmem:[%s2382_s29 + $0xc] sm:$0xf] }
 0x16e   : > { %v2948_v63 = vadd.f32 %v1244_v28, %v1134_v15  ;;  %v2172_v50 = vpop.f32.mrb[67].mxu0  ;;  %v1559_v32 = vunpack.c.l.bf16 %v2301_v33 }
 0x171   : > { %v1120_v59 = vpop.f32.mrb[68].mxu1 }
 0x172   : > { %v1135_v11 = vadd.f32 %v1120_v59, %v982_v1  ;;  %v2143_v52 = vpop.f32.mrb[69].mxu1  ;;  %v2957_v1 = vld [vmem:[%s3019_s2] ss:$0 sm:$0xff] }
 0x173   : > { %v1123_v53 = vpop.f32.mrb[70].mxu1  ;;  %v1490_v55 = vpop.f32.mrb[68].mxu0 }
 0x174   : > { %v2950_v35 = vadd.f32 %v1249_v6, %v1135_v11  ;;  %v1136_v14 = vadd.f32 %v1123_v53, %v983_v21  ;;  %v2144_v18 = vpop.f32.mrb[71].mxu1  ;;  %v2211_v19 = vpop.f32.mrb[69].mxu0 }
 0x175   : > { %v1493_v12 = vpop.f32.mrb[70].mxu0  ;;  %v1627_v53 = vpop.permute.xlu1 %1626 }
 0x176   : > { %v2952_v7 = vadd.f32 %v1252_v41, %v1136_v14  ;;  %v2212_v20 = vpop.f32.mrb[71].mxu0  ;;  %vm1649_vm12 = vcmp.eq.s32.totalorder %v1627_v53, 1 }
 0x179   : > { %v1335_v38 = vpop.f32.mrb[72].mxu1 }
 0x17a   : > { %v1374_v0 = vadd.f32 %v1335_v38, %v1256_v29  ;;  %v2183_v23 = vpop.f32.mrb[73].mxu1  ;;  %v2299_v29 = vld [vmem:[%s2382_s29 + $0x4] sm:$0xf] }
 0x17b   : > { %v1338_v2 = vpop.f32.mrb[74].mxu1  ;;  %v1498_v10 = vpop.f32.mrb[72].mxu0  ;;  %v1557_v22 = vunpack.c.l.bf16 %v2299_v29 }
 0x17c   : > { %v1529_v21 = vadd.f32 %v1490_v55, %v1374_v0  ;;  %v1375_v26 = vadd.f32 %v1338_v2, %v1257_v40  ;;  %v2184_v34 = vpop.f32.mrb[75].mxu1  ;;  %v2215_v36 = vpop.f32.mrb[73].mxu0 }
 0x17d   : > { %v1501_v58 = vpop.f32.mrb[74].mxu0  ;;  %v2303_v36 = vld [vmem:[%s2382_s29 + $0x14] sm:$0xf] }
 0x17e   : > { %v1546_v44 = vadd.f32 %v2957_v1, %v1529_v21  ;;  %v1530_v31 = vadd.f32 %v1493_v12, %v1375_v26  ;;  %v2216_v45 = vpop.f32.mrb[75].mxu0  ;;  %v2302_v12 = vld [vmem:[%s2382_s29 + $0x10] sm:$0xf] }
 0x17f   : > { %v1560_v20 = vunpack.c.l.bf16 %v2302_v12 }
 0x180   : > { %v1547_v13 = vadd.f32 %v2957_v1, %v1530_v31  ;;  %v1566_v47 = vadd.f32 %v1556_v42, %v1546_v44 }
 0x181   : > { %v1343_v39 = vpop.f32.mrb[76].mxu1 }
 0x182   : > { %v1576_v40 = vmax.f32 %v1566_v47, 0.0  ;;  %v1376_v56 = vadd.f32 %v1343_v39, %v2938_v46  ;;  %v2187_v3 = vpop.f32.mrb[77].mxu1  ;;  %v1567_v43 = vadd.f32 %v1557_v22, %v1547_v13  ;;  %v1630_v22 = vpop.permute.xlu0 %1629 }
 0x183   : > { %v1346_v25 = vpop.f32.mrb[78].mxu1  ;;  %v1506_v49 = vpop.f32.mrb[76].mxu0  ;;  %vm1650_vm13 = vcmp.eq.s32.totalorder %v1630_v22, 1 }
 0x184   : > { %v1656_v27 = vsel %vm1646_vm0, %v1576_v40, 0.0  ;;  %v1531_v37 = vadd.f32 %v1498_v10, %v1376_v56  ;;  %v1377_v46 = vadd.f32 %v1346_v25, %v2940_v62  ;;  %v1577_v28 = vmax.f32 %v1567_v43, 0.0  ;;  %v2188_v4 = vpop.f32.mrb[79].mxu1  ;;  %v2219_v48 = vpop.f32.mrb[77].mxu0  ;;  %v2304_v56 = vld [vmem:[%s2382_s29 + $0x18] sm:$0xf] }
 0x185   : > { %v1886_v61 = vpack.c.bf16 %v1656_v27, %v1656_v27  ;;  %v1509_v60 = vpop.f32.mrb[78].mxu0  ;;  %v1633_v13 = vpop.permute.xlu1 %1632  ;;  %v1562_v3 = vunpack.c.l.bf16 %v2304_v56 }
 0x186   : > { %v1548_v17 = vadd.f32 %v2957_v1, %v1531_v37  ;;  %v1532_v6 = vadd.f32 %v1501_v58, %v1377_v46  ;;  %v1657_v15 = vsel %vm1647_vm8, %v1577_v28, 0.0  ;;  %v2220_v41 = vpop.f32.mrb[79].mxu0  ;;  %v1561_v58 = vunpack.c.l.bf16 %v2303_v36 }
 0x187   : > { %1707 = vst.msk [vmem:[%s2970_s30] sm:$0xf] %vm1706_vm2, %v1886_v61  ;;  %v1887_v50 = vpack.c.bf16 %v1657_v15, %v1657_v15  ;;  %vm1651_vm14 = vcmp.eq.s32.totalorder %v1633_v13, 1  ;;  %v2305_v61 = vld [vmem:[%s2382_s29 + $0x1c] sm:$0xf] }
 0x188   : > { %v1549_v59 = vadd.f32 %v2957_v1, %v1532_v6  ;;  %v1568_v62 = vadd.f32 %v1558_v30, %v1548_v17 }
 0x189   : > { %1708 = vst.msk [vmem:[%s2970_s30 + $0x4] sm:$0xf] %vm1706_vm2, %v1887_v50  ;;  %v1351_v11 = vpop.f32.mrb[80].mxu1 }
 0x18a   : > { %v1578_v52 = vmax.f32 %v1568_v62, 0.0  ;;  %v1569_v55 = vadd.f32 %v1559_v32, %v1549_v59  ;;  %v1378_v14 = vadd.f32 %v1351_v11, %v2942_v16  ;;  %v2191_v18 = vpop.f32.mrb[81].mxu1  ;;  %v1636_v32 = vpop.permute.xlu0 %1635  ;;  %v2306_v11 = vld [vmem:[%s2382_s29 + $0x20] sm:$0xf] }
 0x18b   : > { %v1354_v19 = vpop.f32.mrb[82].mxu1  ;;  %v1514_v38 = vpop.f32.mrb[80].mxu0  ;;  %vm1652_vm15 = vcmp.eq.s32.totalorder %v1636_v32, 1 }
 0x18c   : > { %v1658_v0 = vsel %vm1648_vm10, %v1578_v52, 0.0  ;;  %v1579_v23 = vmax.f32 %v1569_v55, 0.0  ;;  %v1533_v24 = vadd.f32 %v1506_v49, %v1378_v14  ;;  %v1379_v2 = vadd.f32 %v1354_v19, %v2944_v8  ;;  %v2192_v10 = vpop.f32.mrb[83].mxu1  ;;  %v2223_v21 = vpop.f32.mrb[81].mxu0 }
 0x18d   : > { %v1888_v26 = vpack.c.bf16 %v1658_v0, %v1658_v0  ;;  %v1517_v34 = vpop.f32.mrb[82].mxu0  ;;  %v1564_v52 = vunpack.c.l.bf16 %v2306_v11  ;;  %v1639_v55 = vpop.permute.xlu1 %1638 }
 0x18e   : > { %v1659_v54 = vsel %vm1649_vm12, %v1579_v23, 0.0  ;;  %v1550_v16 = vadd.f32 %v2957_v1, %v1533_v24  ;;  %v1534_v42 = vadd.f32 %v1509_v60, %v1379_v2  ;;  %v2224_v44 = vpop.f32.mrb[83].mxu0  ;;  %v1563_v60 = vunpack.c.l.bf16 %v2305_v61  ;;  %v2307_v24 = vld [vmem:[%s2382_s29 + $0x24] sm:$0xf]  ;;  %v1642_v21 = vpop.permute.xlu0 %1641 }
 0x18f   : > { %1709 = vst.msk [vmem:[%s2970_s30 + $0x8] sm:$0xf] %vm1706_vm2, %v1888_v26  ;;  %v1889_v31 = vpack.c.bf16 %v1659_v54, %v1659_v54  ;;  %vm1653_vm1 = vcmp.eq.s32.totalorder %v1639_v55, 1  ;;  %v1565_v2 = vunpack.c.l.bf16 %v2307_v24  ;;  %vm1654_vm3 = vcmp.eq.s32.totalorder %v1642_v21, 1 }
 0x190   : > { %v1551_v29 = vadd.f32 %v2957_v1, %v1534_v42  ;;  %v1570_v8 = vadd.f32 %v1560_v20, %v1550_v16 }
 0x191   : > { %1710 = vst.msk [vmem:[%s2970_s30 + $0xc] sm:$0xf] %vm1706_vm2, %v1889_v31  ;;  %v1359_v45 = vpop.f32.mrb[84].mxu1 }
 0x192   : > { %v1571_v47 = vadd.f32 %v1561_v58, %v1551_v29  ;;  %v1580_v9 = vmax.f32 %v1570_v8, 0.0  ;;  %v1380_v39 = vadd.f32 %v1359_v45, %v2946_v51  ;;  %v2195_v40 = vpop.f32.mrb[85].mxu1 }
 0x193   : > { %v1362_v43 = vpop.f32.mrb[86].mxu1  ;;  %v1522_v5 = vpop.f32.mrb[84].mxu0 }
 0x194   : > { %v1581_v25 = vmax.f32 %v1571_v47, 0.0  ;;  %v1660_v57 = vsel %vm1650_vm13, %v1580_v9, 0.0  ;;  %v1535_v30 = vadd.f32 %v1514_v38, %v1380_v39  ;;  %v1381_v49 = vadd.f32 %v1362_v43, %v2948_v63  ;;  %v2196_v27 = vpop.f32.mrb[87].mxu1  ;;  %v2227_v37 = vpop.f32.mrb[85].mxu0 }
 0x195   : > { %v1890_v46 = vpack.c.bf16 %v1660_v57, %v1660_v57  ;;  %v1525_v28 = vpop.f32.mrb[86].mxu0 }
 0x196   : > { %v1661_v4 = vsel %vm1651_vm14, %v1581_v25, 0.0  ;;  %v1552_v51 = vadd.f32 %v2957_v1, %v1535_v30  ;;  %v1536_v48 = vadd.f32 %v1517_v34, %v1381_v49  ;;  %v2228_v17 = vpop.f32.mrb[87].mxu0 }
 0x197   : > { %v1891_v6 = vpack.c.bf16 %v1661_v4, %v1661_v4  ;;  %1711 = vst.msk [vmem:[%s2970_s30 + $0x10] sm:$0xf] %vm1706_vm2, %v1890_v46 }
 0x198   : > { %v1572_v15 = vadd.f32 %v1562_v3, %v1552_v51  ;;  %v1553_v33 = vadd.f32 %v2957_v1, %v1536_v48 }
 0x199   : > { %1712 = vst.msk [vmem:[%s2970_s30 + $0x14] sm:$0xf] %vm1706_vm2, %v1891_v6  ;;  %v1367_v63 = vpop.f32.mrb[88].mxu1 }
 0x19a   : > { %v1582_v41 = vmax.f32 %v1572_v15, 0.0  ;;  %v1573_v50 = vadd.f32 %v1563_v60, %v1553_v33  ;;  %v1382_v59 = vadd.f32 %v1367_v63, %v2950_v35  ;;  %v2199_v62 = vpop.f32.mrb[89].mxu1 }
 0x19b   : > { %v1370_v53 = vpop.f32.mrb[90].mxu1 }
 0x19c   : > { %v1662_v14 = vsel %vm1652_vm15, %v1582_v41, 0.0  ;;  %v1583_v18 = vmax.f32 %v1573_v50, 0.0  ;;  %v1537_v19 = vadd.f32 %v1522_v5, %v1382_v59  ;;  %v1383_v12 = vadd.f32 %v1370_v53, %v2952_v7  ;;  %v2200_v20 = vpop.f32.mrb[91].mxu1  ;;  %v1645_v7 = vpop.permute.xlu1 %1644 }
 0x19d   : > { %v1892_v38 = vpack.c.bf16 %v1662_v14, %v1662_v14  ;;  %vm1655_vm4 = vcmp.eq.s32.totalorder %v1645_v7, 1 }
 0x19e   : > { %v1663_v0 = vsel %vm1653_vm1, %v1583_v18, 0.0  ;;  %v1554_v35 = vadd.f32 %v2957_v1, %v1537_v19  ;;  %v1538_v23 = vadd.f32 %v1525_v28, %v1383_v12 }
 0x19f   : > { %1713 = vst.msk [vmem:[%s2970_s30 + $0x18] sm:$0xf] %vm1706_vm2, %v1892_v38  ;;  %v1893_v10 = vpack.c.bf16 %v1663_v0, %v1663_v0 }
 0x1a0   : > { %v1574_v26 = vadd.f32 %v1564_v52, %v1554_v35  ;;  %v1555_v34 = vadd.f32 %v2957_v1, %v1538_v23 }
 0x1a1   : > { %1714 = vst.msk [vmem:[%s2970_s30 + $0x1c] sm:$0xf] %vm1706_vm2, %v1893_v10 }
 0x1a2   : > { %v1584_v54 = vmax.f32 %v1574_v26, 0.0  ;;  %v1575_v16 = vadd.f32 %v1565_v2, %v1555_v34 }
 0x1a4   : > { %v1664_v42 = vsel %vm1654_vm3, %v1584_v54, 0.0  ;;  %v1585_v36 = vmax.f32 %v1575_v16, 0.0 }
 0x1a5   : > { %v1894_v58 = vpack.c.bf16 %v1664_v42, %v1664_v42 }
 0x1a6   : > { %v1665_v44 = vsel %vm1655_vm4, %v1585_v36, 0.0 }
 0x1a7   : > { %1715 = vst.msk [vmem:[%s2970_s30 + $0x20] sm:$0xf] %vm1706_vm2, %v1894_v58  ;;  %v1895_v31 = vpack.c.bf16 %v1665_v44, %v1665_v44 }
 0x1a9   : > { %1716 = vst.msk [vmem:[%s2970_s30 + $0x24] sm:$0xf] %vm1706_vm2, %v1895_v31 }
 0x1aa PF: > { %s14_s15 = sadd.s32 1, %s2314_s15  }
 0x1ab   : > { %p11_p4 = scmp.ge.s32.totalorder %s14_s15, 4  }
 0x1ad   :  { %13 = sbr.rel (!%p11_p4) target bundleno = 1 (0x1), region = 66 }

</bundles_post_ra>
